<compile_context>
chip_gen: v7x
topology: tpu7x:2x2x1
jax: 0.10.0
libtpu: 0.0.40
codegen_flags: <defaults>
</compile_context>

<pallas_src>
import jax
import jax.numpy as jnp
from jax import lax
from jax.experimental import pallas as pl
from jax.experimental.pallas import tpu as pltpu

_LANE = 128


def _round_up(x, m):
    return (x + m - 1) // m * m


def _derived_vmem_limit():
    """Per-generation VMEM budget: ~100 MiB on v5e/v6e (128 MiB physical),
    ~51 MiB on v7x (64 MiB physical)."""
    cap = None
    try:
        info = pltpu.get_tpu_info()
        for attr in ("vmem_capacity_bytes", "vmem_size_bytes", "vmem_bytes"):
            if hasattr(info, attr):
                cap = int(getattr(info, attr))
                break
    except Exception:
        cap = None
    if not cap or cap <= 0:
        cap = 128 * 1024 * 1024
    return min(cap * 8 // 10, 100 * 1024 * 1024)


# --------------------------------------------------------------------------
# Kernel
# --------------------------------------------------------------------------
def _make_conv_kernel(H, W, Cin, K, K_pad, Cout, Co_p, D, has_residual, cdt):
    """Fused 3x3x3 conv + folded-BN + ReLU (+ optional 1x1x1 residual).

    Grid = (N, D).  A 3-plane VMEM ring holds zero-padded depth slabs
    (d-1, d, d+1); slabs d-1/d are carried forward from the previous step and
    only slab d+1 is freshly DMA'd.  An (H*W, 27*Cin) im2col matrix is built
    in VMEM and contracted against the resident (K_pad, Co_p) weight in one
    deep MXU matmul with f32 accumulation.
    """

    def kernel(*refs):
        if has_residual:
            (x0_ref, xp1_ref, w_ref, sc_ref, sh_ref, xres_ref, wr_ref,
             out_ref, xpad, patch) = refs
        else:
            (x0_ref, xp1_ref, w_ref, sc_ref, sh_ref,
             out_ref, xpad, patch) = refs

        d = pl.program_id(1)

        # ---- rolling depth window: plane0 = d-1, plane1 = d, plane2 = d+1 ----
        @pl.when(d == 0)
        def _init():
            # Single zero fill per (n, d==0): establishes the spatial halo
            # border, the d==0 depth halo (plane 0) and the K padding tail.
            # Interiors are overwritten below / on later steps; borders never.
            xpad[...] = jnp.zeros_like(xpad)
            xpad[1:2, 1:H + 1, 1:W + 1, :] = x0_ref[...].astype(cdt)
            if K_pad > K:
                patch[:, K:] = jnp.zeros((H * W, K_pad - K), cdt)

        @pl.when(d > 0)
        def _shift():
            # Carry last step's planes forward (no HBM re-fetch of d-1, d).
            xpad[0:1, 1:H + 1, 1:W + 1, :] = xpad[1:2, 1:H + 1, 1:W + 1, :]
            xpad[1:2, 1:H + 1, 1:W + 1, :] = xpad[2:3, 1:H + 1, 1:W + 1, :]

        @pl.when(d < D - 1)
        def _load_next():
            xpad[2:3, 1:H + 1, 1:W + 1, :] = xp1_ref[...].astype(cdt)

        @pl.when(d == D - 1)
        def _zero_next():                     # depth halo at the far boundary
            xpad[2:3, 1:H + 1, 1:W + 1, :] = jnp.zeros((1, H, W, Cin), cdt)

        # ---- im2col: 27 window copies, K = 27*Cin (no per-tap lane pad) ----
        for kd in range(3):
            for kh in range(3):
                for kw in range(3):
                    t = (kd * 3 + kh) * 3 + kw
                    patch[:, t * Cin:(t + 1) * Cin] = (
                        xpad[kd, kh:kh + H, kw:kw + W, :].reshape(H * W, Cin))

        # ---- one deep bf16 MXU matmul, f32 accumulation ----
        acc = jnp.dot(patch[...], w_ref[...],
                      preferred_element_type=jnp.float32)
        # Folded BatchNorm (+ conv bias) and ReLU in f32.
        y = jnp.maximum(acc * sc_ref[...] + sh_ref[...], 0.0)
        if has_residual:
            y = y + jnp.dot(xres_ref[...].astype(cdt), wr_ref[...],
                            preferred_element_type=jnp.float32)
        if Co_p > Cout:
            y = y[:, :Cout]                  # write exact channels only
        out_ref[...] = y.astype(out_ref.dtype)

    return kernel


# --------------------------------------------------------------------------
# Wrapper (specs, packing, grid)
# --------------------------------------------------------------------------
def conv3x3x3_bn_relu(x, w, scale, shift, residual=None,
                      out_dtype=jnp.float32, compute_dtype=jnp.bfloat16,
                      vmem_limit_bytes=None):
    """x: (N, D, H, W, Cin_x) NDHWC; w: (3,3,3,Cin_w,Cout) with Cin_w <= Cin_x
    (extra input channels get zero weights); scale/shift: (1, Cout) folded BN
    params (shift includes the conv bias).  residual: optional
    (x_res (N,D,H,W,Cr), wr (Cr,Cout)) added after the ReLU.

    Returns (N, D, H*W, Cout) with exact (unpadded) output channels.
    """
    N, D, H, W, Cin_x = x.shape
    kd_, kh_, kw_, Cin_w, Cout = w.shape
    assert (kd_, kh_, kw_) == (3, 3, 3)
    assert Cin_w <= Cin_x
    K = 27 * Cin_x
    K_pad = _round_up(K, _LANE)
    Co_p = _round_up(Cout, _LANE)
    if vmem_limit_bytes is None:
        vmem_limit_bytes = _derived_vmem_limit()

    # MXU-friendly parameter packing (pre-packed once in a real model):
    # (3,3,3,Cin,Cout) -> (K_pad, Co_p), tap-major / channel-minor rows.
    w_full = jnp.pad(w, ((0, 0), (0, 0), (0, 0),
                         (0, Cin_x - Cin_w), (0, Co_p - Cout)))
    w_mat = jnp.pad(w_full.reshape(K, Co_p),
                    ((0, K_pad - K), (0, 0))).astype(compute_dtype)
    scale_p = jnp.pad(scale.astype(jnp.float32), ((0, 0), (0, Co_p - Cout)))
    shift_p = jnp.pad(shift.astype(jnp.float32), ((0, 0), (0, Co_p - Cout)))

    x_block = (None, 1, H, W, Cin_x)
    in_specs = [
        # slab d is carried in the VMEM ring; this spec only supplies slab 0
        # (constant-in-d block index => fetched once per n, stays resident).
        pl.BlockSpec(x_block, lambda n, d: (n, 0, 0, 0, 0)),
        # slab d+1 (clamped; at d==D-1 the block index repeats, so no new DMA).
        pl.BlockSpec(x_block,
                     lambda n, d: (n, jnp.minimum(d + 1, D - 1), 0, 0, 0)),
        # resident parameters: constant block index -> DMA'd once, not N*D x.
        pl.BlockSpec((K_pad, Co_p), lambda n, d: (0, 0)),
        pl.BlockSpec((1, Co_p), lambda n, d: (0, 0)),
        pl.BlockSpec((1, Co_p), lambda n, d: (0, 0)),
    ]
    args = [x, x, w_mat, scale_p, shift_p]

    has_residual = residual is not None
    if has_residual:
        x_res, wr = residual
        Cr = x_res.shape[-1]
        xres_flat = x_res.reshape(N, D, H * W, Cr).astype(compute_dtype)
        wr_p = jnp.pad(wr, ((0, 0), (0, Co_p - Cout))).astype(compute_dtype)
        in_specs += [
            pl.BlockSpec((None, None, H * W, Cr), lambda n, d: (n, d, 0, 0)),
            pl.BlockSpec((Cr, Co_p), lambda n, d: (0, 0)),
        ]
        args += [xres_flat, wr_p]

    kernel = _make_conv_kernel(H, W, Cin_x, K, K_pad, Cout, Co_p, D,
                               has_residual, compute_dtype)
    Wp = _round_up(W + 2, 8)        # sublane-aligned halo rows (v5e item)

    out = pl.pallas_call(
        kernel,
        out_shape=jax.ShapeDtypeStruct((N, D, H * W, Cout), out_dtype),
        grid_spec=pltpu.PrefetchScalarGridSpec(
            num_scalar_prefetch=0,
            grid=(N, D),
            in_specs=in_specs,
            out_specs=pl.BlockSpec((None, None, H * W, Cout),
                                   lambda n, d: (n, d, 0, 0)),
            scratch_shapes=[
                pltpu.VMEM((3, H + 2, Wp, Cin_x), compute_dtype),  # depth ring
                pltpu.VMEM((H * W, K_pad), compute_dtype),         # im2col
            ]),
        compiler_params=pltpu.CompilerParams(
            dimension_semantics=("parallel", "arbitrary"),
            vmem_limit_bytes=vmem_limit_bytes),
    )(*args)
    return out


def conv3d_block_forward(x_ncdhw, params, residual=True,
                         compute_dtype=jnp.bfloat16):
    """Equivalent of Conv3D_Block.forward (PyTorch NCDHW in / NCDHW out)."""
    N, Cin, D, H, W = x_ncdhw.shape
    cout = params["w1"].shape[-1]
    x = jnp.transpose(x_ncdhw, (0, 2, 3, 4, 1)).astype(compute_dtype)  # NDHWC
    # conv1: emit exact-Cout bf16 so conv2's K is 27*Cout, not 27*128, and the
    # inter-conv HBM traffic carries no padded channels.
    y1 = conv3x3x3_bn_relu(x, params["w1"], params["scale1"], params["shift1"],
                           out_dtype=compute_dtype, compute_dtype=compute_dtype)
    y1 = y1.reshape(N, D, H, W, cout)
    res = (x, params["wr"]) if residual else None
    y2 = conv3x3x3_bn_relu(y1, params["w2"], params["scale2"], params["shift2"],
                           residual=res, out_dtype=jnp.float32,
                           compute_dtype=compute_dtype)
    y2 = y2.reshape(N, D, H, W, cout)
    return jnp.transpose(y2, (0, 4, 1, 2, 3))         # NDHWC -> NCDHW


# --------------------------------------------------------------------------
# Deterministic parameter init (shapes per Conv3D_Block.__init__)
# --------------------------------------------------------------------------
def make_params(key, cin, cout, eps=1e-5):
    k1, k2, k3, k4, k5 = jax.random.split(key, 5)
    w1 = jax.random.normal(k1, (3, 3, 3, cin, cout), jnp.float32) * 0.1
    b1 = jax.random.normal(k2, (cout,), jnp.float32) * 0.1
    w2 = jax.random.normal(k3, (3, 3, 3, cout, cout), jnp.float32) * 0.1
    b2 = jax.random.normal(k4, (cout,), jnp.float32) * 0.1
    wr = jax.random.normal(k5, (cin, cout), jnp.float32) * 0.1
    # BatchNorm3d default init: gamma=1, beta=0, running_mean=0, running_var=1
    gamma = jnp.ones((cout,), jnp.float32)
    beta = jnp.zeros((cout,), jnp.float32)
    rmean = jnp.zeros((cout,), jnp.float32)
    rvar = jnp.ones((cout,), jnp.float32)
    s = gamma / jnp.sqrt(rvar + eps)
    return dict(
        w1=w1, scale1=s.reshape(1, cout),
        shift1=((b1 - rmean) * s + beta).reshape(1, cout),
        w2=w2, scale2=s.reshape(1, cout),
        shift2=((b2 - rmean) * s + beta).reshape(1, cout),
        wr=wr,
    )


# --------------------------------------------------------------------------
# Pure-JAX reference with matching numerics (bf16 operands, f32 accumulation)
# --------------------------------------------------------------------------
def _ref_forward(x_ncdhw, params, residual=True, compute_dtype=jnp.bfloat16):
    xc = jnp.transpose(x_ncdhw, (0, 2, 3, 4, 1)).astype(compute_dtype)

    def cbr(xin, w, scale, shift):
        y = lax.conv_general_dilated(
            xin, w.astype(compute_dtype),
            window_strides=(1, 1, 1), padding=((1, 1), (1, 1), (1, 1)),
            dimension_numbers=("NDHWC", "DHWIO", "NDHWC"),
            preferred_element_type=jnp.float32)
        return jnp.maximum(y * scale[0] + shift[0], 0.0)

    y1 = cbr(xc, params["w1"], params["scale1"], params["shift1"])
    y1 = y1.astype(compute_dtype)            # kernel stores y1 as bf16
    y2 = cbr(y1, params["w2"], params["scale2"], params["shift2"])
    if residual:
        y2 = y2 + jnp.einsum("ndhwc,co->ndhwo", xc,
                             params["wr"].astype(compute_dtype),
                             preferred_element_type=jnp.float32)
    return jnp.transpose(y2, (0, 4, 1, 2, 3))


if __name__ == "__main__":
    key = jax.random.PRNGKey(0)
    kx, kp = jax.random.split(key)
    N, Cin, D, H, W = 2, 4, 8, 8, 8
    Cout = 8

    x = jax.random.normal(kx, (N, Cin, D, H, W), jnp.float32)
    params = make_params(kp, Cin, Cout)

    out = jax.block_until_ready(conv3d_block_forward(x, params, residual=True))
    assert out.shape == (N, Cout, D, H, W), out.shape

    ref = _ref_forward(x, params, residual=True)
    err = float(jnp.max(jnp.abs(out - ref)))
    assert jnp.allclose(out, ref, atol=2e-2, rtol=2e-2), f"max abs err {err}"
    print("KERNEL_OK")
</pallas_src>

<mosaic_0001>
module attributes {stable_mosaic.version = 11 : i64} {
  func.func @kernel(%arg0: i32, %arg1: i32, %arg2: memref<1x1x8x8x4xbf16, #tpu.memory_space<vmem>>, %arg3: memref<1x1x8x8x4xbf16, #tpu.memory_space<vmem>>, %arg4: memref<128x128xbf16, #tpu.memory_space<vmem>>, %arg5: memref<1x128xf32, #tpu.memory_space<vmem>>, %arg6: memref<1x128xf32, #tpu.memory_space<vmem>>, %arg7: memref<1x1x64x8xbf16, #tpu.memory_space<vmem>>, %arg8: memref<3x10x16x4xbf16, #tpu.memory_space<vmem>>, %arg9: memref<64x128xbf16, #tpu.memory_space<vmem>>) attributes {dimension_semantics = [#tpu.dimension_semantics<parallel>, #tpu.dimension_semantics<arbitrary>], iteration_bounds = array<i64: 2, 8>, scalar_prefetch = 0 : i64, scratch_operands = 2 : i64, tpu.core_type = #tpu.core_type<tc>, window_params = [{transform_indices = @transform_0, window_bounds = array<i64: 1, 1, 8, 8, 4>}, {transform_indices = @transform_1, window_bounds = array<i64: 1, 1, 8, 8, 4>}, {pipeline_mode = #tpu.pipeline_mode<synchronous>, transform_indices = @transform_2, window_bounds = array<i64: 128, 128>}, {pipeline_mode = #tpu.pipeline_mode<synchronous>, transform_indices = @transform_3, window_bounds = array<i64: 1, 128>}, {pipeline_mode = #tpu.pipeline_mode<synchronous>, transform_indices = @transform_4, window_bounds = array<i64: 1, 128>}, {transform_indices = @transform_5, window_bounds = array<i64: 1, 1, 64, 8>}]} {
    %c0_i32 = arith.constant 0 : i32
    %0 = arith.cmpi eq, %arg1, %c0_i32 : i32
    %1 = arith.extui %0 : i1 to i32
    %c0_i32_0 = arith.constant 0 : i32
    %2 = arith.cmpi ne, %1, %c0_i32_0 : i32
    scf.if %2 {
      %cst_152 = arith.constant 0.000000e+00 : bf16
      %136 = vector.broadcast %cst_152 : bf16 to vector<3x10x16x4xbf16>
      %c0_153 = arith.constant 0 : index
      %c0_154 = arith.constant 0 : index
      %c0_155 = arith.constant 0 : index
      %c0_156 = arith.constant 0 : index
      %137 = vector.load %arg8[%c0_153, %c0_154, %c0_155, %c0_156] : memref<3x10x16x4xbf16, #tpu.memory_space<vmem>>, vector<3x10x16x4xbf16>
      tpu.vector_store %arg8[%c0_153, %c0_154, %c0_155, %c0_156], %136 {strides = array<i32>} : memref<3x10x16x4xbf16, #tpu.memory_space<vmem>>, vector<3x10x16x4xbf16>,
      %c0_157 = arith.constant 0 : index
      %c0_158 = arith.constant 0 : index
      %c0_159 = arith.constant 0 : index
      %c0_160 = arith.constant 0 : index
      %c0_161 = arith.constant 0 : index
      %138 = vector.load %arg2[%c0_157, %c0_158, %c0_159, %c0_160, %c0_161] : memref<1x1x8x8x4xbf16, #tpu.memory_space<vmem>>, vector<1x1x8x8x4xbf16>
      %139 = vector.shape_cast %138 : vector<1x1x8x8x4xbf16> to vector<1x8x8x4xbf16>
      %c1_162 = arith.constant 1 : index
      %c1_163 = arith.constant 1 : index
      %c1_164 = arith.constant 1 : index
      %c0_165 = arith.constant 0 : index
      %140 = vector.load %arg8[%c1_162, %c1_163, %c1_164, %c0_165] : memref<3x10x16x4xbf16, #tpu.memory_space<vmem>>, vector<1x8x8x4xbf16>
      tpu.vector_store %arg8[%c1_162, %c1_163, %c1_164, %c0_165], %139 {strides = array<i32>} : memref<3x10x16x4xbf16, #tpu.memory_space<vmem>>, vector<1x8x8x4xbf16>,
      %cst_166 = arith.constant 0.000000e+00 : bf16
      %141 = vector.broadcast %cst_166 : bf16 to vector<64x20xbf16>
      %c0_167 = arith.constant 0 : index
      %c108 = arith.constant 108 : index
      %142 = vector.load %arg9[%c0_167, %c108] : memref<64x128xbf16, #tpu.memory_space<vmem>>, vector<64x20xbf16>
      tpu.vector_store %arg9[%c0_167, %c108], %141 {strides = array<i32>} : memref<64x128xbf16, #tpu.memory_space<vmem>>, vector<64x20xbf16>,
    } else {
    }
    %c0_i32_1 = arith.constant 0 : i32
    %3 = arith.cmpi sgt, %arg1, %c0_i32_1 : i32
    %4 = arith.extui %3 : i1 to i32
    %c0_i32_2 = arith.constant 0 : i32
    %5 = arith.cmpi ne, %4, %c0_i32_2 : i32
    scf.if %5 {
      %c1_152 = arith.constant 1 : index
      %c1_153 = arith.constant 1 : index
      %c1_154 = arith.constant 1 : index
      %c0_155 = arith.constant 0 : index
      %136 = vector.load %arg8[%c1_152, %c1_153, %c1_154, %c0_155] : memref<3x10x16x4xbf16, #tpu.memory_space<vmem>>, vector<1x8x8x4xbf16>
      %c0_156 = arith.constant 0 : index
      %c1_157 = arith.constant 1 : index
      %c1_158 = arith.constant 1 : index
      %c0_159 = arith.constant 0 : index
      %137 = vector.load %arg8[%c0_156, %c1_157, %c1_158, %c0_159] : memref<3x10x16x4xbf16, #tpu.memory_space<vmem>>, vector<1x8x8x4xbf16>
      tpu.vector_store %arg8[%c0_156, %c1_157, %c1_158, %c0_159], %136 {strides = array<i32>} : memref<3x10x16x4xbf16, #tpu.memory_space<vmem>>, vector<1x8x8x4xbf16>,
      %c2_160 = arith.constant 2 : index
      %c1_161 = arith.constant 1 : index
      %c1_162 = arith.constant 1 : index
      %c0_163 = arith.constant 0 : index
      %138 = vector.load %arg8[%c2_160, %c1_161, %c1_162, %c0_163] : memref<3x10x16x4xbf16, #tpu.memory_space<vmem>>, vector<1x8x8x4xbf16>
      %c1_164 = arith.constant 1 : index
      %c1_165 = arith.constant 1 : index
      %c1_166 = arith.constant 1 : index
      %c0_167 = arith.constant 0 : index
      %139 = vector.load %arg8[%c1_164, %c1_165, %c1_166, %c0_167] : memref<3x10x16x4xbf16, #tpu.memory_space<vmem>>, vector<1x8x8x4xbf16>
      tpu.vector_store %arg8[%c1_164, %c1_165, %c1_166, %c0_167], %138 {strides = array<i32>} : memref<3x10x16x4xbf16, #tpu.memory_space<vmem>>, vector<1x8x8x4xbf16>,
    } else {
    }
    %c7_i32 = arith.constant 7 : i32
    %6 = arith.cmpi slt, %arg1, %c7_i32 : i32
    %7 = arith.extui %6 : i1 to i32
    %c0_i32_3 = arith.constant 0 : i32
    %8 = arith.cmpi ne, %7, %c0_i32_3 : i32
    scf.if %8 {
      %c0_152 = arith.constant 0 : index
      %c0_153 = arith.constant 0 : index
      %c0_154 = arith.constant 0 : index
      %c0_155 = arith.constant 0 : index
      %c0_156 = arith.constant 0 : index
      %136 = vector.load %arg3[%c0_152, %c0_153, %c0_154, %c0_155, %c0_156] : memref<1x1x8x8x4xbf16, #tpu.memory_space<vmem>>, vector<1x1x8x8x4xbf16>
      %137 = vector.shape_cast %136 : vector<1x1x8x8x4xbf16> to vector<1x8x8x4xbf16>
      %c2_157 = arith.constant 2 : index
      %c1_158 = arith.constant 1 : index
      %c1_159 = arith.constant 1 : index
      %c0_160 = arith.constant 0 : index
      %138 = vector.load %arg8[%c2_157, %c1_158, %c1_159, %c0_160] : memref<3x10x16x4xbf16, #tpu.memory_space<vmem>>, vector<1x8x8x4xbf16>
      tpu.vector_store %arg8[%c2_157, %c1_158, %c1_159, %c0_160], %137 {strides = array<i32>} : memref<3x10x16x4xbf16, #tpu.memory_space<vmem>>, vector<1x8x8x4xbf16>,
    } else {
    }
    %c7_i32_4 = arith.constant 7 : i32
    %9 = arith.cmpi eq, %arg1, %c7_i32_4 : i32
    %10 = arith.extui %9 : i1 to i32
    %c0_i32_5 = arith.constant 0 : i32
    %11 = arith.cmpi ne, %10, %c0_i32_5 : i32
    scf.if %11 {
      %cst_152 = arith.constant 0.000000e+00 : bf16
      %136 = vector.broadcast %cst_152 : bf16 to vector<1x8x8x4xbf16>
      %c2_153 = arith.constant 2 : index
      %c1_154 = arith.constant 1 : index
      %c1_155 = arith.constant 1 : index
      %c0_156 = arith.constant 0 : index
      %137 = vector.load %arg8[%c2_153, %c1_154, %c1_155, %c0_156] : memref<3x10x16x4xbf16, #tpu.memory_space<vmem>>, vector<1x8x8x4xbf16>
      tpu.vector_store %arg8[%c2_153, %c1_154, %c1_155, %c0_156], %136 {strides = array<i32>} : memref<3x10x16x4xbf16, #tpu.memory_space<vmem>>, vector<1x8x8x4xbf16>,
    } else {
    }
    %c0 = arith.constant 0 : index
    %c0_6 = arith.constant 0 : index
    %c0_7 = arith.constant 0 : index
    %c0_8 = arith.constant 0 : index
    %12 = vector.load %arg8[%c0, %c0_6, %c0_7, %c0_8] : memref<3x10x16x4xbf16, #tpu.memory_space<vmem>>, vector<1x8x8x4xbf16>
    %13 = vector.shape_cast %12 : vector<1x8x8x4xbf16> to vector<8x8x4xbf16>
    %14 = vector.shape_cast %13 : vector<8x8x4xbf16> to vector<64x4xbf16>
    %c0_9 = arith.constant 0 : index
    %c0_10 = arith.constant 0 : index
    %15 = vector.load %arg9[%c0_9, %c0_10] : memref<64x128xbf16, #tpu.memory_space<vmem>>, vector<64x4xbf16>
    tpu.vector_store %arg9[%c0_9, %c0_10], %14 {strides = array<i32>} : memref<64x128xbf16, #tpu.memory_space<vmem>>, vector<64x4xbf16>,
    %c0_11 = arith.constant 0 : index
    %c0_12 = arith.constant 0 : index
    %c1 = arith.constant 1 : index
    %c0_13 = arith.constant 0 : index
    %16 = vector.load %arg8[%c0_11, %c0_12, %c1, %c0_13] : memref<3x10x16x4xbf16, #tpu.memory_space<vmem>>, vector<1x8x8x4xbf16>
    %17 = vector.shape_cast %16 : vector<1x8x8x4xbf16> to vector<8x8x4xbf16>
    %18 = vector.shape_cast %17 : vector<8x8x4xbf16> to vector<64x4xbf16>
    %c0_14 = arith.constant 0 : index
    %c4 = arith.constant 4 : index
    %19 = vector.load %arg9[%c0_14, %c4] : memref<64x128xbf16, #tpu.memory_space<vmem>>, vector<64x4xbf16>
    tpu.vector_store %arg9[%c0_14, %c4], %18 {strides = array<i32>} : memref<64x128xbf16, #tpu.memory_space<vmem>>, vector<64x4xbf16>,
    %c0_15 = arith.constant 0 : index
    %c0_16 = arith.constant 0 : index
    %c2 = arith.constant 2 : index
    %c0_17 = arith.constant 0 : index
    %20 = vector.load %arg8[%c0_15, %c0_16, %c2, %c0_17] : memref<3x10x16x4xbf16, #tpu.memory_space<vmem>>, vector<1x8x8x4xbf16>
    %21 = vector.shape_cast %20 : vector<1x8x8x4xbf16> to vector<8x8x4xbf16>
    %22 = vector.shape_cast %21 : vector<8x8x4xbf16> to vector<64x4xbf16>
    %c0_18 = arith.constant 0 : index
    %c8 = arith.constant 8 : index
    %23 = vector.load %arg9[%c0_18, %c8] : memref<64x128xbf16, #tpu.memory_space<vmem>>, vector<64x4xbf16>
    tpu.vector_store %arg9[%c0_18, %c8], %22 {strides = array<i32>} : memref<64x128xbf16, #tpu.memory_space<vmem>>, vector<64x4xbf16>,
    %c0_19 = arith.constant 0 : index
    %c1_20 = arith.constant 1 : index
    %c0_21 = arith.constant 0 : index
    %c0_22 = arith.constant 0 : index
    %24 = vector.load %arg8[%c0_19, %c1_20, %c0_21, %c0_22] : memref<3x10x16x4xbf16, #tpu.memory_space<vmem>>, vector<1x8x8x4xbf16>
    %25 = vector.shape_cast %24 : vector<1x8x8x4xbf16> to vector<8x8x4xbf16>
    %26 = vector.shape_cast %25 : vector<8x8x4xbf16> to vector<64x4xbf16>
    %c0_23 = arith.constant 0 : index
    %c12 = arith.constant 12 : index
    %27 = vector.load %arg9[%c0_23, %c12] : memref<64x128xbf16, #tpu.memory_space<vmem>>, vector<64x4xbf16>
    tpu.vector_store %arg9[%c0_23, %c12], %26 {strides = array<i32>} : memref<64x128xbf16, #tpu.memory_space<vmem>>, vector<64x4xbf16>,
    %c0_24 = arith.constant 0 : index
    %c1_25 = arith.constant 1 : index
    %c1_26 = arith.constant 1 : index
    %c0_27 = arith.constant 0 : index
    %28 = vector.load %arg8[%c0_24, %c1_25, %c1_26, %c0_27] : memref<3x10x16x4xbf16, #tpu.memory_space<vmem>>, vector<1x8x8x4xbf16>
    %29 = vector.shape_cast %28 : vector<1x8x8x4xbf16> to vector<8x8x4xbf16>
    %30 = vector.shape_cast %29 : vector<8x8x4xbf16> to vector<64x4xbf16>
    %c0_28 = arith.constant 0 : index
    %c16 = arith.constant 16 : index
    %31 = vector.load %arg9[%c0_28, %c16] : memref<64x128xbf16, #tpu.memory_space<vmem>>, vector<64x4xbf16>
    tpu.vector_store %arg9[%c0_28, %c16], %30 {strides = array<i32>} : memref<64x128xbf16, #tpu.memory_space<vmem>>, vector<64x4xbf16>,
    %c0_29 = arith.constant 0 : index
    %c1_30 = arith.constant 1 : index
    %c2_31 = arith.constant 2 : index
    %c0_32 = arith.constant 0 : index
    %32 = vector.load %arg8[%c0_29, %c1_30, %c2_31, %c0_32] : memref<3x10x16x4xbf16, #tpu.memory_space<vmem>>, vector<1x8x8x4xbf16>
    %33 = vector.shape_cast %32 : vector<1x8x8x4xbf16> to vector<8x8x4xbf16>
    %34 = vector.shape_cast %33 : vector<8x8x4xbf16> to vector<64x4xbf16>
    %c0_33 = arith.constant 0 : index
    %c20 = arith.constant 20 : index
    %35 = vector.load %arg9[%c0_33, %c20] : memref<64x128xbf16, #tpu.memory_space<vmem>>, vector<64x4xbf16>
    tpu.vector_store %arg9[%c0_33, %c20], %34 {strides = array<i32>} : memref<64x128xbf16, #tpu.memory_space<vmem>>, vector<64x4xbf16>,
    %c0_34 = arith.constant 0 : index
    %c2_35 = arith.constant 2 : index
    %c0_36 = arith.constant 0 : index
    %c0_37 = arith.constant 0 : index
    %36 = vector.load %arg8[%c0_34, %c2_35, %c0_36, %c0_37] : memref<3x10x16x4xbf16, #tpu.memory_space<vmem>>, vector<1x8x8x4xbf16>
    %37 = vector.shape_cast %36 : vector<1x8x8x4xbf16> to vector<8x8x4xbf16>
    %38 = vector.shape_cast %37 : vector<8x8x4xbf16> to vector<64x4xbf16>
    %c0_38 = arith.constant 0 : index
    %c24 = arith.constant 24 : index
    %39 = vector.load %arg9[%c0_38, %c24] : memref<64x128xbf16, #tpu.memory_space<vmem>>, vector<64x4xbf16>
    tpu.vector_store %arg9[%c0_38, %c24], %38 {strides = array<i32>} : memref<64x128xbf16, #tpu.memory_space<vmem>>, vector<64x4xbf16>,
    %c0_39 = arith.constant 0 : index
    %c2_40 = arith.constant 2 : index
    %c1_41 = arith.constant 1 : index
    %c0_42 = arith.constant 0 : index
    %40 = vector.load %arg8[%c0_39, %c2_40, %c1_41, %c0_42] : memref<3x10x16x4xbf16, #tpu.memory_space<vmem>>, vector<1x8x8x4xbf16>
    %41 = vector.shape_cast %40 : vector<1x8x8x4xbf16> to vector<8x8x4xbf16>
    %42 = vector.shape_cast %41 : vector<8x8x4xbf16> to vector<64x4xbf16>
    %c0_43 = arith.constant 0 : index
    %c28 = arith.constant 28 : index
    %43 = vector.load %arg9[%c0_43, %c28] : memref<64x128xbf16, #tpu.memory_space<vmem>>, vector<64x4xbf16>
    tpu.vector_store %arg9[%c0_43, %c28], %42 {strides = array<i32>} : memref<64x128xbf16, #tpu.memory_space<vmem>>, vector<64x4xbf16>,
    %c0_44 = arith.constant 0 : index
    %c2_45 = arith.constant 2 : index
    %c2_46 = arith.constant 2 : index
    %c0_47 = arith.constant 0 : index
    %44 = vector.load %arg8[%c0_44, %c2_45, %c2_46, %c0_47] : memref<3x10x16x4xbf16, #tpu.memory_space<vmem>>, vector<1x8x8x4xbf16>
    %45 = vector.shape_cast %44 : vector<1x8x8x4xbf16> to vector<8x8x4xbf16>
    %46 = vector.shape_cast %45 : vector<8x8x4xbf16> to vector<64x4xbf16>
    %c0_48 = arith.constant 0 : index
    %c32 = arith.constant 32 : index
    %47 = vector.load %arg9[%c0_48, %c32] : memref<64x128xbf16, #tpu.memory_space<vmem>>, vector<64x4xbf16>
    tpu.vector_store %arg9[%c0_48, %c32], %46 {strides = array<i32>} : memref<64x128xbf16, #tpu.memory_space<vmem>>, vector<64x4xbf16>,
    %c1_49 = arith.constant 1 : index
    %c0_50 = arith.constant 0 : index
    %c0_51 = arith.constant 0 : index
    %c0_52 = arith.constant 0 : index
    %48 = vector.load %arg8[%c1_49, %c0_50, %c0_51, %c0_52] : memref<3x10x16x4xbf16, #tpu.memory_space<vmem>>, vector<1x8x8x4xbf16>
    %49 = vector.shape_cast %48 : vector<1x8x8x4xbf16> to vector<8x8x4xbf16>
    %50 = vector.shape_cast %49 : vector<8x8x4xbf16> to vector<64x4xbf16>
    %c0_53 = arith.constant 0 : index
    %c36 = arith.constant 36 : index
    %51 = vector.load %arg9[%c0_53, %c36] : memref<64x128xbf16, #tpu.memory_space<vmem>>, vector<64x4xbf16>
    tpu.vector_store %arg9[%c0_53, %c36], %50 {strides = array<i32>} : memref<64x128xbf16, #tpu.memory_space<vmem>>, vector<64x4xbf16>,
    %c1_54 = arith.constant 1 : index
    %c0_55 = arith.constant 0 : index
    %c1_56 = arith.constant 1 : index
    %c0_57 = arith.constant 0 : index
    %52 = vector.load %arg8[%c1_54, %c0_55, %c1_56, %c0_57] : memref<3x10x16x4xbf16, #tpu.memory_space<vmem>>, vector<1x8x8x4xbf16>
    %53 = vector.shape_cast %52 : vector<1x8x8x4xbf16> to vector<8x8x4xbf16>
    %54 = vector.shape_cast %53 : vector<8x8x4xbf16> to vector<64x4xbf16>
    %c0_58 = arith.constant 0 : index
    %c40 = arith.constant 40 : index
    %55 = vector.load %arg9[%c0_58, %c40] : memref<64x128xbf16, #tpu.memory_space<vmem>>, vector<64x4xbf16>
    tpu.vector_store %arg9[%c0_58, %c40], %54 {strides = array<i32>} : memref<64x128xbf16, #tpu.memory_space<vmem>>, vector<64x4xbf16>,
    %c1_59 = arith.constant 1 : index
    %c0_60 = arith.constant 0 : index
    %c2_61 = arith.constant 2 : index
    %c0_62 = arith.constant 0 : index
    %56 = vector.load %arg8[%c1_59, %c0_60, %c2_61, %c0_62] : memref<3x10x16x4xbf16, #tpu.memory_space<vmem>>, vector<1x8x8x4xbf16>
    %57 = vector.shape_cast %56 : vector<1x8x8x4xbf16> to vector<8x8x4xbf16>
    %58 = vector.shape_cast %57 : vector<8x8x4xbf16> to vector<64x4xbf16>
    %c0_63 = arith.constant 0 : index
    %c44 = arith.constant 44 : index
    %59 = vector.load %arg9[%c0_63, %c44] : memref<64x128xbf16, #tpu.memory_space<vmem>>, vector<64x4xbf16>
    tpu.vector_store %arg9[%c0_63, %c44], %58 {strides = array<i32>} : memref<64x128xbf16, #tpu.memory_space<vmem>>, vector<64x4xbf16>,
    %c1_64 = arith.constant 1 : index
    %c1_65 = arith.constant 1 : index
    %c0_66 = arith.constant 0 : index
    %c0_67 = arith.constant 0 : index
    %60 = vector.load %arg8[%c1_64, %c1_65, %c0_66, %c0_67] : memref<3x10x16x4xbf16, #tpu.memory_space<vmem>>, vector<1x8x8x4xbf16>
    %61 = vector.shape_cast %60 : vector<1x8x8x4xbf16> to vector<8x8x4xbf16>
    %62 = vector.shape_cast %61 : vector<8x8x4xbf16> to vector<64x4xbf16>
    %c0_68 = arith.constant 0 : index
    %c48 = arith.constant 48 : index
    %63 = vector.load %arg9[%c0_68, %c48] : memref<64x128xbf16, #tpu.memory_space<vmem>>, vector<64x4xbf16>
    tpu.vector_store %arg9[%c0_68, %c48], %62 {strides = array<i32>} : memref<64x128xbf16, #tpu.memory_space<vmem>>, vector<64x4xbf16>,
    %c1_69 = arith.constant 1 : index
    %c1_70 = arith.constant 1 : index
    %c1_71 = arith.constant 1 : index
    %c0_72 = arith.constant 0 : index
    %64 = vector.load %arg8[%c1_69, %c1_70, %c1_71, %c0_72] : memref<3x10x16x4xbf16, #tpu.memory_space<vmem>>, vector<1x8x8x4xbf16>
    %65 = vector.shape_cast %64 : vector<1x8x8x4xbf16> to vector<8x8x4xbf16>
    %66 = vector.shape_cast %65 : vector<8x8x4xbf16> to vector<64x4xbf16>
    %c0_73 = arith.constant 0 : index
    %c52 = arith.constant 52 : index
    %67 = vector.load %arg9[%c0_73, %c52] : memref<64x128xbf16, #tpu.memory_space<vmem>>, vector<64x4xbf16>
    tpu.vector_store %arg9[%c0_73, %c52], %66 {strides = array<i32>} : memref<64x128xbf16, #tpu.memory_space<vmem>>, vector<64x4xbf16>,
    %c1_74 = arith.constant 1 : index
    %c1_75 = arith.constant 1 : index
    %c2_76 = arith.constant 2 : index
    %c0_77 = arith.constant 0 : index
    %68 = vector.load %arg8[%c1_74, %c1_75, %c2_76, %c0_77] : memref<3x10x16x4xbf16, #tpu.memory_space<vmem>>, vector<1x8x8x4xbf16>
    %69 = vector.shape_cast %68 : vector<1x8x8x4xbf16> to vector<8x8x4xbf16>
    %70 = vector.shape_cast %69 : vector<8x8x4xbf16> to vector<64x4xbf16>
    %c0_78 = arith.constant 0 : index
    %c56 = arith.constant 56 : index
    %71 = vector.load %arg9[%c0_78, %c56] : memref<64x128xbf16, #tpu.memory_space<vmem>>, vector<64x4xbf16>
    tpu.vector_store %arg9[%c0_78, %c56], %70 {strides = array<i32>} : memref<64x128xbf16, #tpu.memory_space<vmem>>, vector<64x4xbf16>,
    %c1_79 = arith.constant 1 : index
    %c2_80 = arith.constant 2 : index
    %c0_81 = arith.constant 0 : index
    %c0_82 = arith.constant 0 : index
    %72 = vector.load %arg8[%c1_79, %c2_80, %c0_81, %c0_82] : memref<3x10x16x4xbf16, #tpu.memory_space<vmem>>, vector<1x8x8x4xbf16>
    %73 = vector.shape_cast %72 : vector<1x8x8x4xbf16> to vector<8x8x4xbf16>
    %74 = vector.shape_cast %73 : vector<8x8x4xbf16> to vector<64x4xbf16>
    %c0_83 = arith.constant 0 : index
    %c60 = arith.constant 60 : index
    %75 = vector.load %arg9[%c0_83, %c60] : memref<64x128xbf16, #tpu.memory_space<vmem>>, vector<64x4xbf16>
    tpu.vector_store %arg9[%c0_83, %c60], %74 {strides = array<i32>} : memref<64x128xbf16, #tpu.memory_space<vmem>>, vector<64x4xbf16>,
    %c1_84 = arith.constant 1 : index
    %c2_85 = arith.constant 2 : index
    %c1_86 = arith.constant 1 : index
    %c0_87 = arith.constant 0 : index
    %76 = vector.load %arg8[%c1_84, %c2_85, %c1_86, %c0_87] : memref<3x10x16x4xbf16, #tpu.memory_space<vmem>>, vector<1x8x8x4xbf16>
    %77 = vector.shape_cast %76 : vector<1x8x8x4xbf16> to vector<8x8x4xbf16>
    %78 = vector.shape_cast %77 : vector<8x8x4xbf16> to vector<64x4xbf16>
    %c0_88 = arith.constant 0 : index
    %c64 = arith.constant 64 : index
    %79 = vector.load %arg9[%c0_88, %c64] : memref<64x128xbf16, #tpu.memory_space<vmem>>, vector<64x4xbf16>
    tpu.vector_store %arg9[%c0_88, %c64], %78 {strides = array<i32>} : memref<64x128xbf16, #tpu.memory_space<vmem>>, vector<64x4xbf16>,
    %c1_89 = arith.constant 1 : index
    %c2_90 = arith.constant 2 : index
    %c2_91 = arith.constant 2 : index
    %c0_92 = arith.constant 0 : index
    %80 = vector.load %arg8[%c1_89, %c2_90, %c2_91, %c0_92] : memref<3x10x16x4xbf16, #tpu.memory_space<vmem>>, vector<1x8x8x4xbf16>
    %81 = vector.shape_cast %80 : vector<1x8x8x4xbf16> to vector<8x8x4xbf16>
    %82 = vector.shape_cast %81 : vector<8x8x4xbf16> to vector<64x4xbf16>
    %c0_93 = arith.constant 0 : index
    %c68 = arith.constant 68 : index
    %83 = vector.load %arg9[%c0_93, %c68] : memref<64x128xbf16, #tpu.memory_space<vmem>>, vector<64x4xbf16>
    tpu.vector_store %arg9[%c0_93, %c68], %82 {strides = array<i32>} : memref<64x128xbf16, #tpu.memory_space<vmem>>, vector<64x4xbf16>,
    %c2_94 = arith.constant 2 : index
    %c0_95 = arith.constant 0 : index
    %c0_96 = arith.constant 0 : index
    %c0_97 = arith.constant 0 : index
    %84 = vector.load %arg8[%c2_94, %c0_95, %c0_96, %c0_97] : memref<3x10x16x4xbf16, #tpu.memory_space<vmem>>, vector<1x8x8x4xbf16>
    %85 = vector.shape_cast %84 : vector<1x8x8x4xbf16> to vector<8x8x4xbf16>
    %86 = vector.shape_cast %85 : vector<8x8x4xbf16> to vector<64x4xbf16>
    %c0_98 = arith.constant 0 : index
    %c72 = arith.constant 72 : index
    %87 = vector.load %arg9[%c0_98, %c72] : memref<64x128xbf16, #tpu.memory_space<vmem>>, vector<64x4xbf16>
    tpu.vector_store %arg9[%c0_98, %c72], %86 {strides = array<i32>} : memref<64x128xbf16, #tpu.memory_space<vmem>>, vector<64x4xbf16>,
    %c2_99 = arith.constant 2 : index
    %c0_100 = arith.constant 0 : index
    %c1_101 = arith.constant 1 : index
    %c0_102 = arith.constant 0 : index
    %88 = vector.load %arg8[%c2_99, %c0_100, %c1_101, %c0_102] : memref<3x10x16x4xbf16, #tpu.memory_space<vmem>>, vector<1x8x8x4xbf16>
    %89 = vector.shape_cast %88 : vector<1x8x8x4xbf16> to vector<8x8x4xbf16>
    %90 = vector.shape_cast %89 : vector<8x8x4xbf16> to vector<64x4xbf16>
    %c0_103 = arith.constant 0 : index
    %c76 = arith.constant 76 : index
    %91 = vector.load %arg9[%c0_103, %c76] : memref<64x128xbf16, #tpu.memory_space<vmem>>, vector<64x4xbf16>
    tpu.vector_store %arg9[%c0_103, %c76], %90 {strides = array<i32>} : memref<64x128xbf16, #tpu.memory_space<vmem>>, vector<64x4xbf16>,
    %c2_104 = arith.constant 2 : index
    %c0_105 = arith.constant 0 : index
    %c2_106 = arith.constant 2 : index
    %c0_107 = arith.constant 0 : index
    %92 = vector.load %arg8[%c2_104, %c0_105, %c2_106, %c0_107] : memref<3x10x16x4xbf16, #tpu.memory_space<vmem>>, vector<1x8x8x4xbf16>
    %93 = vector.shape_cast %92 : vector<1x8x8x4xbf16> to vector<8x8x4xbf16>
    %94 = vector.shape_cast %93 : vector<8x8x4xbf16> to vector<64x4xbf16>
    %c0_108 = arith.constant 0 : index
    %c80 = arith.constant 80 : index
    %95 = vector.load %arg9[%c0_108, %c80] : memref<64x128xbf16, #tpu.memory_space<vmem>>, vector<64x4xbf16>
    tpu.vector_store %arg9[%c0_108, %c80], %94 {strides = array<i32>} : memref<64x128xbf16, #tpu.memory_space<vmem>>, vector<64x4xbf16>,
    %c2_109 = arith.constant 2 : index
    %c1_110 = arith.constant 1 : index
    %c0_111 = arith.constant 0 : index
    %c0_112 = arith.constant 0 : index
    %96 = vector.load %arg8[%c2_109, %c1_110, %c0_111, %c0_112] : memref<3x10x16x4xbf16, #tpu.memory_space<vmem>>, vector<1x8x8x4xbf16>
    %97 = vector.shape_cast %96 : vector<1x8x8x4xbf16> to vector<8x8x4xbf16>
    %98 = vector.shape_cast %97 : vector<8x8x4xbf16> to vector<64x4xbf16>
    %c0_113 = arith.constant 0 : index
    %c84 = arith.constant 84 : index
    %99 = vector.load %arg9[%c0_113, %c84] : memref<64x128xbf16, #tpu.memory_space<vmem>>, vector<64x4xbf16>
    tpu.vector_store %arg9[%c0_113, %c84], %98 {strides = array<i32>} : memref<64x128xbf16, #tpu.memory_space<vmem>>, vector<64x4xbf16>,
    %c2_114 = arith.constant 2 : index
    %c1_115 = arith.constant 1 : index
    %c1_116 = arith.constant 1 : index
    %c0_117 = arith.constant 0 : index
    %100 = vector.load %arg8[%c2_114, %c1_115, %c1_116, %c0_117] : memref<3x10x16x4xbf16, #tpu.memory_space<vmem>>, vector<1x8x8x4xbf16>
    %101 = vector.shape_cast %100 : vector<1x8x8x4xbf16> to vector<8x8x4xbf16>
    %102 = vector.shape_cast %101 : vector<8x8x4xbf16> to vector<64x4xbf16>
    %c0_118 = arith.constant 0 : index
    %c88 = arith.constant 88 : index
    %103 = vector.load %arg9[%c0_118, %c88] : memref<64x128xbf16, #tpu.memory_space<vmem>>, vector<64x4xbf16>
    tpu.vector_store %arg9[%c0_118, %c88], %102 {strides = array<i32>} : memref<64x128xbf16, #tpu.memory_space<vmem>>, vector<64x4xbf16>,
    %c2_119 = arith.constant 2 : index
    %c1_120 = arith.constant 1 : index
    %c2_121 = arith.constant 2 : index
    %c0_122 = arith.constant 0 : index
    %104 = vector.load %arg8[%c2_119, %c1_120, %c2_121, %c0_122] : memref<3x10x16x4xbf16, #tpu.memory_space<vmem>>, vector<1x8x8x4xbf16>
    %105 = vector.shape_cast %104 : vector<1x8x8x4xbf16> to vector<8x8x4xbf16>
    %106 = vector.shape_cast %105 : vector<8x8x4xbf16> to vector<64x4xbf16>
    %c0_123 = arith.constant 0 : index
    %c92 = arith.constant 92 : index
    %107 = vector.load %arg9[%c0_123, %c92] : memref<64x128xbf16, #tpu.memory_space<vmem>>, vector<64x4xbf16>
    tpu.vector_store %arg9[%c0_123, %c92], %106 {strides = array<i32>} : memref<64x128xbf16, #tpu.memory_space<vmem>>, vector<64x4xbf16>,
    %c2_124 = arith.constant 2 : index
    %c2_125 = arith.constant 2 : index
    %c0_126 = arith.constant 0 : index
    %c0_127 = arith.constant 0 : index
    %108 = vector.load %arg8[%c2_124, %c2_125, %c0_126, %c0_127] : memref<3x10x16x4xbf16, #tpu.memory_space<vmem>>, vector<1x8x8x4xbf16>
    %109 = vector.shape_cast %108 : vector<1x8x8x4xbf16> to vector<8x8x4xbf16>
    %110 = vector.shape_cast %109 : vector<8x8x4xbf16> to vector<64x4xbf16>
    %c0_128 = arith.constant 0 : index
    %c96 = arith.constant 96 : index
    %111 = vector.load %arg9[%c0_128, %c96] : memref<64x128xbf16, #tpu.memory_space<vmem>>, vector<64x4xbf16>
    tpu.vector_store %arg9[%c0_128, %c96], %110 {strides = array<i32>} : memref<64x128xbf16, #tpu.memory_space<vmem>>, vector<64x4xbf16>,
    %c2_129 = arith.constant 2 : index
    %c2_130 = arith.constant 2 : index
    %c1_131 = arith.constant 1 : index
    %c0_132 = arith.constant 0 : index
    %112 = vector.load %arg8[%c2_129, %c2_130, %c1_131, %c0_132] : memref<3x10x16x4xbf16, #tpu.memory_space<vmem>>, vector<1x8x8x4xbf16>
    %113 = vector.shape_cast %112 : vector<1x8x8x4xbf16> to vector<8x8x4xbf16>
    %114 = vector.shape_cast %113 : vector<8x8x4xbf16> to vector<64x4xbf16>
    %c0_133 = arith.constant 0 : index
    %c100 = arith.constant 100 : index
    %115 = vector.load %arg9[%c0_133, %c100] : memref<64x128xbf16, #tpu.memory_space<vmem>>, vector<64x4xbf16>
    tpu.vector_store %arg9[%c0_133, %c100], %114 {strides = array<i32>} : memref<64x128xbf16, #tpu.memory_space<vmem>>, vector<64x4xbf16>,
    %c2_134 = arith.constant 2 : index
    %c2_135 = arith.constant 2 : index
    %c2_136 = arith.constant 2 : index
    %c0_137 = arith.constant 0 : index
    %116 = vector.load %arg8[%c2_134, %c2_135, %c2_136, %c0_137] : memref<3x10x16x4xbf16, #tpu.memory_space<vmem>>, vector<1x8x8x4xbf16>
    %117 = vector.shape_cast %116 : vector<1x8x8x4xbf16> to vector<8x8x4xbf16>
    %118 = vector.shape_cast %117 : vector<8x8x4xbf16> to vector<64x4xbf16>
    %c0_138 = arith.constant 0 : index
    %c104 = arith.constant 104 : index
    %119 = vector.load %arg9[%c0_138, %c104] : memref<64x128xbf16, #tpu.memory_space<vmem>>, vector<64x4xbf16>
    tpu.vector_store %arg9[%c0_138, %c104], %118 {strides = array<i32>} : memref<64x128xbf16, #tpu.memory_space<vmem>>, vector<64x4xbf16>,
    %c0_139 = arith.constant 0 : index
    %c0_140 = arith.constant 0 : index
    %120 = vector.load %arg9[%c0_139, %c0_140] : memref<64x128xbf16, #tpu.memory_space<vmem>>, vector<64x128xbf16>
    %c0_141 = arith.constant 0 : index
    %c0_142 = arith.constant 0 : index
    %121 = vector.load %arg4[%c0_141, %c0_142] : memref<128x128xbf16, #tpu.memory_space<vmem>>, vector<128x128xbf16>
    %cst = arith.constant dense<0.000000e+00> : vector<64x128xf32>
    %122 = tpu.matmul %120, %121, %cst {dimension_numbers = #tpu.dot_dimension_numbers<[1], [0], [0], [1], [0, 0, 1, 1], [], []>} : vector<64x128xbf16>, vector<128x128xbf16>, vector<64x128xf32> -> vector<64x128xf32>
    %c0_143 = arith.constant 0 : index
    %c0_144 = arith.constant 0 : index
    %123 = vector.load %arg5[%c0_143, %c0_144] : memref<1x128xf32, #tpu.memory_space<vmem>>, vector<1x128xf32>
    %124 = vector.broadcast %123 : vector<1x128xf32> to vector<64x128xf32>
    %125 = arith.mulf %122, %124 : vector<64x128xf32>
    %c0_145 = arith.constant 0 : index
    %c0_146 = arith.constant 0 : index
    %126 = vector.load %arg6[%c0_145, %c0_146] : memref<1x128xf32, #tpu.memory_space<vmem>>, vector<1x128xf32>
    %127 = vector.broadcast %126 : vector<1x128xf32> to vector<64x128xf32>
    %128 = arith.addf %125, %127 : vector<64x128xf32>
    %cst_147 = arith.constant 0.000000e+00 : f32
    %129 = vector.broadcast %cst_147 : f32 to vector<64x128xf32>
    %130 = arith.maximumf %128, %129 : vector<64x128xf32>
    %131 = vector.extract_strided_slice %130 {offsets = [0, 0], sizes = [64, 8], strides = [1, 1]} : vector<64x128xf32> to vector<64x8xf32>
    %132 = arith.truncf %131 : vector<64x8xf32> to vector<64x8xbf16>
    %c0_148 = arith.constant 0 : index
    %c0_149 = arith.constant 0 : index
    %c0_150 = arith.constant 0 : index
    %c0_151 = arith.constant 0 : index
    %133 = vector.load %arg7[%c0_148, %c0_149, %c0_150, %c0_151] : memref<1x1x64x8xbf16, #tpu.memory_space<vmem>>, vector<1x1x64x8xbf16>
    %134 = vector.shape_cast %133 : vector<1x1x64x8xbf16> to vector<64x8xbf16>
    %135 = vector.shape_cast %132 : vector<64x8xbf16> to vector<1x1x64x8xbf16>
    tpu.vector_store %arg7[%c0_148, %c0_149, %c0_150, %c0_151], %135 {strides = array<i32>} : memref<1x1x64x8xbf16, #tpu.memory_space<vmem>>, vector<1x1x64x8xbf16>,
    return
  }
  func.func @transform_0(%arg0: i32, %arg1: i32) -> (i32, i32, i32, i32, i32) {
    %c0_i32 = arith.constant 0 : i32
    %c0_i32_0 = arith.constant 0 : i32
    %c0_i32_1 = arith.constant 0 : i32
    %c0_i32_2 = arith.constant 0 : i32
    %c0_i32_3 = arith.constant 0 : i32
    return %arg0, %c0_i32, %c0_i32_0, %c0_i32_1, %c0_i32_2 : i32, i32, i32, i32, i32
  }
  func.func @transform_1(%arg0: i32, %arg1: i32) -> (i32, i32, i32, i32, i32) {
    %c1_i32 = arith.constant 1 : i32
    %0 = arith.addi %arg1, %c1_i32 : i32
    %c7_i32 = arith.constant 7 : i32
    %1 = arith.minsi %0, %c7_i32 : i32
    %c0_i32 = arith.constant 0 : i32
    %c0_i32_0 = arith.constant 0 : i32
    %c0_i32_1 = arith.constant 0 : i32
    %c0_i32_2 = arith.constant 0 : i32
    return %arg0, %1, %c0_i32, %c0_i32_0, %c0_i32_1 : i32, i32, i32, i32, i32
  }
  func.func @transform_2(%arg0: i32, %arg1: i32) -> (i32, i32) {
    %c0_i32 = arith.constant 0 : i32
    %c0_i32_0 = arith.constant 0 : i32
    %c0_i32_1 = arith.constant 0 : i32
    return %c0_i32, %c0_i32_0 : i32, i32
  }
  func.func @transform_3(%arg0: i32, %arg1: i32) -> (i32, i32) {
    %c0_i32 = arith.constant 0 : i32
    %c0_i32_0 = arith.constant 0 : i32
    %c0_i32_1 = arith.constant 0 : i32
    return %c0_i32, %c0_i32_0 : i32, i32
  }
  func.func @transform_4(%arg0: i32, %arg1: i32) -> (i32, i32) {
    %c0_i32 = arith.constant 0 : i32
    %c0_i32_0 = arith.constant 0 : i32
    %c0_i32_1 = arith.constant 0 : i32
    return %c0_i32, %c0_i32_0 : i32, i32
  }
  func.func @transform_5(%arg0: i32, %arg1: i32) -> (i32, i32, i32, i32) {
    %c0_i32 = arith.constant 0 : i32
    %c0_i32_0 = arith.constant 0 : i32
    %c0_i32_1 = arith.constant 0 : i32
    return %arg0, %arg1, %c0_i32, %c0_i32_0 : i32, i32, i32, i32
  }
}

</mosaic_0001>

<bundles_post_ra>
// kernel: tpu_custom_call.1
= control target key start
LH: loop header
LB: loop body
LE: loop exit
PB: predicated region body
PF: predicated region fallthrough
CT: control target
= control target key end

     0   :  { %s6930_s0 = inlined_call_operand.hbm [shape: bf16[2,8,8,8,4], index: 0, kind: input, shape index: {}]   ;;  %s6931_s1 = inlined_call_operand.hbm [shape: bf16[2,8,8,8,4], index: 1, kind: input, shape index: {}]   ;;  %s6932_s2 = inlined_call_operand.hbm [shape: bf16[128,128], index: 2, kind: input, shape index: {}]   ;;  %s6933_s3 = inlined_call_operand.hbm [shape: f32[1,128], index: 3, kind: input, shape index: {}]   ;;  %s6934_s4 = inlined_call_operand.hbm [shape: f32[1,128], index: 4, kind: input, shape index: {}]   ;;  %s6935_s5 = inlined_call_operand.hbm [shape: bf16[2,8,64,8], index: 5, kind: output, shape index: {}]  }
   0x1   :  { %6962 = sst [smem:[#allocation32_spill]] %s6930_s0 }
   0x2   :  { %6963 = sst [smem:[#allocation33_spill]] %s6932_s2 }
   0x3   :  { %6964 = sst [smem:[#allocation34_spill]] %s6933_s3 }
   0x4   :  { %6965 = sst [smem:[#allocation35_spill]] %s6934_s4 }
   0x5   :  { %6966 = sst [smem:[#allocation36_spill]] %s6935_s5 }
   0x6   :  { %10 = vsyncpa [#allocation5], 0 }
   0x7   :  { %12 = vsyncpa [#allocation5 + $0x1], 0 }
   0x8   :  { %13 = vsyncpa [#allocation8], 0 }
   0x9   :  { %15 = vsyncpa [#allocation8 + $0x1], 0 }
   0xa   :  { %16 = vsyncpa [#allocation11], 0 }
   0xb   :  { %17 = vsyncpa [#allocation6], 0 }
   0xc   :  { %19 = vsyncpa [#allocation6 + $0x1], 0  ;;  %s5715_s18 = smov 0   ;;  %s5717_s19 = smov 0  }
   0xd   :  { %s5719_s20 = smov 0   ;;  %s5721_s21 = smov 0  }
   0xe   :  { %s5723_s22 = smov 0   ;;  %s5725_s23 = smov 0  }
   0xf   :  { %s5727_s24 = smov 0   ;;  %s5729_s25 = smov 0  }
  0x10   :  { %s5731_s26 = smov 0   ;;  %s5733_s27 = smov 0  }
  0x11   :  { %s5735_s28 = smov 0   ;;  %s5737_s29 = smov 0  }
  0x12   :  { %s5739_s30 = smov 0   ;;  %s5741_s6 = smov 0  }
  0x13 LB: > { %6967 = sst [smem:[#allocation19_spill]] %s5596_s18  ;;  %s5782_s7 = sadd.s32 4294967295, %s5648_s6   ;;  %s5648_s6 = sphi %s5741_s6, %s25_s6   ;;  %s5644_s30 = sphi %s5739_s30, %s7050_s30   ;;  %s5640_s29 = sphi %s5737_s29, %s7040_s29   ;;  %s5636_s28 = sphi %s5735_s28, %s7049_s28   ;;  %s5632_s27 = sphi %s5733_s27, %s7039_s27   ;;  %s5628_s26 = sphi %s5731_s26, %s7038_s26   ;;  %s5624_s25 = sphi %s5729_s25, %s7048_s25   ;;  %s5620_s24 = sphi %s5727_s24, %s7047_s24   ;;  %s5616_s23 = sphi %s5725_s23, %s7046_s23   ;;  %s5612_s22 = sphi %s5723_s22, %s7045_s22   ;;  %s5608_s21 = sphi %s5721_s21, %s7044_s21   ;;  %s5604_s20 = sphi %s5719_s20, %s7043_s20   ;;  %s5600_s19 = sphi %s5717_s19, %s7042_s19   ;;  %s5596_s18 = sphi %s5715_s18, %s7036_s18  }
  0x14   : > { %6968 = sst [smem:[#allocation20_spill]] %s5600_s19  ;;  %s4214_s8 = sadd.s32 4294967294, %s5648_s6  }
  0x15   : > { %6969 = sst [smem:[#allocation21_spill]] %s5628_s26  ;;  %p57_p0 = scmp.ne.s32.totalorder %s5624_s25, %s5620_s24 }
  0x16   : > { %6970 = sst [smem:[#allocation22_spill]] %s5632_s27  ;;  %p6941_p1 = scmp.eq.s32.totalorder %s5782_s7, 0 }
  0x17   : > { %6971 = sst [smem:[#allocation23_spill]] %s5636_s28  ;;  %p91_p2 = scmp.ne.s32.totalorder %s5612_s22, %s5608_s21 }
  0x18   : > { %6972 = sst [smem:[#allocation24_spill]] %s5640_s29  ;;  %p5791_p3 = por %p6941_p1, %p57_p0 }
  0x19   : > { %6973 = sst [smem:[#allocation25_spill]] %s5782_s7  ;;  %p179_p4 = scmp.ne.s32.totalorder %s5604_s20, %s5600_s19 }
  0x1a   : > { %s6974_s10 = scalar_select %p5791_p3, 1, 0 }
  0x1b   : > { %p5799_p5 = por %p91_p2, %p6941_p1  ;;  %p180_p6 = scmp.eq.s32.totalorder %s5782_s7, 15 }
  0x1c   : > { %p185_p7 = scmp.ne.s32.totalorder %s5600_s19, %s5596_s18  ;;  %p186_p8 = scmp.eq.s32.totalorder %s4214_s8, 15 }
  0x1d   : > { %s6975_s11 = scalar_select %p5799_p5, 1, 0 }
  0x1e   : > { %p5806_p9 = por %p180_p6, %p179_p4  ;;  %p4215_p10 = scmp.ge.s32.totalorder %s5648_s6, 1 }
  0x1f   : > { %6976 = sst [smem:[#allocation26_spill]] %s6975_s11  ;;  %p5811_p11 = por %p186_p8, %p185_p7 }
  0x20   : > { %s6977_s12 = scalar_select %p5806_p9, 1, 0 }
  0x21   : > { %s6979_s13 = scalar_select %p5811_p11, 1, 0 }
  0x22   : > { %6978 = sst [smem:[#allocation27_spill]] %s6977_s12  ;;  %p193_p12 = scmp.lt.s32.totalorder %s5648_s6, 17 }
  0x23   : > { %6980 = sst [smem:[#allocation28_spill]] %s6979_s13  ;;  %s5650_s15 = smov [#allocation9]  }
  0x24   : > { %p5816_p13 = pnand %p4215_p10, %p193_p12  ;;  %s205_s16 = sshll.u32 %s5650_s15, 4  ;;  %s5820_s16 = int_to_ptr.vmem [resolvable:$true] %s205_s16 }
  0x25   : > { %s5651_s21 = smov [#allocation10]   ;;  %s5652_s8 = smov [#allocation12]  }
  0x26   : > { %s6981_s14 = scalar_select %p5816_p13, 1, 0 }
  0x27   : > { %p4825_p0 = pneg %p5816_p13  ;;  %s219_s24 = sshll.u32 %s5651_s21, 4  ;;  %s5830_s24 = int_to_ptr.vmem [resolvable:$true] %s219_s24 }
  0x28   : > { %s5832_s9 = sshll.u32 %s5652_s8, 4  ;;  %s6983_s2 = sld [smem:[#allocation33_spill]]  ;;  %s231_s9 = int_to_ptr.vmem [resolvable:$true] %s5832_s9 }
  0x29   : > { %p5826_p2 = pnand %p4825_p0, %p6941_p1 }
  0x2b   : > { %p5842_p6 = pneg %p5826_p2 }
  0x2e   : > { %s5346_s15 = scalar_lea.hbm %s6983_s2, 1024 }
  0x2f   : > { %p5347_p4 = scmp.ne.s32.totalorder %s6983_s2, %s5346_s15  ;;  %p5353_p10 = scmp.lt.u32.totalorder %s5346_s15, %s6983_s2 }
  0x31   : > { %p5349_p7 = pnand %p5842_p6, %p5347_p4 }
  0x33   : > { %p5350_p8 = pneg %p5349_p7 }
  0x35   : > { %p5355_p12 = pnand %p5353_p10, %p5350_p8 }
  0x37   : > { %5358 = shalt.err (!%p5355_p12)
}
  0x38   : > { %s5359_s5 = scalar_lea.vmem %s5820_s16, 1024  ;;  %p5367_p9 = scmp.lt.s32.totalorder %s5820_s16, %s5820_s16 }
  0x39   : > { %p5360_p0 = scmp.ne.s32.totalorder %s5820_s16, %s5359_s5  ;;  %p5368_p5 = scmp.lt.s32.totalorder %s5359_s5, %s5359_s5 }
  0x3b   : > { %p5362_p1 = pnand %p5360_p0, %p5842_p6  ;;  %p5369_p4 = por %p5368_p5, %p5367_p9 }
  0x3d   : > { %p5363_p11 = pneg %p5362_p1 }
  0x3f   : > { %p5370_p7 = pnand %p5369_p4, %p5363_p11 }
  0x41   : > { %5373 = shalt.err (!%p5370_p7)
}
  0x42   : > { %s6952_s18 = smov 64   ;;  %s6954_s12 = smov 4  }
  0x43   : > { %4828 = dma.hbm_to_vmem [thread:$0]  (!%p5826_p2), %s6983_s2, 1024, %s5820_s16, [#allocation8], %s6952_s18, %s6952_s18, %s6954_s12  }
  0x44   : > { %s6985_s3 = sld [smem:[#allocation34_spill]] }
  0x4a   : > { %s5374_s5 = scalar_lea.hbm %s6985_s3, 16 }
  0x4b   : > { %p5375_p1 = scmp.ne.s32.totalorder %s6985_s3, %s5374_s5  ;;  %p5381_p11 = scmp.lt.u32.totalorder %s5374_s5, %s6985_s3 }
  0x4d   : > { %p5377_p5 = pnand %p5375_p1, %p5842_p6 }
  0x4f   : > { %p5378_p9 = pneg %p5377_p5 }
  0x51   : > { %p5383_p8 = pnand %p5381_p11, %p5378_p9 }
  0x53   : > { %5386 = shalt.err (!%p5383_p8)
}
  0x54   : > { %s5387_s16 = scalar_lea.vmem %s5830_s24, 16  ;;  %s5394_s19 = scalar_lea.vmem %s5830_s24, 32 }
  0x55   : > { %p5388_p10 = scmp.ne.s32.totalorder %s5830_s24, %s5387_s16  ;;  %p5395_p4 = scmp.lt.s32.totalorder %s5830_s24, %s5830_s24 }
  0x56   : > { %p5396_p7 = scmp.lt.s32.totalorder %s5394_s19, %s5387_s16 }
  0x57   : > { %p5390_p12 = pnand %p5388_p10, %p5842_p6 }
  0x58   : > { %p5397_p1 = por %p5396_p7, %p5395_p4 }
  0x59   : > { %p5391_p0 = pneg %p5390_p12 }
  0x5b   : > { %p5398_p5 = pnand %p5397_p1, %p5391_p0 }
  0x5d   : > { %5401 = shalt.err (!%p5398_p5)
}
  0x5e   : > { %4831 = dma.hbm_to_vmem [thread:$0]  (!%p5826_p2), %s6985_s3, 16, %s5830_s24, [#allocation11]  }
  0x5f   : > { %s6986_s4 = sld [smem:[#allocation35_spill]] }
  0x65   : > { %s5402_s15 = scalar_lea.hbm %s6986_s4, 16 }
  0x66   : > { %p5403_p9 = scmp.ne.s32.totalorder %s6986_s4, %s5402_s15  ;;  %p5409_p10 = scmp.lt.u32.totalorder %s5402_s15, %s6986_s4 }
  0x68   : > { %p5405_p11 = pnand %p5403_p9, %p5842_p6 }
  0x6a   : > { %p5406_p8 = pneg %p5405_p11 }
  0x6c   : > { %p5411_p12 = pnand %p5409_p10, %p5406_p8 }
  0x6e   : > { %5414 = shalt.err (!%p5411_p12)
}
  0x6f   : > { %s5415_s19 = scalar_lea.vmem %s231_s9, 16  ;;  %s5422_s24 = scalar_lea.vmem %s231_s9, 32 }
  0x70   : > { %p5416_p0 = scmp.ne.s32.totalorder %s231_s9, %s5415_s19  ;;  %p5423_p1 = scmp.lt.s32.totalorder %s231_s9, %s231_s9 }
  0x71   : > { %p5424_p5 = scmp.lt.s32.totalorder %s5422_s24, %s5415_s19 }
  0x72   : > { %p5418_p4 = pnand %p5416_p0, %p5842_p6 }
  0x73   : > { %p5425_p3 = por %p5424_p5, %p5423_p1 }
  0x74   : > { %p5419_p7 = pneg %p5418_p4 }
  0x76   : > { %p5426_p13 = pnand %p5425_p3, %p5419_p7 }
  0x78   : > { %5429 = shalt.err (!%p5426_p13)
}
  0x79   : > { %4834 = dma.hbm_to_vmem [thread:$0]  (!%p5826_p2), %s6986_s4, 16, %s231_s9, [#allocation11]  }
  0x7a   : > { %s5910_s28 = sadd.s32 1, %s5640_s29  ;;  %s37_s17 = sadd.s32 1, %s5644_s30 }
  0x7b   : > { %p35_p3 = scmp.ge.s32.totalorder %s5910_s28, 8  ;;  %s44_s11 = sadd.s32 1, %s5628_s26 }
  0x7c   : > { %p51_p13 = scmp.ne.s32.totalorder %s5628_s26, %s5624_s25  ;;  %p6957_p6 = scmp.eq.s32.totalorder %s5648_s6, 0 }
  0x7d   : > { %s7052_s17 = smov (!%p35_p3, %s37_s17), %s5644_s30  ;;  %p6956_p9 = scmp.lt.s32.totalorder %s5648_s6, 16 }
  0x7e   : > { %p39_p11 = scmp.ge.s32.totalorder %s7052_s17, 2  ;;  %s241_s13 = sand.u32 1, %s5628_s26  }
  0x7f   : > { %p53_p8 = por %p6957_p6, %p51_p13  ;;  %s4220_s9 = sshll.u32 %s241_s13, 5 }
  0x80   : > { %s7054_s17 = smov (%p39_p11, %s7052_s17), 0  ;;  %s4746_s15 = sshll.u32 %s5644_s30, 12 }
  0x81   : > { %6987 = sst [smem:[#allocation29_spill]] %s7054_s17  ;;  %s5930_s21 = ssub.s32 %s5644_s30, %s7054_s17 }
  0x82   : > { %p42_p2 = scmp.eq.s32.totalorder %s5930_s21, 0  ;;  %s6988_s0 = sld [smem:[#allocation32_spill]] }
  0x83   : > { %s245_s19 = scalar_lea.vmem [#allocation4], %s4220_s9  ;;  %p5940_p10 = pnand %p6956_p9, %p53_p8 }
  0x84   : > { %s252_s24 = sshll.u32 %s245_s19, 4  ;;  %s5949_s8 = scalar_lea.sflag [#allocation5], %s241_s13  ;;  %s5947_s24 = int_to_ptr.vmem [resolvable:$true] %s252_s24 }
  0x85   : > { %s5945_s7 = scalar_select %p42_p2, %s5628_s26, %s44_s11  }
  0x86   : > { %p5432_p0 = pneg %p5940_p10 }
  0x87   : > { %6990 = sst [smem:[#allocation30_spill]] %s5945_s7 }
  0x88   : > { %s5936_s16 = scalar_lea.hbm %s6988_s0, %s4746_s15  ;;  %s5435_s19 = scalar_lea.hbm %s6988_s0, 8192 }
  0x89   : > { %s5430_s15 = scalar_lea.hbm %s5936_s16, 512  ;;  %p5436_p1 = scmp.lt.u32.totalorder %s5936_s16, %s6988_s0 }
  0x8a   : > { %p5431_p12 = scmp.ne.s32.totalorder %s5936_s16, %s5430_s15  ;;  %p5437_p5 = scmp.lt.u32.totalorder %s5435_s19, %s5430_s15 }
  0x8b   : > { %p5439_p11 = scmp.lt.u32.totalorder %s5430_s15, %s5936_s16 }
  0x8c   : > { %p5433_p4 = pnand %p5432_p0, %p5431_p12  ;;  %p5438_p13 = por %p5437_p5, %p5436_p1 }
  0x8e   : > { %p5434_p7 = pneg %p5433_p4  ;;  %p5440_p8 = por %p5439_p11, %p5438_p13 }
  0x90   : > { %p5441_p2 = pnand %p5440_p8, %p5434_p7 }
  0x92   : > { %5444 = shalt.err (!%p5441_p2)
}
  0x93   : > { %s5445_s11 = scalar_lea.vmem %s5947_s24, 512  ;;  %s5655_s13 = smov [#allocation4]  }
  0x94   : > { %p5446_p12 = scmp.ne.s32.totalorder %s5947_s24, %s5445_s11  ;;  %s5450_s9 = sshll.u32 %s5655_s13, 4  ;;  %s5451_s9 = int_to_ptr.vmem [resolvable:$false] %s5450_s9 }
  0x95   : > { %s5452_s18 = scalar_lea.vmem %s5451_s9, 1024  ;;  %p5453_p6 = scmp.lt.s32.totalorder %s5947_s24, %s5451_s9 }
  0x96   : > { %p5448_p4 = pnand %p5446_p12, %p5432_p0  ;;  %p5454_p1 = scmp.lt.s32.totalorder %s5452_s18, %s5445_s11 }
  0x98   : > { %p5449_p9 = pneg %p5448_p4  ;;  %p5455_p5 = por %p5454_p1, %p5453_p6 }
  0x9a   : > { %p5456_p13 = pnand %p5455_p5, %p5449_p9 }
  0x9c   : > { %5459 = shalt.err (!%p5456_p13)
}
  0x9d   : > { %s6991_s12 = smov 4   ;;  %s6992_s15 = smov 64  }
  0x9e   : > { %4838 = dma.hbm_to_vmem [thread:$0]  (!%p5940_p10), %s5936_s16, 512, %s5947_s24, %s5949_s8, %s6992_s15, %s6992_s15, %s6991_s12  }
  0x9f   : > { %p68_p6 = scmp.lt.s32.totalorder %s5910_s28, 7  ;;  %s262_s27 = sand.u32 1, %s5648_s6  }
  0xa0   : > { %s5985_s5 = scalar_select %p35_p3, 0, %s5910_s28  }
  0xa1   : > { %s7056_s28 = smov (!%p68_p6, %s5910_s28), 7  ;;  %s78_s11 = sadd.s32 1, %s5616_s23 }
  0xa2   : > { %6993 = sst [smem:[#allocation31_spill]] %s5985_s5  ;;  %s70_s19 = sadd.s32 1, %s5985_s5 }
  0xa3   : > { %p71_p9 = scmp.lt.s32.totalorder %s70_s19, 7  ;;  %p85_p0 = scmp.ne.s32.totalorder %s5616_s23, %s5612_s22 }
  0xa4   : > { %s165_s13 = ssub.s32 %s5640_s29, %s5985_s5  ;;  %p6994_p10 = scmp.eq.s32.totalorder %s5648_s6, 0 }
  0xa5   : > { %s7058_s19 = smov (!%p71_p9, %s70_s19), 7  ;;  %s166_s24 = sor.u32 %s165_s13, %s5930_s21 }
  0xa6   : > { %p5996_p7 = por %p85_p0, %p6994_p10  ;;  %s74_s8 = ssub.s32 %s7056_s28, %s7058_s19 }
  0xa7   : > { %p167_p3 = scmp.eq.s32.totalorder %s166_s24, 0  ;;  %s75_s9 = sor.u32 %s74_s8, %s5930_s21 }
  0xa8   : > { %s264_s18 = sand.u32 1, %s5616_s23   ;;  %p76_p11 = scmp.eq.s32.totalorder %s75_s9, 0 }
  0xa9   : > { %s4223_s0 = sshll.u32 %s264_s18, 5  ;;  %s6996_s2 = sadd.s32 1, %s5604_s20 }
  0xaa   : > { %s6006_s3 = scalar_select %p167_p3, %s5604_s20, %s6996_s2  }
  0xab   : > { %s6009_s4 = scalar_select %p76_p11, %s5616_s23, %s78_s11  }
  0xac   : > { %s4224_s17 = sshll.u32 %s7056_s28, 3  ;;  %s4225_s5 = sshll.u32 %s5644_s30, 6 }
  0xad   : > { %s266_s29 = scalar_lea.vmem [#allocation7], %s4223_s0  ;;  %s275_s26 = sadd.s32 %s4225_s5, %s4224_s17 }
  0xae   : > { %s278_s7 = sshll.u32 %s266_s29, 4  ;;  %s4226_s13 = sshll.u32 %s275_s26, 6  ;;  %s6012_s7 = int_to_ptr.vmem [resolvable:$true] %s278_s7 }
  0xaf   : > { %p6997_p8 = scmp.lt.s32.totalorder %s5648_s6, 16  ;;  %s6025_s2 = scalar_lea.hbm %s6931_s1, %s4226_s13 }
  0xb0   : > { %s6027_s0 = scalar_lea.sflag [#allocation8], %s262_s27  ;;  %s5460_s26 = scalar_lea.hbm %s6025_s2, 512 }
  0xb1   : > { %p6018_p2 = pnand %p6997_p8, %p5996_p7  ;;  %p5461_p12 = scmp.ne.s32.totalorder %s6025_s2, %s5460_s26 }
  0xb2   : > { %s5465_s17 = scalar_lea.hbm %s6931_s1, 8192  ;;  %p5466_p13 = scmp.lt.u32.totalorder %s6025_s2, %s6931_s1 }
  0xb3   : > { %p5462_p4 = pneg %p6018_p2  ;;  %p5467_p6 = scmp.lt.u32.totalorder %s5465_s17, %s5460_s26 }
  0xb4   : > { %p5469_p0 = scmp.lt.u32.totalorder %s5460_s26, %s6025_s2 }
  0xb5   : > { %p5463_p1 = pnand %p5462_p4, %p5461_p12  ;;  %p5468_p9 = por %p5467_p6, %p5466_p13 }
  0xb7   : > { %p5464_p5 = pneg %p5463_p1  ;;  %p5470_p10 = por %p5469_p0, %p5468_p9 }
  0xb9   : > { %p5471_p7 = pnand %p5470_p10, %p5464_p5 }
  0xbb   : > { %5474 = shalt.err (!%p5471_p7)
}
  0xbc   : > { %s5475_s27 = scalar_lea.vmem %s6012_s7, 512  ;;  %s5656_s16 = smov [#allocation7]  }
  0xbd   : > { %p5476_p3 = scmp.ne.s32.totalorder %s6012_s7, %s5475_s27  ;;  %s5480_s8 = sshll.u32 %s5656_s16, 4  ;;  %s5481_s8 = int_to_ptr.vmem [resolvable:$false] %s5480_s8 }
  0xbe   : > { %s5482_s9 = scalar_lea.vmem %s5481_s8, 1024  ;;  %p5483_p12 = scmp.lt.s32.totalorder %s6012_s7, %s5481_s8 }
  0xbf   : > { %p5478_p11 = pnand %p5476_p3, %p5462_p4  ;;  %p5484_p1 = scmp.lt.s32.totalorder %s5482_s9, %s5475_s27 }
  0xc1   : > { %p5479_p8 = pneg %p5478_p11  ;;  %p5485_p13 = por %p5484_p1, %p5483_p12 }
  0xc3   : > { %p5486_p6 = pnand %p5485_p13, %p5479_p8 }
  0xc5   : > { %5489 = shalt.err (!%p5486_p6)
}
  0xc6   : > { %4841 = dma.hbm_to_vmem [thread:$0]  (!%p6018_p2), %s6025_s2, 512, %s6012_s7, %s6027_s0, %s6992_s15, %s6992_s15, %s6991_s12  }
  0xc7   : > { %p6999_p4 = scmp.ne.s32.totalorder %s6981_s14, 0 }
  0xc8   : > { %s292_s18 = sand.u32 (!%p6999_p4), 1, %s5624_s25   ;;  %p7000_p5 = scmp.ne.s32.totalorder (!%p6999_p4), %s6974_s10, 0 }
  0xc9   : > { %290 = sbr.rel (%p6999_p4) target bundleno = 997 (0x3e5), region = 40  ;;  %s4228_s13 = sshll.u32 (!%p6999_p4), %s292_s18, 5 }
  0xca   : > { %s293_s19 = scalar_lea.sflag (!%p6999_p4), [#allocation5], %s292_s18  ;;  %s6061_s24 = scalar_lea.vmem (!%p6999_p4), [#allocation4], %s4228_s13 }
  0xd0   : > { %5575 = dma.done.wait (%p7000_p5), %s293_s19, 512  }
  0xd1   : > { %5577 = vsyncadd (%p7000_p5), %s293_s19, 4294966784  ;;  %s7001_s21 = sld [smem:[#allocation25_spill]]  ;;  %s7002_s26 = sld [smem:[#allocation26_spill]] }
  0xd2   : > { %s303_s7 = sand.u32 1, %s5612_s22  }
  0xd3   : > { %s4229_s12 = sshll.u32 %s303_s7, 5 }
  0xd4   : > { %s6069_s15 = scalar_lea.vmem [#allocation7], %s4229_s12 }
  0xd7   : > { %s301_s29 = sand.u32 1, %s7001_s21   ;;  %p7003_p2 = scmp.ne.s32.totalorder %s7002_s26, 0 }
  0xd8   : > { %s302_s14 = scalar_lea.sflag [#allocation8], %s301_s29 }
  0xd9   : > { %5579 = dma.done.wait (%p7003_p2), %s302_s14, 512  }
  0xda   : > { %5581 = vsyncadd (%p7003_p2), %s302_s14, 4294966784  ;;  %p7004_p9 = scmp.eq.s32.totalorder %s7001_s21, 0 }
  0xdc   : > { %5583 = dma.done.wait (%p7004_p9), [#allocation8], 1024   ;;  %p7005_p0 = pmov %p7004_p9 }
  0xde   : > { %5585 = vsyncadd (%p7005_p0), [#allocation8], 4294966272  ;;  %p7006_p10 = pmov %p7005_p0 }
  0xdf   : > { %p7007_p7 = pmov %p7005_p0 }
  0xe0   : > { %5587 = dma.done.wait (%p7006_p10), [#allocation11], 32  }
  0xe1   : > { %5589 = vsyncadd (%p7007_p7), [#allocation11], 4294967264  ;;  %s7008_s10 = sld [smem:[#allocation20_spill]]  ;;  %s7009_s17 = sld [smem:[#allocation22_spill]] }
  0xe7   : > { %s346_s2 = sand.u32 1, %s7008_s10   ;;  %p4234_p3 = scmp.ne.s32.totalorder %s7009_s17, 0 }
  0xe8   : > { %s4233_s0 = sshll.u32 %s346_s2, 5  ;;  %vm357_vm0 = vcmask (!%p4234_p3), 31744   ;;  %v4998_v0 = vld [vmem:[%s6061_s24] ss:$0 sps:$4 sm:$0xff] (!%p4234_p3)   ;;  %v5657_v1 = vmov (!%p4234_p3), 0   ;;  %vm485_vm1 = vcmask (!%p4234_p3), 28672  }
  0xe9   : > { %s6086_s28 = scalar_lea.vmem [#allocation13], %s4233_s0  ;;  %356 = sbr.rel (%p4234_p3) target bundleno = 256 (0x100), region = 64  ;;  %369 = vst.msk [vmem:[#allocation2 + $0x58] sm:$0xff] (!%p4234_p3), %vm357_vm0, %v5657_v1  ;;  %358 = vst.msk [vmem:[#allocation2] sm:$0xff] (!%p4234_p3), %vm357_vm0, %v5657_v1  ;;  %vm486_vm2 = vsmask.f32 (!%p4234_p3), 4354 }
  0xea   : > { %359 = vst.msk [vmem:[#allocation2 + $0x8] sm:$0xff] (!%p4234_p3), %vm357_vm0, %v5657_v1  ;;  %360 = vst.msk [vmem:[#allocation2 + $0x10] sm:$0xff] (!%p4234_p3), %vm357_vm0, %v5657_v1  ;;  %vm512_vm3 = vcmask (!%p4234_p3), 1048416   ;;  %v421_v2 = vshrl.u32 (!%p4234_p3), %v4998_v0, 16  ;;  %v424_v3 = vshll.u32 (!%p4234_p3), %v4998_v0, 16 }
  0xeb   : > { %361 = vst.msk [vmem:[#allocation2 + $0x18] sm:$0xff] (!%p4234_p3), %vm357_vm0, %v5657_v1  ;;  %362 = vst.msk [vmem:[#allocation2 + $0x20] sm:$0xff] (!%p4234_p3), %vm357_vm0, %v5657_v1  ;;  %v4999_v4 = vld [vmem:[%s6061_s24 + $0x4] ss:$0 sps:$4 sm:$0xff] (!%p4234_p3)   ;;  %v5000_v5 = vld [vmem:[%s6061_s24 + $0x8] ss:$0 sps:$4 sm:$0xff] (!%p4234_p3)  }
  0xec   : > { %363 = vst.msk [vmem:[#allocation2 + $0x28] sm:$0xff] (!%p4234_p3), %vm357_vm0, %v5657_v1  ;;  %364 = vst.msk [vmem:[#allocation2 + $0x30] sm:$0xff] (!%p4234_p3), %vm357_vm0, %v5657_v1  ;;  %v5001_v6 = vld [vmem:[%s6061_s24 + $0xc] ss:$0 sps:$4 sm:$0xff] (!%p4234_p3)   ;;  %v423_v7 = vrot.slane (!%p4234_p3), %v421_v2, 7  ;;  %v428_v8 = vshrl.u32 (!%p4234_p3), %v4999_v4, 16 }
  0xed   : > { %365 = vst.msk [vmem:[#allocation2 + $0x38] sm:$0xff] (!%p4234_p3), %vm357_vm0, %v5657_v1  ;;  %366 = vst.msk [vmem:[#allocation2 + $0x40] sm:$0xff] (!%p4234_p3), %vm357_vm0, %v5657_v1  ;;  %v431_v9 = vshll.u32 (!%p4234_p3), %v4999_v4, 16  ;;  %v435_v10 = vshrl.u32 (!%p4234_p3), %v5000_v5, 16  ;;  %v438_v11 = vshll.u32 (!%p4234_p3), %v5000_v5, 16  ;;  %v442_v12 = vshrl.u32 (!%p4234_p3), %v5001_v6, 16 }
  0xee   : > { %367 = vst.msk [vmem:[#allocation2 + $0x48] sm:$0xff] (!%p4234_p3), %vm357_vm0, %v5657_v1  ;;  %368 = vst.msk [vmem:[#allocation2 + $0x50] sm:$0xff] (!%p4234_p3), %vm357_vm0, %v5657_v1  ;;  %v445_v13 = vshll.u32 (!%p4234_p3), %v5001_v6, 16  ;;  %v5002_v14 = vld [vmem:[%s6061_s24 + $0x10] ss:$0 sps:$4 sm:$0xff] (!%p4234_p3)   ;;  %v426_v15 = vor.u32 (!%p4234_p3), %v424_v3, %v423_v7  ;;  %v430_v17 = vrot.slane (!%p4234_p3), %v428_v8, 7 }
  0xef   : > { %370 = vst.msk [vmem:[#allocation2 + $0x60] sm:$0xff] (!%p4234_p3), %vm357_vm0, %v5657_v1  ;;  %371 = vst.msk [vmem:[#allocation2 + $0x68] sm:$0xff] (!%p4234_p3), %vm357_vm0, %v5657_v1  ;;  %v5003_v18 = vld [vmem:[%s6061_s24 + $0x14] ss:$0 sps:$4 sm:$0xff] (!%p4234_p3)   ;;  %v437_v19 = vrot.slane (!%p4234_p3), %v435_v10, 7  ;;  %v444_v20 = vrot.slane (!%p4234_p3), %v442_v12, 7 }
  0xf0   : > { %372 = vst.msk [vmem:[#allocation2 + $0x70] sm:$0xff] %vm357_vm0, %v5657_v1  ;;  %373 = vst.msk [vmem:[#allocation2 + $0x78] sm:$0xff] %vm357_vm0, %v5657_v1  ;;  %v449_v21 = vshrl.u32 %v5002_v14, 16  ;;  %v452_v22 = vshll.u32 %v5002_v14, 16  ;;  %v488_v23 = vld [vmem:[#allocation2 + $0x58] sm:$0x1f]  ;;  %v433_v24 = vor.u32 %v431_v9, %v430_v17 }
  0xf1   : > { %374 = vst.msk [vmem:[#allocation2 + $0x80] sm:$0xff] %vm357_vm0, %v5657_v1  ;;  %375 = vst.msk [vmem:[#allocation2 + $0x88] sm:$0xff] %vm357_vm0, %v5657_v1  ;;  %v440_v28 = vor.u32 %v438_v11, %v437_v19  ;;  %v447_v29 = vor.u32 %v445_v13, %v444_v20  ;;  %v456_v34 = vshrl.u32 %v5003_v18, 16  ;;  %v459_v35 = vshll.u32 %v5003_v18, 16  ;;  %v5004_v36 = vld [vmem:[%s6061_s24 + $0x18] ss:$0 sps:$4 sm:$0xff]  }
  0xf2   : > { %376 = vst.msk [vmem:[#allocation2 + $0x90] sm:$0xff] %vm357_vm0, %v5657_v1  ;;  %377 = vst.msk [vmem:[#allocation2 + $0x98] sm:$0xff] %vm357_vm0, %v5657_v1  ;;  %v451_v31 = vrot.slane %v449_v21, 7  ;;  %v5005_v40 = vld [vmem:[%s6061_s24 + $0x1c] ss:$0 sps:$4 sm:$0xff]   ;;  %v463_v42 = vshrl.u32 %v5004_v36, 16 }
  0xf3   : > { %378 = vst.msk [vmem:[#allocation2 + $0xa0] sm:$0xff] %vm357_vm0, %v5657_v1  ;;  %379 = vst.msk [vmem:[#allocation2 + $0xa8] sm:$0xff] %vm357_vm0, %v5657_v1  ;;  %v458_v41 = vrot.slane %v456_v34, 7  ;;  %v466_v43 = vshll.u32 %v5004_v36, 16  ;;  %v470_v46 = vshrl.u32 %v5005_v40, 16  ;;  %v473_v47 = vshll.u32 %v5005_v40, 16 }
  0xf4   : > { %380 = vst.msk [vmem:[#allocation2 + $0xb0] sm:$0xff] %vm357_vm0, %v5657_v1  ;;  %381 = vst.msk [vmem:[#allocation2 + $0xb8] sm:$0xff] %vm357_vm0, %v5657_v1  ;;  %v454_v39 = vor.u32 %v452_v22, %v451_v31  ;;  %v465_v49 = vrot.slane %v463_v42, 7 }
  0xf5   : > { %382 = vst.msk [vmem:[#allocation2 + $0xc0] sm:$0xff] %vm357_vm0, %v5657_v1  ;;  %383 = vst.msk [vmem:[#allocation2 + $0xc8] sm:$0xff] %vm357_vm0, %v5657_v1  ;;  %v461_v48 = vor.u32 %v459_v35, %v458_v41  ;;  %v472_v51 = vrot.slane %v470_v46, 7 }
  0xf6   : > { %384 = vst.msk [vmem:[#allocation2 + $0xd0] sm:$0xff] %vm357_vm0, %v5657_v1  ;;  %385 = vst.msk [vmem:[#allocation2 + $0xd8] sm:$0xff] %vm357_vm0, %v5657_v1  ;;  %v491_v25 = vld [vmem:[#allocation2 + $0x60] sm:$0x1f]  ;;  %v494_v26 = vld [vmem:[#allocation2 + $0x68] sm:$0x1f]  ;;  %v468_v53 = vor.u32 %v466_v43, %v465_v49 }
  0xf7   : > { %386 = vst.msk [vmem:[#allocation2 + $0xe0] sm:$0xff] %vm357_vm0, %v5657_v1  ;;  %387 = vst.msk [vmem:[#allocation2 + $0xe8] sm:$0xff] %vm357_vm0, %v5657_v1  ;;  %v497_v30 = vld [vmem:[#allocation2 + $0x70] sm:$0x1f]  ;;  %v500_v33 = vld [vmem:[#allocation2 + $0x78] sm:$0x1f]  ;;  %v475_v55 = vor.u32 %v473_v47, %v472_v51 }
  0xf8   : > { %513 = vst.msk [vmem:[#allocation3] sm:$0xff] %vm512_vm3, %v5657_v1  ;;  %514 = vst.msk [vmem:[#allocation3 + $0x8] sm:$0xff] %vm512_vm3, %v5657_v1  ;;  %v503_v45 = vld [vmem:[#allocation2 + $0x80] sm:$0x1f]  ;;  %v506_v50 = vld [vmem:[#allocation2 + $0x88] sm:$0x1f] }
  0xf9   : > { %515 = vst.msk [vmem:[#allocation3 + $0x10] sm:$0xff] %vm512_vm3, %v5657_v1  ;;  %516 = vst.msk [vmem:[#allocation3 + $0x18] sm:$0xff] %vm512_vm3, %v5657_v1  ;;  %v509_v54 = vld [vmem:[#allocation2 + $0x90] sm:$0x1f] }
  0xfa   : > { %vm6126_vm4 = vmand %vm485_vm1, %vm486_vm2 }
  0xfb   : > { %v489_v27 = vsel %vm6126_vm4, %v426_v15, %v488_v23  ;;  %v492_v32 = vsel %vm6126_vm4, %v433_v24, %v491_v25  ;;  %v495_v37 = vsel %vm6126_vm4, %v440_v28, %v494_v26  ;;  %v498_v38 = vsel %vm6126_vm4, %v447_v29, %v497_v30 }
  0xfc   : > { %490 = vst [vmem:[#allocation2 + $0x58] sm:$0x1f] %v489_v27  ;;  %493 = vst [vmem:[#allocation2 + $0x60] sm:$0x1f] %v492_v32  ;;  %v501_v44 = vsel %vm6126_vm4, %v454_v39, %v500_v33  ;;  %v504_v52 = vsel %vm6126_vm4, %v461_v48, %v503_v45  ;;  %v507_v56 = vsel %vm6126_vm4, %v468_v53, %v506_v50 }
  0xfd   : > { %496 = vst [vmem:[#allocation2 + $0x68] sm:$0x1f] %v495_v37  ;;  %499 = vst [vmem:[#allocation2 + $0x70] sm:$0x1f] %v498_v38  ;;  %v510_v57 = vsel %vm6126_vm4, %v475_v55, %v509_v54 }
  0xfe   : > { %502 = vst [vmem:[#allocation2 + $0x78] sm:$0x1f] %v501_v44  ;;  %505 = vst [vmem:[#allocation2 + $0x80] sm:$0x1f] %v504_v52 }
  0xff   : > { %508 = vst [vmem:[#allocation2 + $0x88] sm:$0x1f] %v507_v56  ;;  %511 = vst [vmem:[#allocation2 + $0x90] sm:$0x1f] %v510_v57 }
 0x100 PF: > { %s7012_s5 = sld [smem:[#allocation22_spill]] }
 0x106   : > { %p4243_p11 = scmp.le.s32.totalorder %s7012_s5, 0 }
 0x107   : > { %v522_v58 = vld [vmem:[#allocation2 + $0x58] sm:$0x1f] (!%p4243_p11)  ;;  %vm531_vm5 = vcmask (!%p4243_p11), 28672   ;;  %vm532_vm6 = vsmask.f32 (!%p4243_p11), 4354 }
 0x108   : > { %520 = sbr.rel (%p4243_p11) target bundleno = 281 (0x119), region = 68  ;;  %vm6150_vm7 = vmand (!%p4243_p11), %vm531_vm5, %vm532_vm6  ;;  %v534_v60 = vld [vmem:[#allocation2 + $0x8] sm:$0x1f] (!%p4243_p11)  ;;  %v523_v61 = vld [vmem:[#allocation2 + $0x60] sm:$0x1f] (!%p4243_p11) }
 0x109   : > { %v535_v62 = vsel (!%p4243_p11), %vm6150_vm7, %v522_v58, %v534_v60  ;;  %v537_v63 = vld [vmem:[#allocation2 + $0x10] sm:$0x1f] (!%p4243_p11)  ;;  %v524_v0 = vld [vmem:[#allocation2 + $0x68] sm:$0x1f] (!%p4243_p11)  ;;  %v540_v1 = vld [vmem:[#allocation2 + $0x18] sm:$0x1f] (!%p4243_p11) }
 0x10a   : > { %536 = vst [vmem:[#allocation2 + $0x8] sm:$0x1f] (!%p4243_p11), %v535_v62  ;;  %v538_v2 = vsel (!%p4243_p11), %vm6150_vm7, %v523_v61, %v537_v63  ;;  %v541_v3 = vsel (!%p4243_p11), %vm6150_vm7, %v524_v0, %v540_v1  ;;  %v525_v4 = vld [vmem:[#allocation2 + $0x70] sm:$0x1f] (!%p4243_p11)  ;;  %v543_v5 = vld [vmem:[#allocation2 + $0x20] sm:$0x1f] (!%p4243_p11) }
 0x10b   : > { %v526_v6 = vld [vmem:[#allocation2 + $0x78] sm:$0x1f] (!%p4243_p11)  ;;  %539 = vst [vmem:[#allocation2 + $0x10] sm:$0x1f] (!%p4243_p11), %v538_v2  ;;  %542 = vst [vmem:[#allocation2 + $0x18] sm:$0x1f] (!%p4243_p11), %v541_v3  ;;  %v544_v7 = vsel (!%p4243_p11), %vm6150_vm7, %v525_v4, %v543_v5 }
 0x10c   : > { %v546_v8 = vld [vmem:[#allocation2 + $0x28] sm:$0x1f] (!%p4243_p11)  ;;  %v527_v9 = vld [vmem:[#allocation2 + $0x80] sm:$0x1f] (!%p4243_p11)  ;;  %v549_v10 = vld [vmem:[#allocation2 + $0x30] sm:$0x1f] (!%p4243_p11) }
 0x10d   : > { %545 = vst [vmem:[#allocation2 + $0x20] sm:$0x1f] (!%p4243_p11), %v544_v7  ;;  %v547_v11 = vsel (!%p4243_p11), %vm6150_vm7, %v526_v6, %v546_v8  ;;  %v550_v12 = vsel (!%p4243_p11), %vm6150_vm7, %v527_v9, %v549_v10  ;;  %v528_v13 = vld [vmem:[#allocation2 + $0x88] sm:$0x1f] (!%p4243_p11)  ;;  %v552_v14 = vld [vmem:[#allocation2 + $0x38] sm:$0x1f] (!%p4243_p11) }
 0x10e   : > { %v529_v15 = vld [vmem:[#allocation2 + $0x90] sm:$0x1f] (!%p4243_p11)  ;;  %548 = vst [vmem:[#allocation2 + $0x28] sm:$0x1f] (!%p4243_p11), %v547_v11  ;;  %551 = vst [vmem:[#allocation2 + $0x30] sm:$0x1f] (!%p4243_p11), %v550_v12  ;;  %v553_v16 = vsel (!%p4243_p11), %vm6150_vm7, %v528_v13, %v552_v14 }
 0x10f   : > { %v555_v17 = vld [vmem:[#allocation2 + $0x40] sm:$0x1f]  ;;  %v559_v18 = vld [vmem:[#allocation2 + $0xa8] sm:$0x1f]  ;;  %v567_v19 = vld [vmem:[#allocation2 + $0x58] sm:$0x1f] }
 0x110   : > { %554 = vst [vmem:[#allocation2 + $0x38] sm:$0x1f] %v553_v16  ;;  %v556_v20 = vsel %vm6150_vm7, %v529_v15, %v555_v17  ;;  %v568_v21 = vsel %vm6150_vm7, %v559_v18, %v567_v19  ;;  %v560_v22 = vld [vmem:[#allocation2 + $0xb0] sm:$0x1f]  ;;  %v570_v23 = vld [vmem:[#allocation2 + $0x60] sm:$0x1f] }
 0x111   : > { %v561_v24 = vld [vmem:[#allocation2 + $0xb8] sm:$0x1f]  ;;  %557 = vst [vmem:[#allocation2 + $0x40] sm:$0x1f] %v556_v20  ;;  %569 = vst [vmem:[#allocation2 + $0x58] sm:$0x1f] %v568_v21  ;;  %v571_v25 = vsel %vm6150_vm7, %v560_v22, %v570_v23 }
 0x112   : > { %v573_v26 = vld [vmem:[#allocation2 + $0x68] sm:$0x1f]  ;;  %v562_v27 = vld [vmem:[#allocation2 + $0xc0] sm:$0x1f]  ;;  %v576_v28 = vld [vmem:[#allocation2 + $0x70] sm:$0x1f] }
 0x113   : > { %572 = vst [vmem:[#allocation2 + $0x60] sm:$0x1f] %v571_v25  ;;  %v574_v29 = vsel %vm6150_vm7, %v561_v24, %v573_v26  ;;  %v577_v30 = vsel %vm6150_vm7, %v562_v27, %v576_v28  ;;  %v563_v31 = vld [vmem:[#allocation2 + $0xc8] sm:$0x1f]  ;;  %v579_v32 = vld [vmem:[#allocation2 + $0x78] sm:$0x1f] }
 0x114   : > { %v564_v33 = vld [vmem:[#allocation2 + $0xd0] sm:$0x1f]  ;;  %575 = vst [vmem:[#allocation2 + $0x68] sm:$0x1f] %v574_v29  ;;  %578 = vst [vmem:[#allocation2 + $0x70] sm:$0x1f] %v577_v30  ;;  %v580_v34 = vsel %vm6150_vm7, %v563_v31, %v579_v32 }
 0x115   : > { %v582_v35 = vld [vmem:[#allocation2 + $0x80] sm:$0x1f]  ;;  %v565_v36 = vld [vmem:[#allocation2 + $0xd8] sm:$0x1f]  ;;  %v585_v37 = vld [vmem:[#allocation2 + $0x88] sm:$0x1f] }
 0x116   : > { %581 = vst [vmem:[#allocation2 + $0x78] sm:$0x1f] %v580_v34  ;;  %v583_v38 = vsel %vm6150_vm7, %v564_v33, %v582_v35  ;;  %v586_v39 = vsel %vm6150_vm7, %v565_v36, %v585_v37  ;;  %v566_v40 = vld [vmem:[#allocation2 + $0xe0] sm:$0x1f]  ;;  %v588_v41 = vld [vmem:[#allocation2 + $0x90] sm:$0x1f] }
 0x117   : > { %584 = vst [vmem:[#allocation2 + $0x80] sm:$0x1f] %v583_v38  ;;  %587 = vst [vmem:[#allocation2 + $0x88] sm:$0x1f] %v586_v39  ;;  %v589_v42 = vsel %vm6150_vm7, %v566_v40, %v588_v41 }
 0x118   : > { %590 = vst [vmem:[#allocation2 + $0x90] sm:$0x1f] %v589_v42 }
 0x119 PF: > { %s7015_s11 = sld [smem:[#allocation22_spill]] }
 0x11f   : > { %p4244_p8 = scmp.ge.s32.totalorder %s7015_s11, 7 }
 0x120   : > { %v5006_v43 = vld [vmem:[%s6069_s15] ss:$0 sps:$4 sm:$0xff] (!%p4244_p8)   ;;  %vm692_vm8 = vcmask (!%p4244_p8), 28672   ;;  %vm693_vm9 = vsmask.f32 (!%p4244_p8), 4354 }
 0x121   : > { %594 = sbr.rel (%p4244_p8) target bundleno = 306 (0x132), region = 72  ;;  %v628_v44 = vshrl.u32 (!%p4244_p8), %v5006_v43, 16  ;;  %v631_v45 = vshll.u32 (!%p4244_p8), %v5006_v43, 16  ;;  %v5007_v46 = vld [vmem:[%s6069_s15 + $0x4] ss:$0 sps:$4 sm:$0xff] (!%p4244_p8)   ;;  %vm6190_vm10 = vmand (!%p4244_p8), %vm692_vm8, %vm693_vm9 }
 0x122   : > { %v695_v47 = vld [vmem:[#allocation2 + $0xa8] sm:$0x1f] (!%p4244_p8)  ;;  %v5008_v48 = vld [vmem:[%s6069_s15 + $0x8] ss:$0 sps:$4 sm:$0xff] (!%p4244_p8)   ;;  %v635_v50 = vshrl.u32 (!%p4244_p8), %v5007_v46, 16  ;;  %v638_v51 = vshll.u32 (!%p4244_p8), %v5007_v46, 16 }
 0x123   : > { %v630_v49 = vrot.slane (!%p4244_p8), %v628_v44, 7  ;;  %v698_v53 = vld [vmem:[#allocation2 + $0xb0] sm:$0x1f] (!%p4244_p8)  ;;  %v642_v54 = vshrl.u32 (!%p4244_p8), %v5008_v48, 16  ;;  %v645_v55 = vshll.u32 (!%p4244_p8), %v5008_v48, 16 }
 0x124   : > { %v5009_v56 = vld [vmem:[%s6069_s15 + $0xc] ss:$0 sps:$4 sm:$0xff] (!%p4244_p8)   ;;  %v637_v58 = vrot.slane (!%p4244_p8), %v635_v50, 7  ;;  %v5010_v59 = vld [vmem:[%s6069_s15 + $0x10] ss:$0 sps:$4 sm:$0xff] (!%p4244_p8)  }
 0x125   : > { %v633_v57 = vor.u32 (!%p4244_p8), %v631_v45, %v630_v49  ;;  %v644_v60 = vrot.slane (!%p4244_p8), %v642_v54, 7  ;;  %v701_v61 = vld [vmem:[#allocation2 + $0xb8] sm:$0x1f] (!%p4244_p8)  ;;  %v649_v62 = vshrl.u32 (!%p4244_p8), %v5009_v56, 16  ;;  %v652_v63 = vshll.u32 (!%p4244_p8), %v5009_v56, 16 }
 0x126   : > { %v640_v1 = vor.u32 (!%p4244_p8), %v638_v51, %v637_v58  ;;  %v656_v2 = vshrl.u32 (!%p4244_p8), %v5010_v59, 16  ;;  %v659_v3 = vshll.u32 (!%p4244_p8), %v5010_v59, 16  ;;  %v5011_v4 = vld [vmem:[%s6069_s15 + $0x14] ss:$0 sps:$4 sm:$0xff] (!%p4244_p8)   ;;  %v5012_v12 = vld [vmem:[%s6069_s15 + $0x18] ss:$0 sps:$4 sm:$0xff] (!%p4244_p8)  }
 0x127   : > { %v696_v0 = vsel (!%p4244_p8), %vm6190_vm10, %v633_v57, %v695_v47  ;;  %v647_v5 = vor.u32 (!%p4244_p8), %v645_v55, %v644_v60  ;;  %v651_v6 = vrot.slane (!%p4244_p8), %v649_v62, 7  ;;  %v704_v7 = vld [vmem:[#allocation2 + $0xc0] sm:$0x1f] (!%p4244_p8)  ;;  %v663_v10 = vshrl.u32 (!%p4244_p8), %v5011_v4, 16  ;;  %v707_v15 = vld [vmem:[#allocation2 + $0xc8] sm:$0x1f] (!%p4244_p8) }
 0x128   : > { %697 = vst [vmem:[#allocation2 + $0xa8] sm:$0x1f] %v696_v0  ;;  %v699_v8 = vsel %vm6190_vm10, %v640_v1, %v698_v53  ;;  %v658_v9 = vrot.slane %v656_v2, 7  ;;  %v666_v11 = vshll.u32 %v5011_v4, 16  ;;  %v5013_v16 = vld [vmem:[%s6069_s15 + $0x1c] ss:$0 sps:$4 sm:$0xff]  }
 0x129   : > { %700 = vst [vmem:[#allocation2 + $0xb0] sm:$0x1f] %v699_v8  ;;  %v702_v13 = vsel %vm6190_vm10, %v647_v5, %v701_v61  ;;  %v654_v14 = vor.u32 %v652_v63, %v651_v6  ;;  %v665_v18 = vrot.slane %v663_v10, 7  ;;  %v670_v19 = vshrl.u32 %v5012_v12, 16  ;;  %v710_v22 = vld [vmem:[#allocation2 + $0xd0] sm:$0x1f] }
 0x12a   : > { %703 = vst [vmem:[#allocation2 + $0xb8] sm:$0x1f] %v702_v13  ;;  %v661_v17 = vor.u32 %v659_v3, %v658_v9  ;;  %v673_v20 = vshll.u32 %v5012_v12, 16  ;;  %v677_v23 = vshrl.u32 %v5013_v16, 16  ;;  %v680_v24 = vshll.u32 %v5013_v16, 16 }
 0x12b   : > { %v705_v21 = vsel %vm6190_vm10, %v654_v14, %v704_v7  ;;  %v668_v26 = vor.u32 %v666_v11, %v665_v18  ;;  %v672_v27 = vrot.slane %v670_v19, 7  ;;  %v713_v28 = vld [vmem:[#allocation2 + $0xd8] sm:$0x1f]  ;;  %v716_v32 = vld [vmem:[#allocation2 + $0xe0] sm:$0x1f] }
 0x12c   : > { %706 = vst [vmem:[#allocation2 + $0xc0] sm:$0x1f] %v705_v21  ;;  %v708_v25 = vsel %vm6190_vm10, %v661_v17, %v707_v15  ;;  %v679_v29 = vrot.slane %v677_v23, 7 }
 0x12d   : > { %709 = vst [vmem:[#allocation2 + $0xc8] sm:$0x1f] %v708_v25  ;;  %v711_v30 = vsel %vm6190_vm10, %v668_v26, %v710_v22  ;;  %v675_v31 = vor.u32 %v673_v20, %v672_v27 }
 0x12e   : > { %712 = vst [vmem:[#allocation2 + $0xd0] sm:$0x1f] %v711_v30  ;;  %v682_v33 = vor.u32 %v680_v24, %v679_v29 }
 0x12f   : > { %v714_v34 = vsel %vm6190_vm10, %v675_v31, %v713_v28 }
 0x130   : > { %715 = vst [vmem:[#allocation2 + $0xd8] sm:$0x1f] %v714_v34  ;;  %v717_v35 = vsel %vm6190_vm10, %v682_v33, %v716_v32 }
 0x131   : > { %718 = vst [vmem:[#allocation2 + $0xe0] sm:$0x1f] %v717_v35 }
 0x132 PF: > { %s7018_s27 = sld [smem:[#allocation22_spill]] }
 0x138   : > { %p4253_p12 = scmp.ne.s32.totalorder %s7018_s27, 7 }
 0x139   : > { %vm724_vm11 = vcmask (!%p4253_p12), 28672   ;;  %vm725_vm12 = vsmask.f32 (!%p4253_p12), 4354  ;;  %v727_v36 = vld [vmem:[#allocation2 + $0xa8] sm:$0x1f] (!%p4253_p12) }
 0x13a   : > { %722 = sbr.rel (%p4253_p12) target bundleno = 322 (0x142), region = 76  ;;  %vm6216_vm13 = vmand (!%p4253_p12), %vm724_vm11, %vm725_vm12  ;;  %v730_v38 = vld [vmem:[#allocation2 + $0xb0] sm:$0x1f] (!%p4253_p12)  ;;  %v733_v39 = vld [vmem:[#allocation2 + $0xb8] sm:$0x1f] (!%p4253_p12) }
 0x13b   : > { %v728_v40 = vsel (!%p4253_p12), %vm6216_vm13, 0, %v727_v36  ;;  %v731_v41 = vsel (!%p4253_p12), %vm6216_vm13, 0, %v730_v38  ;;  %v734_v42 = vsel (!%p4253_p12), %vm6216_vm13, 0, %v733_v39  ;;  %v736_v43 = vld [vmem:[#allocation2 + $0xc0] sm:$0x1f] (!%p4253_p12) }
 0x13c   : > { %729 = vst [vmem:[#allocation2 + $0xa8] sm:$0x1f] (!%p4253_p12), %v728_v40  ;;  %732 = vst [vmem:[#allocation2 + $0xb0] sm:$0x1f] (!%p4253_p12), %v731_v41  ;;  %v737_v44 = vsel (!%p4253_p12), %vm6216_vm13, 0, %v736_v43 }
 0x13d   : > { %735 = vst [vmem:[#allocation2 + $0xb8] sm:$0x1f] (!%p4253_p12), %v734_v42  ;;  %v739_v45 = vld [vmem:[#allocation2 + $0xc8] sm:$0x1f] (!%p4253_p12)  ;;  %v742_v46 = vld [vmem:[#allocation2 + $0xd0] sm:$0x1f] (!%p4253_p12) }
 0x13e   : > { %738 = vst [vmem:[#allocation2 + $0xc0] sm:$0x1f] (!%p4253_p12), %v737_v44  ;;  %v740_v47 = vsel (!%p4253_p12), %vm6216_vm13, 0, %v739_v45  ;;  %v743_v48 = vsel (!%p4253_p12), %vm6216_vm13, 0, %v742_v46  ;;  %v745_v49 = vld [vmem:[#allocation2 + $0xd8] sm:$0x1f] (!%p4253_p12) }
 0x13f   : > { %v748_v50 = vld [vmem:[#allocation2 + $0xe0] sm:$0x1f] (!%p4253_p12)  ;;  %741 = vst [vmem:[#allocation2 + $0xc8] sm:$0x1f] (!%p4253_p12), %v740_v47  ;;  %744 = vst [vmem:[#allocation2 + $0xd0] sm:$0x1f] (!%p4253_p12), %v743_v48 }
 0x140   : > { %v746_v51 = vsel (!%p4253_p12), %vm6216_vm13, 0, %v745_v49  ;;  %v749_v52 = vsel (!%p4253_p12), %vm6216_vm13, 0, %v748_v50 }
 0x141   : > { %747 = vst [vmem:[#allocation2 + $0xd8] sm:$0x1f] %v746_v51  ;;  %750 = vst [vmem:[#allocation2 + $0xe0] sm:$0x1f] %v749_v52 }
 0x142 PF: > { %v984_v53 = vld [vmem:[#allocation2 + $0x20] sm:$0x1e]  ;;  %v985_v54 = vld [vmem:[#allocation2 + $0x28] sm:$0x1e]  ;;  %vm1028_vm14 = vcmask 1042432   ;;  %vm1029_vm15 = vcmask 1046532  }
 0x143   : > { %v4286_v55 = vcombine.low %v984_v53, %v984_v53  ;;  %v4287_v56 = vcombine.high %v984_v53, %v984_v53  ;;  %v4288_v57 = vcombine.low %v985_v54, %v985_v54  ;;  %v4289_v58 = vcombine.high %v985_v54, %v985_v54  ;;  %v980_v59 = vld [vmem:[#allocation2] sm:$0x1e]  ;;  %v981_v60 = vld [vmem:[#allocation2 + $0x8] sm:$0x1e]  ;;  %vm6236_vm0 = vmor %vm1028_vm14, %vm1029_vm15  ;;  %s5658_s16 = smov 8   ;;  %s5659_s8 = smov 4  }
 0x144   : > { %v4278_v62 = vcombine.low %v980_v59, %v980_v59  ;;  %v4279_v63 = vcombine.high %v980_v59, %v980_v59  ;;  %v4280_v0 = vcombine.low %v981_v60, %v981_v60  ;;  %v4281_v1 = vcombine.high %v981_v60, %v981_v60  ;;  %v986_v2 = vld [vmem:[#allocation2 + $0x30] sm:$0x1e]  ;;  %v987_v7 = vld [vmem:[#allocation2 + $0x38] sm:$0x1e]  ;;  %v788_v40 = vld [vmem:[#allocation2] sm:$0x1f] }
 0x145   : > { %v4298_v3 = vrot.slane %v4286_v55, 9  ;;  %v1049_v4 = vrot.slane %v4287_v56, 5  ;;  %v4299_v5 = vrot.slane %v4288_v57, 9  ;;  %v1053_v6 = vrot.slane %v4289_v58, 5  ;;  %v982_v16 = vld [vmem:[#allocation2 + $0x10] sm:$0x1e] }
 0x146   : > { %v4294_v8 = vrot.slane %v4278_v62, 9  ;;  %v1033_v9 = vrot.slane %v4279_v63, 5  ;;  %v4295_v10 = vrot.slane %v4280_v0, 9  ;;  %v1037_v11 = vrot.slane %v4281_v1, 5  ;;  %v983_v17 = vld [vmem:[#allocation2 + $0x18] sm:$0x1e] }
 0x147   : > { %v1050_v12 = vsel %vm6236_vm0, %v4298_v3, %v1049_v4  ;;  %v1054_v13 = vsel %vm6236_vm0, %v4299_v5, %v1053_v6  ;;  %v4290_v14 = vcombine.low %v986_v2, %v986_v2  ;;  %v4291_v15 = vcombine.high %v986_v2, %v986_v2  ;;  %v790_v22 = vld [vmem:[#allocation2 + $0x10] sm:$0x1f]  ;;  %v791_v31 = vld [vmem:[#allocation2 + $0x18] sm:$0x1f]  ;;  %v789_v47 = vld [vmem:[#allocation2 + $0x8] sm:$0x1f] }
 0x148   : > { %v4304_v18 = vcombine.low %v1050_v12, %v1054_v13  ;;  %v1034_v19 = vsel %vm6236_vm0, %v4294_v8, %v1033_v9  ;;  %v1038_v20 = vsel %vm6236_vm0, %v4295_v10, %v1037_v11  ;;  %v4292_v21 = vcombine.low %v987_v7, %v987_v7  ;;  %v794_v60 = vld [vmem:[#allocation2 + $0x30] sm:$0x1f]  ;;  %s5660_s9 = smov 12   ;;  %s5661_s18 = smov 16  }
 0x149   : > { %v4302_v23 = vcombine.low %v1034_v19, %v1038_v20  ;;  %v4293_v24 = vcombine.high %v987_v7, %v987_v7  ;;  %v4300_v25 = vrot.slane %v4290_v14, 9  ;;  %v1057_v26 = vrot.slane %v4291_v15, 5  ;;  %v795_v15 = vld [vmem:[#allocation2 + $0x38] sm:$0x1f]  ;;  %s5662_s13 = smov 20   ;;  %s5663_s19 = smov 24  }
 0x14a   : > { %1079 = vrot.lane.b32.xlu1 %v4304_v18, %s5658_s16  ;;  %v4301_v27 = vrot.slane %v4292_v21, 9  ;;  %v4282_v28 = vcombine.low %v982_v16, %v982_v16  ;;  %v4283_v29 = vcombine.high %v982_v16, %v982_v16  ;;  %v4284_v30 = vcombine.low %v983_v17, %v983_v17  ;;  %s5664_s24 = smov 28   ;;  %s5665_s21 = smov 32  }
 0x14b   : > { %1075 = vrot.lane.b32.xlu0 %v4302_v23, %s5658_s16  ;;  %v1058_v32 = vsel %vm6236_vm0, %v4300_v25, %v1057_v26  ;;  %v1061_v33 = vrot.slane %v4293_v24, 5  ;;  %v4285_v34 = vcombine.high %v983_v17, %v983_v17  ;;  %v4262_v35 = vcombine.low %v790_v22, %v790_v22  ;;  %s5666_s26 = smov 36   ;;  %s5667_s29 = smov 40  }
 0x14c   : > { %v4296_v36 = vrot.slane %v4282_v28, 9  ;;  %v1041_v37 = vrot.slane %v4283_v29, 5  ;;  %v4297_v38 = vrot.slane %v4284_v30, 9  ;;  %v4263_v39 = vcombine.high %v790_v22, %v790_v22  ;;  %s5668_s7 = smov 44   ;;  %s5669_s12 = smov 48  }
 0x14d   : > { %v1062_v41 = vsel %vm6236_vm0, %v4301_v27, %v1061_v33  ;;  %v1045_v42 = vrot.slane %v4285_v34, 5  ;;  %v4264_v43 = vcombine.low %v791_v31, %v791_v31  ;;  %v4265_v44 = vcombine.high %v791_v31, %v791_v31  ;;  %s5670_s14 = smov 52   ;;  %s5671_s15 = smov 56  }
 0x14e   : > { %v4305_v45 = vcombine.low %v1058_v32, %v1062_v41  ;;  %v1042_v46 = vsel %vm6236_vm0, %v4296_v36, %v1041_v37  ;;  %vm836_vm1 = vsmask.f32 3328  ;;  %vm837_vm2 = vsmask.f32 7440  ;;  %v792_v36 = vld [vmem:[#allocation2 + $0x20] sm:$0x1f] }
 0x14f   : > { %v1046_v48 = vsel %vm6236_vm0, %v4297_v38, %v1045_v42  ;;  %v868_v49 = vshrl.u32 %v4262_v35, 16  ;;  %v871_v50 = vshll.u32 %v4262_v35, 16  ;;  %v877_v51 = vshll.u32 %v4263_v39, 16  ;;  %vm6262_vm3 = vmor %vm836_vm1, %vm837_vm2  ;;  %v793_v41 = vld [vmem:[#allocation2 + $0x28] sm:$0x1f]  ;;  %s5672_s10 = smov 60  }
 0x150   : > { %1081 = vrot.lane.b32.xlu1 %v4305_v45, %s5658_s16  ;;  %v4303_v52 = vcombine.low %v1042_v46, %v1046_v48  ;;  %v882_v53 = vshrl.u32 %v4264_v43, 16  ;;  %v885_v54 = vshll.u32 %v4264_v43, 16  ;;  %v891_v55 = vshll.u32 %v4265_v44, 16  ;;  %s5673_s0 = smov 64   ;;  %s5674_s17 = smov 68  }
 0x151   : > { %v870_v56 = vrot.slane %v868_v49, 4  ;;  %v873_v57 = vrot.slane %v871_v50, 5  ;;  %v879_v58 = vrot.slane %v877_v51, 5  ;;  %v4258_v59 = vcombine.low %v788_v40, %v788_v40  ;;  %s5675_s5 = smov 72   ;;  %s5676_s11 = smov 76  }
 0x152   : > { %1077 = vrot.lane.b32.xlu0 %v4303_v52, %s5658_s16  ;;  %v884_v62 = vrot.slane %v882_v53, 4  ;;  %v887_v63 = vrot.slane %v885_v54, 5  ;;  %v893_v0 = vrot.slane %v891_v55, 5  ;;  %v4259_v1 = vcombine.high %v788_v40, %v788_v40  ;;  %s5677_s27 = smov 80   ;;  %s5678_s16 = smov 84  }
 0x153   : > { %v874_v2 = vor.u32 %v873_v57, %v870_v56  ;;  %v4260_v3 = vcombine.low %v789_v47, %v789_v47  ;;  %v4261_v4 = vcombine.high %v789_v47, %v789_v47  ;;  %v840_v5 = vshrl.u32 %v4258_v59, 16 }
 0x154   : > { %v888_v7 = vor.u32 %v887_v63, %v884_v62  ;;  %v843_v8 = vshll.u32 %v4258_v59, 16  ;;  %v849_v9 = vshll.u32 %v4259_v1, 16  ;;  %v4270_v10 = vcombine.low %v794_v60, %v794_v60 }
 0x155   : > { %v875_v11 = vrot.slane %v874_v2, 4  ;;  %v842_v12 = vrot.slane %v840_v5, 4  ;;  %v854_v13 = vshrl.u32 %v4260_v3, 16  ;;  %v857_v14 = vshll.u32 %v4260_v3, 16 }
 0x156   : > { %v889_v16 = vrot.slane %v888_v7, 4  ;;  %v845_v17 = vrot.slane %v843_v8, 5  ;;  %v851_v18 = vrot.slane %v849_v9, 5  ;;  %v863_v19 = vshll.u32 %v4261_v4, 16  ;;  %v1143_v4 = vld [vmem:[#allocation2 + $0x30] sm:$0x1f] }
 0x157   : > { %v880_v20 = vsel %vm6262_vm3, %v875_v11, %v879_v58  ;;  %v856_v21 = vrot.slane %v854_v13, 4  ;;  %v859_v22 = vrot.slane %v857_v14, 5  ;;  %v4271_v23 = vcombine.high %v794_v60, %v794_v60  ;;  %v1142_v58 = vld [vmem:[#allocation2 + $0x28] sm:$0x1f] }
 0x158   : > { %v894_v24 = vsel %vm6262_vm3, %v889_v16, %v893_v0  ;;  %v846_v25 = vor.u32 %v845_v17, %v842_v12  ;;  %v865_v26 = vrot.slane %v863_v19, 5  ;;  %v4272_v27 = vcombine.low %v795_v15, %v795_v15  ;;  %v5046_v19 = vld [vmem:[#allocation2 + $0x28] ss:$8 sps:$4 sm:$0xff]  }
 0x159   : > { %v4275_v28 = vcombine.low %v880_v20, %v894_v24  ;;  %v860_v29 = vor.u32 %v859_v22, %v856_v21  ;;  %v4273_v30 = vcombine.high %v795_v15, %v795_v15  ;;  %v924_v31 = vshrl.u32 %v4270_v10, 16 }
 0x15a   : > { %v847_v32 = vrot.slane %v846_v25, 4  ;;  %v927_v33 = vshll.u32 %v4270_v10, 16  ;;  %v933_v34 = vshll.u32 %v4271_v23, 16  ;;  %v938_v35 = vshrl.u32 %v4272_v27, 16 }
 0x15b   : > { %965 = vrot.lane.b32.xlu1 %v4275_v28, %s5659_s8  ;;  %v861_v37 = vrot.slane %v860_v29, 4  ;;  %v926_v38 = vrot.slane %v924_v31, 4  ;;  %v941_v39 = vshll.u32 %v4272_v27, 16  ;;  %v947_v40 = vshll.u32 %v4273_v30, 16  ;;  %v1138_v27 = vld [vmem:[#allocation2 + $0x8] sm:$0x1f] }
 0x15c   : > { %v852_v42 = vsel %vm6262_vm3, %v847_v32, %v851_v18  ;;  %v929_v43 = vrot.slane %v927_v33, 5  ;;  %v935_v44 = vrot.slane %v933_v34, 5  ;;  %v940_v45 = vrot.slane %v938_v35, 4  ;;  %v1139_v32 = vld [vmem:[#allocation2 + $0x10] sm:$0x1f] }
 0x15d   : > { %v866_v46 = vsel %vm6262_vm3, %v861_v37, %v865_v26  ;;  %v943_v47 = vrot.slane %v941_v39, 5  ;;  %v949_v48 = vrot.slane %v947_v40, 5  ;;  %v4266_v49 = vcombine.low %v792_v36, %v792_v36  ;;  %v1144_v37 = vld [vmem:[#allocation2 + $0x38] sm:$0x1f] }
 0x15e   : > { %v4274_v50 = vcombine.low %v852_v42, %v866_v46  ;;  %v930_v51 = vor.u32 %v929_v43, %v926_v38  ;;  %v4267_v52 = vcombine.high %v792_v36, %v792_v36  ;;  %v4268_v53 = vcombine.low %v793_v41, %v793_v41  ;;  %v5048_v42 = vld [vmem:[#allocation2 + $0x38] ss:$8 sps:$4 sm:$0xff]  }
 0x15f   : > { %v944_v54 = vor.u32 %v943_v47, %v940_v45  ;;  %v4269_v55 = vcombine.high %v793_v41, %v793_v41  ;;  %v896_v56 = vshrl.u32 %v4266_v49, 16  ;;  %v899_v57 = vshll.u32 %v4266_v49, 16  ;;  %v5047_v47 = vld [vmem:[#allocation2 + $0x8] ss:$8 sps:$4 sm:$0xff]  }
 0x160   : > { %963 = vrot.lane.b32.xlu0 %v4274_v50, %s5659_s8  ;;  %v931_v59 = vrot.slane %v930_v51, 4  ;;  %v905_v60 = vshll.u32 %v4267_v52, 16  ;;  %v910_v62 = vshrl.u32 %v4268_v53, 16  ;;  %v913_v63 = vshll.u32 %v4268_v53, 16 }
 0x161   : > { %v945_v0 = vrot.slane %v944_v54, 4  ;;  %v898_v1 = vrot.slane %v896_v56, 4  ;;  %v901_v2 = vrot.slane %v899_v57, 5  ;;  %v919_v3 = vshll.u32 %v4269_v55, 16  ;;  %v5049_v56 = vld [vmem:[#allocation2 + $0x18] ss:$8 sps:$4 sm:$0xff]  }
 0x162   : > { %v936_v5 = vsel %vm6262_vm3, %v931_v59, %v935_v44  ;;  %v907_v7 = vrot.slane %v905_v60, 5  ;;  %v912_v8 = vrot.slane %v910_v62, 4  ;;  %v915_v9 = vrot.slane %v913_v63, 5  ;;  %v1145_v62 = vld [vmem:[#allocation2 + $0x40] sm:$0x1f] }
 0x163   : > { %v950_v10 = vsel %vm6262_vm3, %v945_v0, %v949_v48  ;;  %v902_v11 = vor.u32 %v901_v2, %v898_v1  ;;  %v921_v12 = vrot.slane %v919_v3, 5  ;;  %v4318_v13 = vcombine.low %v1142_v58, %v1142_v58  ;;  %v1140_v3 = vld [vmem:[#allocation2 + $0x18] sm:$0x1f] }
 0x164   : > { %v4277_v14 = vcombine.low %v936_v5, %v950_v10  ;;  %v916_v15 = vor.u32 %v915_v9, %v912_v8  ;;  %v4319_v16 = vcombine.high %v1142_v58, %v1142_v58  ;;  %v4320_v17 = vcombine.low %v1143_v4, %v1143_v4 }
 0x165   : > { %v903_v18 = vrot.slane %v902_v11, 4  ;;  %v4321_v20 = vcombine.high %v1143_v4, %v1143_v4  ;;  %v1243_v21 = vshrl.u32 %v4318_v13, 16  ;;  %v1246_v22 = vshll.u32 %v4318_v13, 16 }
 0x166   : > { %969 = vrot.lane.b32.xlu1 %v4277_v14, %s5659_s8  ;;  %v917_v23 = vrot.slane %v916_v15, 4  ;;  %v1252_v24 = vshll.u32 %v4319_v16, 16  ;;  %v1257_v25 = vshrl.u32 %v4320_v17, 16  ;;  %v1260_v26 = vshll.u32 %v4320_v17, 16 }
 0x167   : > { %v908_v28 = vsel %vm6262_vm3, %v903_v18, %v907_v7  ;;  %v1245_v29 = vrot.slane %v1243_v21, 4  ;;  %v1248_v30 = vrot.slane %v1246_v22, 5  ;;  %v1266_v31 = vshll.u32 %v4321_v20, 16  ;;  %v1141_v21 = vld [vmem:[#allocation2 + $0x20] sm:$0x1f] }
 0x168   : > { %v922_v33 = vsel %vm6262_vm3, %v917_v23, %v921_v12  ;;  %v1254_v34 = vrot.slane %v1252_v24, 5  ;;  %v1259_v35 = vrot.slane %v1257_v25, 4  ;;  %v1262_v36 = vrot.slane %v1260_v26, 5 }
 0x169   : > { %v4276_v38 = vcombine.low %v908_v28, %v922_v33  ;;  %v1249_v39 = vor.u32 %v1248_v30, %v1245_v29  ;;  %v1268_v40 = vrot.slane %v1266_v31, 5  ;;  %v4310_v41 = vcombine.low %v1138_v27, %v1138_v27 }
 0x16a   : > { %1125 = vrot.lane.b32.xlu1 %v5046_v19, %s5660_s9  ;;  %v1263_v43 = vor.u32 %v1262_v36, %v1259_v35  ;;  %v4311_v44 = vcombine.high %v1138_v27, %v1138_v27  ;;  %v4312_v45 = vcombine.low %v1139_v32, %v1139_v32  ;;  %v4313_v46 = vcombine.high %v1139_v32, %v1139_v32 }
 0x16b   : > { %967 = vrot.lane.b32.xlu0 %v4276_v38, %s5659_s8  ;;  %v1250_v48 = vrot.slane %v1249_v39, 4  ;;  %v1187_v49 = vshrl.u32 %v4310_v41, 16  ;;  %v1190_v50 = vshll.u32 %v4310_v41, 16  ;;  %v4322_v51 = vcombine.low %v1144_v37, %v1144_v37 }
 0x16c   : > { %v1264_v52 = vrot.slane %v1263_v43, 4  ;;  %v1196_v53 = vshll.u32 %v4311_v44, 16  ;;  %v1201_v54 = vshrl.u32 %v4312_v45, 16  ;;  %v1204_v55 = vshll.u32 %v4312_v45, 16 }
 0x16d   : > { %v1255_v57 = vsel %vm6262_vm3, %v1250_v48, %v1254_v34  ;;  %v1189_v58 = vrot.slane %v1187_v49, 4  ;;  %v1192_v59 = vrot.slane %v1190_v50, 5  ;;  %v1210_v60 = vshll.u32 %v4313_v46, 16 }
 0x16e   : > { %1127 = vrot.lane.b32.xlu1 %v5048_v42, %s5660_s9  ;;  %v1269_v63 = vsel %vm6262_vm3, %v1264_v52, %v1268_v40  ;;  %v1198_v0 = vrot.slane %v1196_v53, 5  ;;  %v1203_v1 = vrot.slane %v1201_v54, 4  ;;  %v1206_v2 = vrot.slane %v1204_v55, 5  ;;  %v1331_v42 = vld [vmem:[#allocation2 + $0x28] sm:$0x1e] }
 0x16f   : > { %1121 = vrot.lane.b32.xlu0 %v5047_v47, %s5660_s9  ;;  %v4328_v4 = vcombine.low %v1255_v57, %v1269_v63  ;;  %v1193_v5 = vor.u32 %v1192_v59, %v1189_v58  ;;  %v1212_v7 = vrot.slane %v1210_v60, 5  ;;  %v4323_v8 = vcombine.high %v1144_v37, %v1144_v37  ;;  %v1332_v47 = vld [vmem:[#allocation2 + $0x30] sm:$0x1e]  ;;  %v1327_v52 = vld [vmem:[#allocation2 + $0x8] sm:$0x1e] }
 0x170   : > { %v1207_v9 = vor.u32 %v1206_v2, %v1203_v1  ;;  %v4324_v10 = vcombine.low %v1145_v62, %v1145_v62  ;;  %v4325_v11 = vcombine.high %v1145_v62, %v1145_v62  ;;  %v1271_v12 = vshrl.u32 %v4322_v51, 16  ;;  %v1328_v62 = vld [vmem:[#allocation2 + $0x10] sm:$0x1e] }
 0x171   : > { %v1194_v13 = vrot.slane %v1193_v5, 4  ;;  %v1274_v14 = vshll.u32 %v4322_v51, 16  ;;  %v1280_v15 = vshll.u32 %v4323_v8, 16  ;;  %v4314_v16 = vcombine.low %v1140_v3, %v1140_v3 }
 0x172   : > { %1314 = vrot.lane.b32.xlu1 %v4328_v4, %s5661_s18  ;;  %v1208_v17 = vrot.slane %v1207_v9, 4  ;;  %v1273_v18 = vrot.slane %v1271_v12, 4  ;;  %v1285_v19 = vshrl.u32 %v4324_v10, 16  ;;  %v1288_v20 = vshll.u32 %v4324_v10, 16  ;;  %v1333_v12 = vld [vmem:[#allocation2 + $0x38] sm:$0x1e] }
 0x173   : > { %1123 = vrot.lane.b32.xlu0 %v5049_v56, %s5660_s9  ;;  %v1199_v22 = vsel %vm6262_vm3, %v1194_v13, %v1198_v0  ;;  %v1276_v23 = vrot.slane %v1274_v14, 5  ;;  %v1282_v24 = vrot.slane %v1280_v15, 5  ;;  %v1294_v25 = vshll.u32 %v4325_v11, 16  ;;  %s5679_s9 = smov 88  }
 0x174   : > { %v1213_v26 = vsel %vm6262_vm3, %v1208_v17, %v1212_v7  ;;  %v1287_v27 = vrot.slane %v1285_v19, 4  ;;  %v1290_v28 = vrot.slane %v1288_v20, 5  ;;  %v4315_v29 = vcombine.high %v1140_v3, %v1140_v3  ;;  %v1334_v17 = vld [vmem:[#allocation2 + $0x40] sm:$0x1e] }
 0x175   : > { %v4326_v30 = vcombine.low %v1199_v22, %v1213_v26  ;;  %v1277_v31 = vor.u32 %v1276_v23, %v1273_v18  ;;  %v1296_v32 = vrot.slane %v1294_v25, 5  ;;  %v4316_v33 = vcombine.low %v1141_v21, %v1141_v21  ;;  %v1329_v18 = vld [vmem:[#allocation2 + $0x18] sm:$0x1e] }
 0x176   : > { %v1291_v34 = vor.u32 %v1290_v28, %v1287_v27  ;;  %v4317_v35 = vcombine.high %v1141_v21, %v1141_v21  ;;  %v1215_v36 = vshrl.u32 %v4314_v16, 16  ;;  %v1218_v37 = vshll.u32 %v4314_v16, 16  ;;  %v1330_v27 = vld [vmem:[#allocation2 + $0x20] sm:$0x1e] }
 0x177   : > { %1310 = vrot.lane.b32.xlu0 %v4326_v30, %s5661_s18  ;;  %v1278_v38 = vrot.slane %v1277_v31, 4  ;;  %v1224_v39 = vshll.u32 %v4315_v29, 16  ;;  %v1229_v40 = vshrl.u32 %v4316_v33, 16  ;;  %v1232_v41 = vshll.u32 %v4316_v33, 16 }
 0x178   : > { %v1292_v43 = vrot.slane %v1291_v34, 4  ;;  %v1217_v44 = vrot.slane %v1215_v36, 4  ;;  %v1220_v45 = vrot.slane %v1218_v37, 5  ;;  %v1238_v46 = vshll.u32 %v4317_v35, 16 }
 0x179   : > { %v1283_v48 = vsel %vm6262_vm3, %v1278_v38, %v1282_v24  ;;  %v1226_v49 = vrot.slane %v1224_v39, 5  ;;  %v1231_v50 = vrot.slane %v1229_v40, 4  ;;  %v1234_v51 = vrot.slane %v1232_v41, 5  ;;  %v1487_v41 = vld [vmem:[#allocation2 + $0x38] sm:$0x1f] }
 0x17a   : > { %v1297_v53 = vsel %vm6262_vm3, %v1292_v43, %v1296_v32  ;;  %v1221_v54 = vor.u32 %v1220_v45, %v1217_v44  ;;  %v1240_v55 = vrot.slane %v1238_v46, 5  ;;  %v4338_v56 = vcombine.low %v1331_v42, %v1331_v42  ;;  %v1486_v32 = vld [vmem:[#allocation2 + $0x30] sm:$0x1f] }
 0x17b   : > { %v4329_v57 = vcombine.low %v1283_v48, %v1297_v53  ;;  %v1235_v58 = vor.u32 %v1234_v51, %v1231_v50  ;;  %v4339_v59 = vcombine.high %v1331_v42, %v1331_v42  ;;  %v4340_v60 = vcombine.low %v1332_v47, %v1332_v47 }
 0x17c   : > { %v1222_v63 = vrot.slane %v1221_v54, 4  ;;  %v4341_v0 = vcombine.high %v1332_v47, %v1332_v47  ;;  %v4350_v1 = vrot.slane %v4338_v56, 9  ;;  %v4330_v2 = vcombine.low %v1327_v52, %v1327_v52  ;;  %v1482_v54 = vld [vmem:[#allocation2 + $0x10] sm:$0x1f] }
 0x17d   : > { %1316 = vrot.lane.b32.xlu1 %v4329_v57, %s5661_s18  ;;  %v1236_v3 = vrot.slane %v1235_v58, 4  ;;  %v1393_v4 = vrot.slane %v4339_v59, 5  ;;  %v4351_v5 = vrot.slane %v4340_v60, 9  ;;  %v4331_v7 = vcombine.high %v1327_v52, %v1327_v52  ;;  %v5082_v56 = vld [vmem:[#allocation2 + $0x30] ss:$8 sps:$4 sm:$0xff]  }
 0x17e   : > { %v1227_v8 = vsel %vm6262_vm3, %v1222_v63, %v1226_v49  ;;  %v1397_v9 = vrot.slane %v4341_v0, 5  ;;  %v4332_v10 = vcombine.low %v1328_v62, %v1328_v62  ;;  %v4333_v11 = vcombine.high %v1328_v62, %v1328_v62 }
 0x17f   : > { %v1241_v13 = vsel %vm6262_vm3, %v1236_v3, %v1240_v55  ;;  %v1394_v14 = vsel %vm6236_vm0, %v4350_v1, %v1393_v4  ;;  %v4346_v15 = vrot.slane %v4330_v2, 9  ;;  %v1377_v16 = vrot.slane %v4331_v7, 5  ;;  %v1483_v1 = vld [vmem:[#allocation2 + $0x18] sm:$0x1f]  ;;  %v1488_v7 = vld [vmem:[#allocation2 + $0x40] sm:$0x1f] }
 0x180   : > { %v4327_v19 = vcombine.low %v1227_v8, %v1241_v13  ;;  %v1398_v20 = vsel %vm6236_vm0, %v4351_v5, %v1397_v9  ;;  %v4347_v21 = vrot.slane %v4332_v10, 9  ;;  %v1381_v22 = vrot.slane %v4333_v11, 5  ;;  %v5083_v8 = vld [vmem:[#allocation2 + $0x10] ss:$8 sps:$4 sm:$0xff]  }
 0x181   : > { %v4356_v23 = vcombine.low %v1394_v14, %v1398_v20  ;;  %v1378_v24 = vsel %vm6236_vm0, %v4346_v15, %v1377_v16  ;;  %v4342_v25 = vcombine.low %v1333_v12, %v1333_v12  ;;  %v4343_v26 = vcombine.high %v1333_v12, %v1333_v12 }
 0x182   : > { %1312 = vrot.lane.b32.xlu0 %v4327_v19, %s5661_s18  ;;  %v1382_v28 = vsel %vm6236_vm0, %v4347_v21, %v1381_v22  ;;  %v4344_v29 = vcombine.low %v1334_v17, %v1334_v17  ;;  %v4345_v30 = vcombine.high %v1334_v17, %v1334_v17  ;;  %v4334_v31 = vcombine.low %v1329_v18, %v1329_v18  ;;  %v5084_v17 = vld [vmem:[#allocation2 + $0x40] ss:$8 sps:$4 sm:$0xff]   ;;  %s5680_s18 = smov 92  }
 0x183   : > { %1423 = vrot.lane.b32.xlu1 %v4356_v23, %s5662_s13  ;;  %v4354_v33 = vcombine.low %v1378_v24, %v1382_v28  ;;  %v4352_v34 = vrot.slane %v4342_v25, 9  ;;  %v1401_v35 = vrot.slane %v4343_v26, 5  ;;  %v4335_v36 = vcombine.high %v1329_v18, %v1329_v18  ;;  %v5085_v18 = vld [vmem:[#allocation2 + $0x20] ss:$8 sps:$4 sm:$0xff]  }
 0x184   : > { %v4353_v37 = vrot.slane %v4344_v29, 9  ;;  %v1405_v38 = vrot.slane %v4345_v30, 5  ;;  %v4336_v39 = vcombine.low %v1330_v27, %v1330_v27  ;;  %v4337_v40 = vcombine.high %v1330_v27, %v1330_v27  ;;  %v1489_v27 = vld [vmem:[#allocation2 + $0x48] sm:$0x1f] }
 0x185   : > { %v1402_v42 = vsel %vm6236_vm0, %v4352_v34, %v1401_v35  ;;  %v4348_v43 = vrot.slane %v4334_v31, 9  ;;  %v1385_v44 = vrot.slane %v4335_v36, 5  ;;  %v4370_v45 = vcombine.low %v1486_v32, %v1486_v32 }
 0x186   : > { %1419 = vrot.lane.b32.xlu0 %v4354_v33, %s5662_s13  ;;  %v1406_v46 = vsel %vm6236_vm0, %v4353_v37, %v1405_v38  ;;  %v4349_v47 = vrot.slane %v4336_v39, 9  ;;  %v1389_v48 = vrot.slane %v4337_v40, 5  ;;  %v4371_v49 = vcombine.high %v1486_v32, %v1486_v32 }
 0x187   : > { %v4357_v50 = vcombine.low %v1402_v42, %v1406_v46  ;;  %v1386_v51 = vsel %vm6236_vm0, %v4348_v43, %v1385_v44  ;;  %v4372_v52 = vcombine.low %v1487_v41, %v1487_v41  ;;  %v4373_v53 = vcombine.high %v1487_v41, %v1487_v41  ;;  %v1484_v44 = vld [vmem:[#allocation2 + $0x20] sm:$0x1f] }
 0x188   : > { %v1390_v55 = vsel %vm6236_vm0, %v4349_v47, %v1389_v48  ;;  %v1587_v57 = vshrl.u32 %v4370_v45, 16  ;;  %v1590_v58 = vshll.u32 %v4370_v45, 16  ;;  %v1596_v59 = vshll.u32 %v4371_v49, 16 }
 0x189   : > { %1425 = vrot.lane.b32.xlu1 %v4357_v50, %s5662_s13  ;;  %v4355_v60 = vcombine.low %v1386_v51, %v1390_v55  ;;  %v1601_v62 = vshrl.u32 %v4372_v52, 16  ;;  %v1604_v63 = vshll.u32 %v4372_v52, 16  ;;  %v1610_v0 = vshll.u32 %v4373_v53, 16  ;;  %v1485_v53 = vld [vmem:[#allocation2 + $0x28] sm:$0x1f] }
 0x18a   : > { %v1589_v2 = vrot.slane %v1587_v57, 4  ;;  %v1592_v3 = vrot.slane %v1590_v58, 5  ;;  %v1598_v4 = vrot.slane %v1596_v59, 5  ;;  %v4362_v5 = vcombine.low %v1482_v54, %v1482_v54 }
 0x18b   : > { %1421 = vrot.lane.b32.xlu0 %v4355_v60, %s5662_s13  ;;  %v1603_v9 = vrot.slane %v1601_v62, 4  ;;  %v1606_v10 = vrot.slane %v1604_v63, 5  ;;  %v1612_v11 = vrot.slane %v1610_v0, 5  ;;  %v4363_v12 = vcombine.high %v1482_v54, %v1482_v54  ;;  %s5681_s13 = smov 96  }
 0x18c   : > { %v1593_v13 = vor.u32 %v1592_v3, %v1589_v2  ;;  %v4364_v14 = vcombine.low %v1483_v1, %v1483_v1  ;;  %v4365_v15 = vcombine.high %v1483_v1, %v1483_v1  ;;  %v1531_v16 = vshrl.u32 %v4362_v5, 16  ;;  %v1675_v3 = vld [vmem:[#allocation2 + $0x30] sm:$0x1e] }
 0x18d   : > { %1469 = vrot.lane.b32.xlu1 %v5082_v56, %s5663_s19  ;;  %v1607_v19 = vor.u32 %v1606_v10, %v1603_v9  ;;  %v1534_v20 = vshll.u32 %v4362_v5, 16  ;;  %v1540_v21 = vshll.u32 %v4363_v12, 16  ;;  %v4374_v22 = vcombine.low %v1488_v7, %v1488_v7  ;;  %v1676_v9 = vld [vmem:[#allocation2 + $0x38] sm:$0x1e] }
 0x18e   : > { %v1594_v23 = vrot.slane %v1593_v13, 4  ;;  %v1533_v24 = vrot.slane %v1531_v16, 4  ;;  %v1545_v25 = vshrl.u32 %v4364_v14, 16  ;;  %v1548_v26 = vshll.u32 %v4364_v14, 16 }
 0x18f   : > { %1465 = vrot.lane.b32.xlu0 %v5083_v8, %s5663_s19  ;;  %v1608_v28 = vrot.slane %v1607_v19, 4  ;;  %v1536_v29 = vrot.slane %v1534_v20, 5  ;;  %v1542_v30 = vrot.slane %v1540_v21, 5  ;;  %v1554_v31 = vshll.u32 %v4365_v15, 16 }
 0x190   : > { %v1599_v32 = vsel %vm6262_vm3, %v1594_v23, %v1598_v4  ;;  %v1547_v33 = vrot.slane %v1545_v25, 4  ;;  %v1550_v34 = vrot.slane %v1548_v26, 5  ;;  %v4375_v35 = vcombine.high %v1488_v7, %v1488_v7 }
 0x191   : > { %1471 = vrot.lane.b32.xlu1 %v5084_v17, %s5663_s19  ;;  %v1613_v36 = vsel %vm6262_vm3, %v1608_v28, %v1612_v11  ;;  %v1537_v37 = vor.u32 %v1536_v29, %v1533_v24  ;;  %v1556_v38 = vrot.slane %v1554_v31, 5  ;;  %v4376_v39 = vcombine.low %v1489_v27, %v1489_v27  ;;  %v1672_v31 = vld [vmem:[#allocation2 + $0x18] sm:$0x1e] }
 0x192   : > { %v4380_v40 = vcombine.low %v1599_v32, %v1613_v36  ;;  %v1551_v41 = vor.u32 %v1550_v34, %v1547_v33  ;;  %v4377_v42 = vcombine.high %v1489_v27, %v1489_v27  ;;  %v1615_v43 = vshrl.u32 %v4374_v22, 16  ;;  %v1677_v36 = vld [vmem:[#allocation2 + $0x40] sm:$0x1e] }
 0x193   : > { %1467 = vrot.lane.b32.xlu0 %v5085_v18, %s5663_s19  ;;  %v1538_v45 = vrot.slane %v1537_v37, 4  ;;  %v1618_v46 = vshll.u32 %v4374_v22, 16  ;;  %v1624_v47 = vshll.u32 %v4375_v35, 16  ;;  %v1629_v48 = vshrl.u32 %v4376_v39, 16  ;;  %v1671_v18 = vld [vmem:[#allocation2 + $0x10] sm:$0x1e] }
 0x194   : > { %v1552_v49 = vrot.slane %v1551_v41, 4  ;;  %v1617_v50 = vrot.slane %v1615_v43, 4  ;;  %v1632_v51 = vshll.u32 %v4376_v39, 16  ;;  %v1638_v52 = vshll.u32 %v4377_v42, 16  ;;  %s5682_s19 = smov 100  }
 0x195   : > { %1658 = vrot.lane.b32.xlu1 %v4380_v40, %s5664_s24  ;;  %v1543_v54 = vsel %vm6262_vm3, %v1538_v45, %v1542_v30  ;;  %v1620_v55 = vrot.slane %v1618_v46, 5  ;;  %v1626_v56 = vrot.slane %v1624_v47, 5  ;;  %v1631_v57 = vrot.slane %v1629_v48, 4  ;;  %v1678_v45 = vld [vmem:[#allocation2 + $0x48] sm:$0x1e] }
 0x196   : > { %v1557_v58 = vsel %vm6262_vm3, %v1552_v49, %v1556_v38  ;;  %v1634_v59 = vrot.slane %v1632_v51, 5  ;;  %v1640_v60 = vrot.slane %v1638_v52, 5  ;;  %v4366_v62 = vcombine.low %v1484_v44, %v1484_v44 }
 0x197   : > { %v4378_v63 = vcombine.low %v1543_v54, %v1557_v58  ;;  %v1621_v0 = vor.u32 %v1620_v55, %v1617_v50  ;;  %v4367_v1 = vcombine.high %v1484_v44, %v1484_v44  ;;  %v4368_v2 = vcombine.low %v1485_v53, %v1485_v53  ;;  %v1673_v50 = vld [vmem:[#allocation2 + $0x20] sm:$0x1e] }
 0x198   : > { %v1635_v4 = vor.u32 %v1634_v59, %v1631_v57  ;;  %v4369_v5 = vcombine.high %v1485_v53, %v1485_v53  ;;  %v1559_v7 = vshrl.u32 %v4366_v62, 16  ;;  %v1562_v8 = vshll.u32 %v4366_v62, 16  ;;  %v1674_v59 = vld [vmem:[#allocation2 + $0x28] sm:$0x1e] }
 0x199   : > { %1654 = vrot.lane.b32.xlu0 %v4378_v63, %s5664_s24  ;;  %v1622_v10 = vrot.slane %v1621_v0, 4  ;;  %v1568_v11 = vshll.u32 %v4367_v1, 16  ;;  %v1573_v12 = vshrl.u32 %v4368_v2, 16  ;;  %v1576_v13 = vshll.u32 %v4368_v2, 16  ;;  %v1830_v1 = vld [vmem:[#allocation2 + $0x70] sm:$0x1f] }
 0x19a   : > { %v1636_v14 = vrot.slane %v1635_v4, 4  ;;  %v1561_v15 = vrot.slane %v1559_v7, 4  ;;  %v1564_v16 = vrot.slane %v1562_v8, 5  ;;  %v1582_v17 = vshll.u32 %v4369_v5, 16 }
 0x19b   : > { %v1627_v19 = vsel %vm6262_vm3, %v1622_v10, %v1626_v56  ;;  %v1570_v20 = vrot.slane %v1568_v11, 5  ;;  %v1575_v21 = vrot.slane %v1573_v12, 4  ;;  %v1578_v22 = vrot.slane %v1576_v13, 5  ;;  %v1831_v11 = vld [vmem:[#allocation2 + $0x78] sm:$0x1f] }
 0x19c   : > { %v1641_v23 = vsel %vm6262_vm3, %v1636_v14, %v1640_v60  ;;  %v1565_v24 = vor.u32 %v1564_v16, %v1561_v15  ;;  %v1584_v25 = vrot.slane %v1582_v17, 5  ;;  %v4390_v26 = vcombine.low %v1675_v3, %v1675_v3 }
 0x19d   : > { %v4381_v27 = vcombine.low %v1627_v19, %v1641_v23  ;;  %v1579_v28 = vor.u32 %v1578_v22, %v1575_v21  ;;  %v4391_v29 = vcombine.high %v1675_v3, %v1675_v3  ;;  %v4392_v30 = vcombine.low %v1676_v9, %v1676_v9 }
 0x19e   : > { %v1566_v32 = vrot.slane %v1565_v24, 4  ;;  %v4393_v33 = vcombine.high %v1676_v9, %v1676_v9  ;;  %v4402_v34 = vrot.slane %v4390_v26, 9  ;;  %v4382_v35 = vcombine.low %v1671_v18, %v1671_v18  ;;  %v1826_v24 = vld [vmem:[#allocation2 + $0x50] sm:$0x1f] }
 0x19f   : > { %1660 = vrot.lane.b32.xlu1 %v4381_v27, %s5664_s24  ;;  %v1580_v37 = vrot.slane %v1579_v28, 4  ;;  %v1737_v38 = vrot.slane %v4391_v29, 5  ;;  %v4403_v39 = vrot.slane %v4392_v30, 9  ;;  %v4383_v40 = vcombine.high %v1671_v18, %v1671_v18  ;;  %v5118_v26 = vld [vmem:[#allocation2 + $0x70] ss:$8 sps:$4 sm:$0xff]  }
 0x1a0   : > { %v1571_v41 = vsel %vm6262_vm3, %v1566_v32, %v1570_v20  ;;  %v1741_v42 = vrot.slane %v4393_v33, 5  ;;  %v4384_v43 = vcombine.low %v1672_v31, %v1672_v31  ;;  %v4385_v44 = vcombine.high %v1672_v31, %v1672_v31 }
 0x1a1   : > { %v1585_v46 = vsel %vm6262_vm3, %v1580_v37, %v1584_v25  ;;  %v1738_v47 = vsel %vm6236_vm0, %v4402_v34, %v1737_v38  ;;  %v4398_v48 = vrot.slane %v4382_v35, 9  ;;  %v1721_v49 = vrot.slane %v4383_v40, 5  ;;  %v1827_v34 = vld [vmem:[#allocation2 + $0x58] sm:$0x1f] }
 0x1a2   : > { %v4379_v51 = vcombine.low %v1571_v41, %v1585_v46  ;;  %v1742_v52 = vsel %vm6236_vm0, %v4403_v39, %v1741_v42  ;;  %v4399_v53 = vrot.slane %v4384_v43, 9  ;;  %v1725_v54 = vrot.slane %v4385_v44, 5  ;;  %v1832_v39 = vld [vmem:[#allocation2 + $0x80] sm:$0x1f]  ;;  %v5119_v40 = vld [vmem:[#allocation2 + $0x50] ss:$8 sps:$4 sm:$0xff]  }
 0x1a3   : > { %v4408_v55 = vcombine.low %v1738_v47, %v1742_v52  ;;  %v1722_v56 = vsel %vm6236_vm0, %v4398_v48, %v1721_v49  ;;  %v4394_v57 = vcombine.low %v1677_v36, %v1677_v36  ;;  %v4395_v58 = vcombine.high %v1677_v36, %v1677_v36  ;;  %v5120_v49 = vld [vmem:[#allocation2 + $0x80] ss:$8 sps:$4 sm:$0xff]  }
 0x1a4   : > { %1656 = vrot.lane.b32.xlu0 %v4379_v51, %s5664_s24  ;;  %v1726_v60 = vsel %vm6236_vm0, %v4399_v53, %v1725_v54  ;;  %v4396_v62 = vcombine.low %v1678_v45, %v1678_v45  ;;  %v4397_v63 = vcombine.high %v1678_v45, %v1678_v45  ;;  %v4386_v0 = vcombine.low %v1673_v50, %v1673_v50  ;;  %s5683_s24 = smov 104  }
 0x1a5   : > { %1767 = vrot.lane.b32.xlu1 %v4408_v55, %s5665_s21  ;;  %v4406_v2 = vcombine.low %v1722_v56, %v1726_v60  ;;  %v4404_v3 = vrot.slane %v4394_v57, 9  ;;  %v1745_v4 = vrot.slane %v4395_v58, 5  ;;  %v4387_v5 = vcombine.high %v1673_v50, %v1673_v50  ;;  %v1833_v58 = vld [vmem:[#allocation2 + $0x88] sm:$0x1f] }
 0x1a6   : > { %v4405_v7 = vrot.slane %v4396_v62, 9  ;;  %v1749_v8 = vrot.slane %v4397_v63, 5  ;;  %v4388_v9 = vcombine.low %v1674_v59, %v1674_v59  ;;  %v4389_v10 = vcombine.high %v1674_v59, %v1674_v59  ;;  %v5121_v59 = vld [vmem:[#allocation2 + $0x60] ss:$8 sps:$4 sm:$0xff]  }
 0x1a7   : > { %v1746_v12 = vsel %vm6236_vm0, %v4404_v3, %v1745_v4  ;;  %v4400_v13 = vrot.slane %v4386_v0, 9  ;;  %v1729_v14 = vrot.slane %v4387_v5, 5  ;;  %v4422_v15 = vcombine.low %v1830_v1, %v1830_v1 }
 0x1a8   : > { %1763 = vrot.lane.b32.xlu0 %v4406_v2, %s5665_s21  ;;  %v1750_v16 = vsel %vm6236_vm0, %v4405_v7, %v1749_v8  ;;  %v4401_v17 = vrot.slane %v4388_v9, 9  ;;  %v1733_v18 = vrot.slane %v4389_v10, 5  ;;  %v4423_v19 = vcombine.high %v1830_v1, %v1830_v1 }
 0x1a9   : > { %v4409_v20 = vcombine.low %v1746_v12, %v1750_v16  ;;  %v1730_v21 = vsel %vm6236_vm0, %v4400_v13, %v1729_v14  ;;  %v4424_v22 = vcombine.low %v1831_v11, %v1831_v11  ;;  %v4425_v23 = vcombine.high %v1831_v11, %v1831_v11  ;;  %v1828_v14 = vld [vmem:[#allocation2 + $0x60] sm:$0x1f] }
 0x1aa   : > { %v1734_v25 = vsel %vm6236_vm0, %v4401_v17, %v1733_v18  ;;  %v1931_v27 = vshrl.u32 %v4422_v15, 16  ;;  %v1934_v28 = vshll.u32 %v4422_v15, 16  ;;  %v1940_v29 = vshll.u32 %v4423_v19, 16  ;;  %v1829_v19 = vld [vmem:[#allocation2 + $0x68] sm:$0x1f] }
 0x1ab   : > { %1769 = vrot.lane.b32.xlu1 %v4409_v20, %s5665_s21  ;;  %v4407_v30 = vcombine.low %v1730_v21, %v1734_v25  ;;  %v1945_v31 = vshrl.u32 %v4424_v22, 16  ;;  %v1948_v32 = vshll.u32 %v4424_v22, 16  ;;  %v1954_v33 = vshll.u32 %v4425_v23, 16 }
 0x1ac   : > { %v1933_v35 = vrot.slane %v1931_v27, 4  ;;  %v1936_v36 = vrot.slane %v1934_v28, 5  ;;  %v1942_v37 = vrot.slane %v1940_v29, 5  ;;  %v4414_v38 = vcombine.low %v1826_v24, %v1826_v24 }
 0x1ad   : > { %1765 = vrot.lane.b32.xlu0 %v4407_v30, %s5665_s21  ;;  %v1947_v41 = vrot.slane %v1945_v31, 4  ;;  %v1950_v42 = vrot.slane %v1948_v32, 5  ;;  %v1956_v43 = vrot.slane %v1954_v33, 5  ;;  %v4415_v44 = vcombine.high %v1826_v24, %v1826_v24  ;;  %s7025_s21 = sld [smem:[#allocation22_spill]] }
 0x1ae   : > { %v1937_v45 = vor.u32 %v1936_v36, %v1933_v35  ;;  %v4416_v46 = vcombine.low %v1827_v34, %v1827_v34  ;;  %v4417_v47 = vcombine.high %v1827_v34, %v1827_v34  ;;  %v1875_v48 = vshrl.u32 %v4414_v38, 16  ;;  %v2019_v36 = vld [vmem:[#allocation2 + $0x70] sm:$0x1e] }
 0x1af   : > { %1813 = vrot.lane.b32.xlu1 %v5118_v26, %s5666_s26  ;;  %v1951_v50 = vor.u32 %v1950_v42, %v1947_v41  ;;  %v1878_v51 = vshll.u32 %v4414_v38, 16  ;;  %v1884_v52 = vshll.u32 %v4415_v44, 16  ;;  %v4426_v53 = vcombine.low %v1832_v39, %v1832_v39 }
 0x1b0   : > { %v1938_v54 = vrot.slane %v1937_v45, 4  ;;  %v1877_v55 = vrot.slane %v1875_v48, 4  ;;  %v1889_v56 = vshrl.u32 %v4416_v46, 16  ;;  %v1892_v57 = vshll.u32 %v4416_v46, 16  ;;  %v2020_v45 = vld [vmem:[#allocation2 + $0x78] sm:$0x1e] }
 0x1b1   : > { %1809 = vrot.lane.b32.xlu0 %v5119_v40, %s5666_s26  ;;  %v1952_v60 = vrot.slane %v1951_v50, 4  ;;  %v1880_v62 = vrot.slane %v1878_v51, 5  ;;  %v1886_v63 = vrot.slane %v1884_v52, 5  ;;  %v1898_v0 = vshll.u32 %v4417_v47, 16 }
 0x1b2   : > { %v1943_v1 = vsel %vm6262_vm3, %v1938_v54, %v1942_v37  ;;  %v1891_v2 = vrot.slane %v1889_v56, 4  ;;  %v1894_v3 = vrot.slane %v1892_v57, 5  ;;  %v4427_v4 = vcombine.high %v1832_v39, %v1832_v39  ;;  %v2015_v54 = vld [vmem:[#allocation2 + $0x50] sm:$0x1e] }
 0x1b3   : > { %1815 = vrot.lane.b32.xlu1 %v5120_v49, %s5666_s26  ;;  %v1957_v5 = vsel %vm6262_vm3, %v1952_v60, %v1956_v43  ;;  %v1881_v7 = vor.u32 %v1880_v62, %v1877_v55  ;;  %v1900_v8 = vrot.slane %v1898_v0, 5  ;;  %v4428_v9 = vcombine.low %v1833_v58, %v1833_v58  ;;  %v2016_v0 = vld [vmem:[#allocation2 + $0x58] sm:$0x1e] }
 0x1b4   : > { %v4432_v10 = vcombine.low %v1943_v1, %v1957_v5  ;;  %v1895_v11 = vor.u32 %v1894_v3, %v1891_v2  ;;  %v4429_v12 = vcombine.high %v1833_v58, %v1833_v58  ;;  %v1959_v13 = vshrl.u32 %v4426_v53, 16  ;;  %v2021_v5 = vld [vmem:[#allocation2 + $0x80] sm:$0x1e] }
 0x1b5   : > { %1811 = vrot.lane.b32.xlu0 %v5121_v59, %s5666_s26  ;;  %v1882_v15 = vrot.slane %v1881_v7, 4  ;;  %v1962_v16 = vshll.u32 %v4426_v53, 16  ;;  %v1968_v17 = vshll.u32 %v4427_v4, 16  ;;  %v1973_v18 = vshrl.u32 %v4428_v9, 16  ;;  %s7026_s26 = sld [smem:[#allocation23_spill]] }
 0x1b6   : > { %v1896_v20 = vrot.slane %v1895_v11, 4  ;;  %v1961_v21 = vrot.slane %v1959_v13, 4  ;;  %v1976_v22 = vshll.u32 %v4428_v9, 16  ;;  %v1982_v23 = vshll.u32 %v4429_v12, 16  ;;  %v2022_v11 = vld [vmem:[#allocation2 + $0x88] sm:$0x1e] }
 0x1b7   : > { %2002 = vrot.lane.b32.xlu1 %v4432_v10, %s5667_s29  ;;  %v1887_v24 = vsel %vm6262_vm3, %v1882_v15, %v1886_v63  ;;  %v1964_v25 = vrot.slane %v1962_v16, 5  ;;  %v1970_v26 = vrot.slane %v1968_v17, 5  ;;  %v1975_v27 = vrot.slane %v1973_v18, 4  ;;  %v2017_v16 = vld [vmem:[#allocation2 + $0x60] sm:$0x1e] }
 0x1b8   : > { %v1901_v28 = vsel %vm6262_vm3, %v1896_v20, %v1900_v8  ;;  %v1978_v29 = vrot.slane %v1976_v22, 5  ;;  %v1984_v30 = vrot.slane %v1982_v23, 5  ;;  %v4418_v31 = vcombine.low %v1828_v14, %v1828_v14 }
 0x1b9   : > { %v4430_v32 = vcombine.low %v1887_v24, %v1901_v28  ;;  %v1965_v33 = vor.u32 %v1964_v25, %v1961_v21  ;;  %v4419_v34 = vcombine.high %v1828_v14, %v1828_v14  ;;  %v4420_v35 = vcombine.low %v1829_v19, %v1829_v19  ;;  %v2018_v21 = vld [vmem:[#allocation2 + $0x68] sm:$0x1e] }
 0x1ba   : > { %v1979_v37 = vor.u32 %v1978_v29, %v1975_v27  ;;  %v4421_v38 = vcombine.high %v1829_v19, %v1829_v19  ;;  %v1903_v39 = vshrl.u32 %v4418_v31, 16  ;;  %v1906_v40 = vshll.u32 %v4418_v31, 16 }
 0x1bb   : > { %1998 = vrot.lane.b32.xlu0 %v4430_v32, %s5667_s29  ;;  %v1966_v41 = vrot.slane %v1965_v33, 4  ;;  %v1912_v42 = vshll.u32 %v4419_v34, 16  ;;  %v1917_v43 = vshrl.u32 %v4420_v35, 16  ;;  %v1920_v44 = vshll.u32 %v4420_v35, 16  ;;  %v2175_v35 = vld [vmem:[#allocation2 + $0x80] sm:$0x1f] }
 0x1bc   : > { %v1980_v46 = vrot.slane %v1979_v37, 4  ;;  %v1905_v47 = vrot.slane %v1903_v39, 4  ;;  %v1908_v48 = vrot.slane %v1906_v40, 5  ;;  %v1926_v49 = vshll.u32 %v4421_v38, 16 }
 0x1bd   : > { %v1971_v50 = vsel %vm6262_vm3, %v1966_v41, %v1970_v26  ;;  %v1914_v51 = vrot.slane %v1912_v42, 5  ;;  %v1919_v52 = vrot.slane %v1917_v43, 4  ;;  %v1922_v53 = vrot.slane %v1920_v44, 5  ;;  %v2174_v26 = vld [vmem:[#allocation2 + $0x78] sm:$0x1f] }
 0x1be   : > { %v1985_v55 = vsel %vm6262_vm3, %v1980_v46, %v1984_v30  ;;  %v1909_v56 = vor.u32 %v1908_v48, %v1905_v47  ;;  %v1928_v57 = vrot.slane %v1926_v49, 5  ;;  %v4442_v58 = vcombine.low %v2019_v36, %v2019_v36  ;;  %v2170_v49 = vld [vmem:[#allocation2 + $0x58] sm:$0x1f] }
 0x1bf   : > { %v4433_v59 = vcombine.low %v1971_v50, %v1985_v55  ;;  %v1923_v60 = vor.u32 %v1922_v53, %v1919_v52  ;;  %v4443_v62 = vcombine.high %v2019_v36, %v2019_v36  ;;  %v4444_v63 = vcombine.low %v2020_v45, %v2020_v45  ;;  %v6406_v36 = vpop.permute.xlu1 %1079 }
 0x1c0   : > { %v1910_v1 = vrot.slane %v1909_v56, 4  ;;  %v4445_v2 = vcombine.high %v2020_v45, %v2020_v45  ;;  %v4454_v3 = vrot.slane %v4442_v58, 9  ;;  %v4434_v4 = vcombine.low %v2015_v54, %v2015_v54  ;;  %v5154_v56 = vld [vmem:[#allocation2 + $0x78] ss:$8 sps:$4 sm:$0xff]  }
 0x1c1   : > { %2004 = vrot.lane.b32.xlu1 %v4433_v59, %s5667_s29  ;;  %v1924_v7 = vrot.slane %v1923_v60, 4  ;;  %v2081_v8 = vrot.slane %v4443_v62, 5  ;;  %v4455_v9 = vrot.slane %v4444_v63, 9  ;;  %v4435_v10 = vcombine.high %v2015_v54, %v2015_v54  ;;  %v6416_v59 = vpop.permute.xlu0 %1075 }
 0x1c2   : > { %v1915_v12 = vsel %vm6262_vm3, %v1910_v1, %v1914_v51  ;;  %v2085_v13 = vrot.slane %v4445_v2, 5  ;;  %v4436_v14 = vcombine.low %v2016_v0, %v2016_v0  ;;  %v4437_v15 = vcombine.high %v2016_v0, %v2016_v0 }
 0x1c3   : > { %v1929_v17 = vsel %vm6262_vm3, %v1924_v7, %v1928_v57  ;;  %v2082_v18 = vsel %vm6236_vm0, %v4454_v3, %v2081_v8  ;;  %v4450_v19 = vrot.slane %v4434_v4, 9  ;;  %v2065_v20 = vrot.slane %v4435_v10, 5  ;;  %v6420_v1 = vpop.permute.xlu1 %1081  ;;  %v2171_v7 = vld [vmem:[#allocation2 + $0x60] sm:$0x1f] }
 0x1c4   : > { %v4431_v22 = vcombine.low %v1915_v12, %v1929_v17  ;;  %v2086_v23 = vsel %vm6236_vm0, %v4455_v9, %v2085_v13  ;;  %v4451_v24 = vrot.slane %v4436_v14, 9  ;;  %v2069_v25 = vrot.slane %v4437_v15, 5  ;;  %v2176_v12 = vld [vmem:[#allocation2 + $0x88] sm:$0x1f]  ;;  %v5155_v13 = vld [vmem:[#allocation2 + $0x58] ss:$8 sps:$4 sm:$0xff]  }
 0x1c5   : > { %v4460_v27 = vcombine.low %v2082_v18, %v2086_v23  ;;  %v2066_v28 = vsel %vm6236_vm0, %v4450_v19, %v2065_v20  ;;  %v4446_v29 = vcombine.low %v2021_v5, %v2021_v5  ;;  %v4447_v30 = vcombine.high %v2021_v5, %v2021_v5 }
 0x1c6   : > { %2000 = vrot.lane.b32.xlu0 %v4431_v22, %s5667_s29  ;;  %v2070_v31 = vsel %vm6236_vm0, %v4451_v24, %v2069_v25  ;;  %v4448_v32 = vcombine.low %v2022_v11, %v2022_v11  ;;  %v4449_v33 = vcombine.high %v2022_v11, %v2022_v11  ;;  %v4438_v34 = vcombine.low %v2017_v16, %v2017_v16  ;;  %v5156_v22 = vld [vmem:[#allocation2 + $0x88] ss:$8 sps:$4 sm:$0xff]   ;;  %s4741_s29 = sshll.u32 %s7025_s21, 3 }
 0x1c7   : > { %2111 = vrot.lane.b32.xlu1 %v4460_v27, %s5668_s7  ;;  %v4458_v37 = vcombine.low %v2066_v28, %v2070_v31  ;;  %v4456_v38 = vrot.slane %v4446_v29, 9  ;;  %v2089_v39 = vrot.slane %v4447_v30, 5  ;;  %v4439_v40 = vcombine.high %v2017_v16, %v2017_v16  ;;  %v6425_v27 = vpop.permute.xlu0 %1077 }
 0x1c8   : > { %v4457_v41 = vrot.slane %v4448_v32, 9  ;;  %v2093_v42 = vrot.slane %v4449_v33, 5  ;;  %v4440_v43 = vcombine.low %v2018_v21, %v2018_v21  ;;  %v4441_v44 = vcombine.high %v2018_v21, %v2018_v21  ;;  %v2177_v32 = vld [vmem:[#allocation2 + $0x90] sm:$0x1f] }
 0x1c9   : > { %v2090_v45 = vsel %vm6236_vm0, %v4456_v38, %v2089_v39  ;;  %v4452_v46 = vrot.slane %v4438_v34, 9  ;;  %v2073_v47 = vrot.slane %v4439_v40, 5  ;;  %v4474_v48 = vcombine.low %v2174_v26, %v2174_v26  ;;  %v5157_v34 = vld [vmem:[#allocation2 + $0x68] ss:$8 sps:$4 sm:$0xff]  }
 0x1ca   : > { %2107 = vrot.lane.b32.xlu0 %v4458_v37, %s5668_s7  ;;  %v2094_v50 = vsel %vm6236_vm0, %v4457_v41, %v2093_v42  ;;  %v4453_v51 = vrot.slane %v4440_v43, 9  ;;  %v2077_v52 = vrot.slane %v4441_v44, 5  ;;  %v4475_v53 = vcombine.high %v2174_v26, %v2174_v26 }
 0x1cb   : > { %v4461_v54 = vcombine.low %v2090_v45, %v2094_v50  ;;  %v2074_v55 = vsel %vm6236_vm0, %v4452_v46, %v2073_v47  ;;  %v4476_v57 = vcombine.low %v2175_v35, %v2175_v35  ;;  %v4477_v58 = vcombine.high %v2175_v35, %v2175_v35 }
 0x1cc   : > { %v2078_v60 = vsel %vm6236_vm0, %v4453_v51, %v2077_v52  ;;  %v2275_v62 = vshrl.u32 %v4474_v48, 16  ;;  %v2278_v63 = vshll.u32 %v4474_v48, 16  ;;  %v2284_v0 = vshll.u32 %v4475_v53, 16 }
 0x1cd   : > { %2113 = vrot.lane.b32.xlu1 %v4461_v54, %s5668_s7  ;;  %v4459_v2 = vcombine.low %v2074_v55, %v2078_v60  ;;  %v2289_v3 = vshrl.u32 %v4476_v57, 16  ;;  %v2292_v4 = vshll.u32 %v4476_v57, 16  ;;  %v2298_v5 = vshll.u32 %v4477_v58, 16  ;;  %v6427_v33 = vpop.permute.xlu1 %965 }
 0x1ce   : > { %v2277_v8 = vrot.slane %v2275_v62, 4  ;;  %v2280_v9 = vrot.slane %v2278_v63, 5  ;;  %v2286_v10 = vrot.slane %v2284_v0, 5  ;;  %v4466_v11 = vcombine.low %v2170_v49, %v2170_v49  ;;  %v2173_v0 = vld [vmem:[#allocation2 + $0x70] sm:$0x1f] }
 0x1cf   : > { %2109 = vrot.lane.b32.xlu0 %v4459_v2, %s5668_s7  ;;  %v2291_v14 = vrot.slane %v2289_v3, 4  ;;  %v2294_v15 = vrot.slane %v2292_v4, 5  ;;  %v2300_v16 = vrot.slane %v2298_v5, 5  ;;  %v4467_v17 = vcombine.high %v2170_v49, %v2170_v49  ;;  %s4742_s7 = sshll.u32 %s7026_s26, 6 }
 0x1d0   : > { %v2281_v18 = vor.u32 %v2280_v9, %v2277_v8  ;;  %v4468_v19 = vcombine.low %v2171_v7, %v2171_v7  ;;  %v4469_v20 = vcombine.high %v2171_v7, %v2171_v7  ;;  %v2219_v21 = vshrl.u32 %v4466_v11, 16 }
 0x1d1   : > { %2157 = vrot.lane.b32.xlu1 %v5154_v56, %s5669_s12  ;;  %v2295_v23 = vor.u32 %v2294_v15, %v2291_v14  ;;  %v2222_v24 = vshll.u32 %v4466_v11, 16  ;;  %v2228_v25 = vshll.u32 %v4467_v17, 16  ;;  %v4478_v26 = vcombine.low %v2176_v12, %v2176_v12  ;;  %v2172_v56 = vld [vmem:[#allocation2 + $0x68] sm:$0x1f] }
 0x1d2   : > { %v2282_v28 = vrot.slane %v2281_v18, 4  ;;  %v2221_v29 = vrot.slane %v2219_v21, 4  ;;  %v2233_v30 = vshrl.u32 %v4468_v19, 16  ;;  %v2236_v31 = vshll.u32 %v4468_v19, 16  ;;  %v6436_v57 = vpop.permute.xlu0 %963 }
 0x1d3   : > { %2153 = vrot.lane.b32.xlu0 %v5155_v13, %s5669_s12  ;;  %v2296_v35 = vrot.slane %v2295_v23, 4  ;;  %v2224_v37 = vrot.slane %v2222_v24, 5  ;;  %v2230_v38 = vrot.slane %v2228_v25, 5  ;;  %v2242_v39 = vshll.u32 %v4469_v20, 16  ;;  %v2363_v24 = vld [vmem:[#allocation2 + $0x78] sm:$0x1e] }
 0x1d4   : > { %v2287_v40 = vsel %vm6262_vm3, %v2282_v28, %v2286_v10  ;;  %v2235_v41 = vrot.slane %v2233_v30, 4  ;;  %v2238_v42 = vrot.slane %v2236_v31, 5  ;;  %v4479_v43 = vcombine.high %v2176_v12, %v2176_v12 }
 0x1d5   : > { %2159 = vrot.lane.b32.xlu1 %v5156_v22, %s5669_s12  ;;  %v2301_v44 = vsel %vm6262_vm3, %v2296_v35, %v2300_v16  ;;  %v2225_v45 = vor.u32 %v2224_v37, %v2221_v29  ;;  %v2244_v46 = vrot.slane %v2242_v39, 5  ;;  %v4480_v47 = vcombine.low %v2177_v32, %v2177_v32  ;;  %v2359_v39 = vld [vmem:[#allocation2 + $0x58] sm:$0x1e] }
 0x1d6   : > { %v4484_v48 = vcombine.low %v2287_v40, %v2301_v44  ;;  %v2239_v49 = vor.u32 %v2238_v42, %v2235_v41  ;;  %v4481_v50 = vcombine.high %v2177_v32, %v2177_v32  ;;  %v2303_v51 = vshrl.u32 %v4478_v26, 16  ;;  %v2364_v32 = vld [vmem:[#allocation2 + $0x80] sm:$0x1e] }
 0x1d7   : > { %2155 = vrot.lane.b32.xlu0 %v5157_v34, %s5669_s12  ;;  %v2226_v52 = vrot.slane %v2225_v45, 4  ;;  %v2306_v53 = vshll.u32 %v4478_v26, 16  ;;  %v2312_v54 = vshll.u32 %v4479_v43, 16  ;;  %v2317_v55 = vshrl.u32 %v4480_v47, 16  ;;  %s4069_s12 = sadd.s32 %s4742_s7, %s4741_s29 }
 0x1d8   : > { %v2240_v58 = vrot.slane %v2239_v49, 4  ;;  %v2305_v60 = vrot.slane %v2303_v51, 4  ;;  %v2320_v62 = vshll.u32 %v4480_v47, 16  ;;  %v2326_v63 = vshll.u32 %v4481_v50, 16  ;;  %v6438_v2 = vpop.permute.xlu1 %969 }
 0x1d9   : > { %2346 = vrot.lane.b32.xlu1 %v4484_v48, %s5670_s14  ;;  %v2231_v3 = vsel %vm6262_vm3, %v2226_v52, %v2230_v38  ;;  %v2308_v4 = vrot.slane %v2306_v53, 5  ;;  %v2314_v5 = vrot.slane %v2312_v54, 5  ;;  %v2319_v7 = vrot.slane %v2317_v55, 4  ;;  %v2360_v48 = vld [vmem:[#allocation2 + $0x60] sm:$0x1e] }
 0x1da   : > { %v2245_v8 = vsel %vm6262_vm3, %v2240_v58, %v2244_v46  ;;  %v2322_v9 = vrot.slane %v2320_v62, 5  ;;  %v2328_v10 = vrot.slane %v2326_v63, 5  ;;  %v4470_v11 = vcombine.low %v2172_v56, %v2172_v56 }
 0x1db   : > { %v4482_v12 = vcombine.low %v2231_v3, %v2245_v8  ;;  %v2309_v13 = vor.u32 %v2308_v4, %v2305_v60  ;;  %v4471_v14 = vcombine.high %v2172_v56, %v2172_v56  ;;  %v4472_v15 = vcombine.low %v2173_v0, %v2173_v0  ;;  %v2365_v4 = vld [vmem:[#allocation2 + $0x88] sm:$0x1e] }
 0x1dc   : > { %v2323_v16 = vor.u32 %v2322_v9, %v2319_v7  ;;  %v4473_v17 = vcombine.high %v2173_v0, %v2173_v0  ;;  %v2247_v18 = vshrl.u32 %v4470_v11, 16  ;;  %v2250_v19 = vshll.u32 %v4470_v11, 16  ;;  %v6448_v26 = vpop.permute.xlu1 %1125  ;;  %v2361_v11 = vld [vmem:[#allocation2 + $0x68] sm:$0x1e] }
 0x1dd   : > { %2342 = vrot.lane.b32.xlu0 %v4482_v12, %s5670_s14  ;;  %v2310_v20 = vrot.slane %v2309_v13, 4  ;;  %v2256_v21 = vshll.u32 %v4471_v14, 16  ;;  %v2261_v22 = vshrl.u32 %v4472_v15, 16  ;;  %v2264_v23 = vshll.u32 %v4472_v15, 16  ;;  %v6446_v25 = vpop.permute.xlu0 %967 }
 0x1de   : > { %v2324_v28 = vrot.slane %v2323_v16, 4  ;;  %v2249_v29 = vrot.slane %v2247_v18, 4  ;;  %v2252_v30 = vrot.slane %v2250_v19, 5  ;;  %v2270_v31 = vshll.u32 %v4473_v17, 16 }
 0x1df   : > { %v2315_v34 = vsel %vm6262_vm3, %v2310_v20, %v2314_v5  ;;  %v2258_v35 = vrot.slane %v2256_v21, 5  ;;  %v2263_v37 = vrot.slane %v2261_v22, 4  ;;  %v2266_v38 = vrot.slane %v2264_v23, 5  ;;  %v2362_v20 = vld [vmem:[#allocation2 + $0x70] sm:$0x1e] }
 0x1e0   : > { %v2329_v40 = vsel %vm6262_vm3, %v2324_v28, %v2328_v10  ;;  %v2253_v41 = vor.u32 %v2252_v30, %v2249_v29  ;;  %v2272_v42 = vrot.slane %v2270_v31, 5  ;;  %v4494_v43 = vcombine.low %v2363_v24, %v2363_v24  ;;  %v6457_v60 = vpop.permute.xlu1 %1127  ;;  %v2366_v10 = vld [vmem:[#allocation2 + $0x90] sm:$0x1e]  ;;  %v2518_v28 = vld [vmem:[#allocation2 + $0x80] sm:$0x1f] }
 0x1e1   : > { %v4485_v44 = vcombine.low %v2315_v34, %v2329_v40  ;;  %v2267_v45 = vor.u32 %v2266_v38, %v2263_v37  ;;  %v4495_v46 = vcombine.high %v2363_v24, %v2363_v24  ;;  %v4496_v47 = vcombine.low %v2364_v32, %v2364_v32  ;;  %v6454_v53 = vpop.permute.xlu0 %1121 }
 0x1e2   : > { %v2254_v49 = vrot.slane %v2253_v41, 4  ;;  %v4497_v50 = vcombine.high %v2364_v32, %v2364_v32  ;;  %v4506_v51 = vrot.slane %v4494_v43, 9  ;;  %v4486_v52 = vcombine.low %v2359_v39, %v2359_v39  ;;  %v2519_v41 = vld [vmem:[#allocation2 + $0x88] sm:$0x1f] }
 0x1e3   : > { %2348 = vrot.lane.b32.xlu1 %v4485_v44, %s5670_s14  ;;  %v2268_v54 = vrot.slane %v2267_v45, 4  ;;  %v2425_v55 = vrot.slane %v4495_v46, 5  ;;  %v4507_v56 = vrot.slane %v4496_v47, 9  ;;  %v4487_v58 = vcombine.high %v2359_v39, %v2359_v39 }
 0x1e4   : > { %v2259_v62 = vsel %vm6262_vm3, %v2254_v49, %v2258_v35  ;;  %v2429_v63 = vrot.slane %v4497_v50, 5  ;;  %v4488_v0 = vcombine.low %v2360_v48, %v2360_v48  ;;  %v4489_v3 = vcombine.high %v2360_v48, %v2360_v48  ;;  %v6475_v35 = vpop.permute.xlu1 %1314 }
 0x1e5   : > { %v2273_v5 = vsel %vm6262_vm3, %v2268_v54, %v2272_v42  ;;  %v2426_v7 = vsel %vm6236_vm0, %v4506_v51, %v2425_v55  ;;  %v4502_v8 = vrot.slane %v4486_v52, 9  ;;  %v2409_v9 = vrot.slane %v4487_v58, 5  ;;  %v6472_v29 = vpop.permute.xlu0 %1123  ;;  %v2514_v55 = vld [vmem:[#allocation2 + $0x60] sm:$0x1f] }
 0x1e6   : > { %v4483_v12 = vcombine.low %v2259_v62, %v2273_v5  ;;  %v2430_v13 = vsel %vm6236_vm0, %v4507_v56, %v2429_v63  ;;  %v4503_v14 = vrot.slane %v4488_v0, 9  ;;  %v2413_v15 = vrot.slane %v4489_v3, 5  ;;  %v5190_v58 = vld [vmem:[#allocation2 + $0x80] ss:$8 sps:$4 sm:$0xff]  }
 0x1e7   : > { %v4512_v16 = vcombine.low %v2426_v7, %v2430_v13  ;;  %v2410_v17 = vsel %vm6236_vm0, %v4502_v8, %v2409_v9  ;;  %v4498_v18 = vcombine.low %v2365_v4, %v2365_v4  ;;  %v4499_v19 = vcombine.high %v2365_v4, %v2365_v4  ;;  %v2515_v9 = vld [vmem:[#allocation2 + $0x68] sm:$0x1f] }
 0x1e8   : > { %2344 = vrot.lane.b32.xlu0 %v4483_v12, %s5670_s14  ;;  %v2414_v21 = vsel %vm6236_vm0, %v4503_v14, %v2413_v15  ;;  %v4500_v22 = vcombine.low %v2366_v10, %v2366_v10  ;;  %v4501_v23 = vcombine.high %v2366_v10, %v2366_v10  ;;  %v4490_v24 = vcombine.low %v2361_v11, %v2361_v11 }
 0x1e9   : > { %2455 = vrot.lane.b32.xlu1 %v4512_v16, %s5671_s15  ;;  %v4510_v30 = vcombine.low %v2410_v17, %v2414_v21  ;;  %v4508_v31 = vrot.slane %v4498_v18, 9  ;;  %v2433_v32 = vrot.slane %v4499_v19, 5  ;;  %v4491_v34 = vcombine.high %v2361_v11, %v2361_v11  ;;  %v6486_v3 = vpop.permute.xlu0 %1310  ;;  %v5191_v11 = vld [vmem:[#allocation2 + $0x60] ss:$8 sps:$4 sm:$0xff]   ;;  %v5192_v16 = vld [vmem:[#allocation2 + $0x90] ss:$8 sps:$4 sm:$0xff]  }
 0x1ea   : > { %v4509_v37 = vrot.slane %v4500_v22, 9  ;;  %v2437_v38 = vrot.slane %v4501_v23, 5  ;;  %v4492_v39 = vcombine.low %v2362_v20, %v2362_v20  ;;  %v4493_v40 = vcombine.high %v2362_v20, %v2362_v20  ;;  %v5202_v21 = vld [vmem:[#allocation2 + $0x10] ss:$8 sps:$4 sm:$0xff]  }
 0x1eb   : > { %v2434_v42 = vsel %vm6236_vm0, %v4508_v31, %v2433_v32  ;;  %v4504_v43 = vrot.slane %v4490_v24, 9  ;;  %v2417_v44 = vrot.slane %v4491_v34, 5  ;;  %v4526_v45 = vcombine.low %v2518_v28, %v2518_v28  ;;  %v5212_v31 = vld [vmem:[#allocation2 + $0x30] ss:$8 sps:$4 sm:$0xff]  }
 0x1ec   : > { %2451 = vrot.lane.b32.xlu0 %v4510_v30, %s5671_s15  ;;  %v2438_v46 = vsel %vm6236_vm0, %v4509_v37, %v2437_v38  ;;  %v4505_v47 = vrot.slane %v4492_v39, 9  ;;  %v2421_v48 = vrot.slane %v4493_v40, 5  ;;  %v4527_v49 = vcombine.high %v2518_v28, %v2518_v28  ;;  %v5203_v30 = vld [vmem:[#allocation2] ss:$8 sps:$4 sm:$0xff]   ;;  %v5193_v32 = vld [vmem:[#allocation2 + $0x70] ss:$8 sps:$4 sm:$0xff]  }
 0x1ed   : > { %v4513_v50 = vcombine.low %v2434_v42, %v2438_v46  ;;  %v2418_v51 = vsel %vm6236_vm0, %v4504_v43, %v2417_v44  ;;  %v4528_v52 = vcombine.low %v2519_v41, %v2519_v41  ;;  %v4529_v54 = vcombine.high %v2519_v41, %v2519_v41  ;;  %v5213_v39 = vld [vmem:[#allocation2 + $0x20] ss:$8 sps:$4 sm:$0xff]   ;;  %v2520_v44 = vld [vmem:[#allocation2 + $0x90] sm:$0x1f] }
 0x1ee   : > { %v2422_v56 = vsel %vm6236_vm0, %v4505_v47, %v2421_v48  ;;  %v2619_v62 = vshrl.u32 %v4526_v45, 16  ;;  %v2622_v63 = vshll.u32 %v4526_v45, 16  ;;  %v2628_v0 = vshll.u32 %v4527_v49, 16 }
 0x1ef   : > { %2457 = vrot.lane.b32.xlu1 %v4513_v50, %s5671_s15  ;;  %v4511_v4 = vcombine.low %v2418_v51, %v2422_v56  ;;  %v2633_v5 = vshrl.u32 %v4528_v52, 16  ;;  %v2636_v7 = vshll.u32 %v4528_v52, 16  ;;  %v2642_v8 = vshll.u32 %v4529_v54, 16  ;;  %v6489_v10 = vpop.permute.xlu1 %1316  ;;  %v2521_v50 = vld [vmem:[#allocation2 + $0x98] sm:$0x1f] }
 0x1f0   : > { %v2621_v12 = vrot.slane %v2619_v62, 4  ;;  %v2624_v13 = vrot.slane %v2622_v63, 5  ;;  %v2630_v14 = vrot.slane %v2628_v0, 5  ;;  %v4518_v15 = vcombine.low %v2514_v55, %v2514_v55 }
 0x1f1   : > { %2453 = vrot.lane.b32.xlu0 %v4511_v4, %s5671_s15  ;;  %v2635_v17 = vrot.slane %v2633_v5, 4  ;;  %v2638_v18 = vrot.slane %v2636_v7, 5  ;;  %v2644_v19 = vrot.slane %v2642_v8, 5  ;;  %v4519_v20 = vcombine.high %v2514_v55, %v2514_v55  ;;  %s4743_s15 = sshll.u32 %s4069_s12, 6 }
 0x1f2   : > { %v2625_v22 = vor.u32 %v2624_v13, %v2621_v12  ;;  %v4520_v23 = vcombine.low %v2515_v9, %v2515_v9  ;;  %v4521_v24 = vcombine.high %v2515_v9, %v2515_v9  ;;  %v2563_v28 = vshrl.u32 %v4518_v15, 16 }
 0x1f3   : > { %2501 = vrot.lane.b32.xlu1 %v5190_v58, %s5672_s10  ;;  %v2639_v34 = vor.u32 %v2638_v18, %v2635_v17  ;;  %v2566_v37 = vshll.u32 %v4518_v15, 16  ;;  %v2572_v38 = vshll.u32 %v4519_v20, 16  ;;  %vm975_vm4 = vcmask 64544  }
 0x1f4   : > { %v2626_v40 = vrot.slane %v2625_v22, 4  ;;  %v2565_v41 = vrot.slane %v2563_v28, 4  ;;  %v2577_v42 = vshrl.u32 %v4520_v23, 16  ;;  %v2580_v43 = vshll.u32 %v4520_v23, 16  ;;  %v6493_v45 = vpop.permute.xlu0 %1312  ;;  %v2707_v28 = vld [vmem:[#allocation2 + $0x80] sm:$0x1e] }
 0x1f5   : > { %2497 = vrot.lane.b32.xlu0 %v5191_v11, %s5672_s10  ;;  %v2640_v46 = vrot.slane %v2639_v34, 4  ;;  %v2568_v47 = vrot.slane %v2566_v37, 5  ;;  %v2574_v48 = vrot.slane %v2572_v38, 5  ;;  %v2586_v49 = vshll.u32 %v4521_v24, 16  ;;  %v6496_v51 = vpop.permute.xlu1 %1423 }
 0x1f6   : > { %v2631_v52 = vsel %vm6262_vm3, %v2626_v40, %v2630_v14  ;;  %v2579_v54 = vrot.slane %v2577_v42, 4  ;;  %v2582_v55 = vrot.slane %v2580_v43, 5  ;;  %vm783_vm5 = vcmask 31744  }
 0x1f7   : > { %2503 = vrot.lane.b32.xlu1 %v5192_v16, %s5672_s10  ;;  %v2645_v56 = vsel %vm6262_vm3, %v2640_v46, %v2644_v19  ;;  %v2569_v58 = vor.u32 %v2568_v47, %v2565_v41  ;;  %v2588_v62 = vrot.slane %v2586_v49, 5  ;;  %785 = vst.msk [vmem:[#allocation3 + $0x8] sm:$0xff] %vm783_vm5, %v5202_v21  ;;  %784 = vst.msk [vmem:[#allocation3] sm:$0xff] %vm783_vm5, %v5203_v30  ;;  %v2516_v16 = vld [vmem:[#allocation2 + $0x70] sm:$0x1f]  ;;  %vm1087_vm6 = vcmask 97344  }
 0x1f8   : > { %v4530_v63 = vcombine.low %v2520_v44, %v2520_v44  ;;  %787 = vst.msk [vmem:[#allocation3 + $0x18] sm:$0xff] %vm783_vm5, %v5212_v31  ;;  %786 = vst.msk [vmem:[#allocation3 + $0x10] sm:$0xff] %vm783_vm5, %v5213_v39  ;;  %v4536_v0 = vcombine.low %v2631_v52, %v2645_v56  ;;  %v2583_v4 = vor.u32 %v2582_v55, %v2579_v54  ;;  %v6511_v8 = vpop.permute.xlu0 %1419  ;;  %v2517_v19 = vld [vmem:[#allocation2 + $0x78] sm:$0x1f]  ;;  %vm1133_vm7 = vcmask 130144  }
 0x1f9   : > { %977 = vst.msk [vmem:[#allocation3 + $0x8] sm:$0xff] %vm975_vm4, %v6427_v33  ;;  %976 = vst.msk [vmem:[#allocation3] sm:$0xff] %vm975_vm4, %v6436_v57  ;;  %v4531_v5 = vcombine.high %v2520_v44, %v2520_v44  ;;  %v4532_v7 = vcombine.low %v2521_v50, %v2521_v50  ;;  %2499 = vrot.lane.b32.xlu0 %v5193_v32, %s5672_s10  ;;  %v2570_v9 = vrot.slane %v2569_v58, 4  ;;  %vm1322_vm8 = vcmask 162944   ;;  %s4072_s10 = sshll.u32 %s6086_s28, 4  ;;  %s6843_s10 = int_to_ptr.vmem [resolvable:$true] %s4072_s10 }
 0x1fa   : > { %979 = vst.msk [vmem:[#allocation3 + $0x18] sm:$0xff] %vm975_vm4, %v6438_v2  ;;  %978 = vst.msk [vmem:[#allocation3 + $0x10] sm:$0xff] %vm975_vm4, %v6446_v25  ;;  %v4533_v11 = vcombine.high %v2521_v50, %v2521_v50  ;;  %v2647_v12 = vshrl.u32 %v4530_v63, 16  ;;  %v2650_v13 = vshll.u32 %v4530_v63, 16  ;;  %v2584_v33 = vrot.slane %v2583_v4, 4 }
 0x1fb   : > { %v2656_v14 = vshll.u32 %v4531_v5, 16  ;;  %v2661_v15 = vshrl.u32 %v4532_v7, 16  ;;  %v2664_v57 = vshll.u32 %v4532_v7, 16  ;;  %2690 = vrot.lane.b32.xlu1 %v4536_v0, %s5673_s0  ;;  %v2575_v2 = vsel %vm6262_vm3, %v2570_v9, %v2574_v48  ;;  %v6517_v20 = vpop.permute.xlu1 %1425  ;;  %v2703_v7 = vld [vmem:[#allocation2 + $0x60] sm:$0x1e]  ;;  %1090 = vst.msk [vmem:[#allocation3 + $0x10] sm:$0xff] %vm1087_vm6, %v6406_v36 }
 0x1fc   : > { %v2649_v25 = vrot.slane %v2647_v12, 4  ;;  %v2652_v17 = vrot.slane %v2650_v13, 5  ;;  %v2670_v18 = vshll.u32 %v4533_v11, 16  ;;  %v2589_v21 = vsel %vm6262_vm3, %v2584_v33, %v2588_v62  ;;  %v2708_v62 = vld [vmem:[#allocation2 + $0x88] sm:$0x1e]  ;;  %1088 = vst.msk [vmem:[#allocation3] sm:$0xff] %vm1087_vm6, %v6416_v59 }
 0x1fd   : > { %v2658_v22 = vrot.slane %v2656_v14, 5  ;;  %v2663_v23 = vrot.slane %v2661_v15, 4  ;;  %v2666_v24 = vrot.slane %v2664_v57, 5  ;;  %v4534_v30 = vcombine.low %v2575_v2, %v2589_v21  ;;  %v6521_v41 = vpop.permute.xlu0 %1421  ;;  %v2704_v33 = vld [vmem:[#allocation2 + $0x68] sm:$0x1e]  ;;  %1089 = vst.msk [vmem:[#allocation3 + $0x8] sm:$0xff] %vm1087_vm6, %v6425_v27 }
 0x1fe   : > { %v2653_v31 = vor.u32 %v2652_v17, %v2649_v25  ;;  %v2672_v32 = vrot.slane %v2670_v18, 5  ;;  %v4522_v34 = vcombine.low %v2516_v16, %v2516_v16  ;;  %v4523_v38 = vcombine.high %v2516_v16, %v2516_v16  ;;  %1091 = vst.msk [vmem:[#allocation3 + $0x18] sm:$0xff] %vm1087_vm6, %v6420_v1  ;;  %v2862_v1 = vld [vmem:[#allocation2 + $0xc0] sm:$0x1f] }
 0x1ff   : > { %v2667_v37 = vor.u32 %v2666_v24, %v2663_v23  ;;  %v4524_v39 = vcombine.low %v2517_v19, %v2517_v19  ;;  %v4525_v40 = vcombine.high %v2517_v19, %v2517_v19  ;;  %2686 = vrot.lane.b32.xlu0 %v4534_v30, %s5673_s0  ;;  %v4546_v46 = vcombine.low %v2707_v28, %v2707_v28  ;;  %v6524_v47 = vpop.permute.xlu1 %1469 }
 0x200   : > { %v2654_v42 = vrot.slane %v2653_v31, 4  ;;  %v2591_v43 = vshrl.u32 %v4522_v34, 16  ;;  %v2594_v44 = vshll.u32 %v4522_v34, 16  ;;  %v2600_v49 = vshll.u32 %v4523_v38, 16  ;;  %1136 = vst.msk [vmem:[#allocation3 + $0x10] sm:$0xff] %vm1133_vm7, %v6448_v26  ;;  %1134 = vst.msk [vmem:[#allocation3] sm:$0xff] %vm1133_vm7, %v6454_v53 }
 0x201   : > { %v2668_v48 = vrot.slane %v2667_v37, 4  ;;  %v2605_v50 = vshrl.u32 %v4524_v39, 16  ;;  %v2608_v52 = vshll.u32 %v4524_v39, 16  ;;  %v2614_v58 = vshll.u32 %v4525_v40, 16  ;;  %v6530_v2 = vpop.permute.xlu0 %1465  ;;  %v2709_v37 = vld [vmem:[#allocation2 + $0x90] sm:$0x1e] }
 0x202   : > { %v2659_v54 = vsel %vm6262_vm3, %v2654_v42, %v2658_v22  ;;  %v2593_v55 = vrot.slane %v2591_v43, 4  ;;  %v2596_v56 = vrot.slane %v2594_v44, 5  ;;  %v2602_v0 = vrot.slane %v2600_v49, 5  ;;  %v2710_v43 = vld [vmem:[#allocation2 + $0x98] sm:$0x1e]  ;;  %1137 = vst.msk [vmem:[#allocation3 + $0x18] sm:$0xff] %vm1133_vm7, %v6457_v60 }
 0x203   : > { %v2673_v63 = vsel %vm6262_vm3, %v2668_v48, %v2672_v32  ;;  %v2607_v4 = vrot.slane %v2605_v50, 4  ;;  %v2610_v5 = vrot.slane %v2608_v52, 5  ;;  %v2616_v12 = vrot.slane %v2614_v58, 5  ;;  %v6533_v21 = vpop.permute.xlu1 %1471  ;;  %v2705_v49 = vld [vmem:[#allocation2 + $0x70] sm:$0x1e]  ;;  %1135 = vst.msk [vmem:[#allocation3 + $0x8] sm:$0xff] %vm1133_vm7, %v6472_v29 }
 0x204   : > { %v4537_v9 = vcombine.low %v2659_v54, %v2673_v63  ;;  %v2597_v11 = vor.u32 %v2596_v56, %v2593_v55  ;;  %v4547_v13 = vcombine.high %v2707_v28, %v2707_v28  ;;  %v4548_v15 = vcombine.low %v2708_v62, %v2708_v62  ;;  %v2706_v55 = vld [vmem:[#allocation2 + $0x78] sm:$0x1e]  ;;  %1325 = vst.msk [vmem:[#allocation3 + $0x10] sm:$0xff] %vm1322_vm8, %v6475_v35 }
 0x205   : > { %v2611_v14 = vor.u32 %v2610_v5, %v2607_v4  ;;  %v4549_v57 = vcombine.high %v2708_v62, %v2708_v62  ;;  %v4558_v16 = vrot.slane %v4546_v46, 9  ;;  %v4538_v18 = vcombine.low %v2703_v7, %v2703_v7  ;;  %v6549_v56 = vpop.permute.xlu0 %1467  ;;  %1323 = vst.msk [vmem:[#allocation3] sm:$0xff] %vm1322_vm8, %v6486_v3  ;;  %1326 = vst.msk [vmem:[#allocation3 + $0x18] sm:$0xff] %vm1322_vm8, %v6489_v10  ;;  %v2863_v5 = vld [vmem:[#allocation2 + $0xc8] sm:$0x1f] }
 0x206   : > { %2692 = vrot.lane.b32.xlu1 %v4537_v9, %s5673_s0  ;;  %v2598_v25 = vrot.slane %v2597_v11, 4  ;;  %v2769_v17 = vrot.slane %v4547_v13, 5  ;;  %v4539_v19 = vcombine.high %v2703_v7, %v2703_v7  ;;  %v4559_v23 = vrot.slane %v4548_v15, 9  ;;  %1324 = vst.msk [vmem:[#allocation3 + $0x8] sm:$0xff] %vm1322_vm8, %v6493_v45 }
 0x207   : > { %v2612_v22 = vrot.slane %v2611_v14, 4  ;;  %v2773_v24 = vrot.slane %v4549_v57, 5  ;;  %v4540_v30 = vcombine.low %v2704_v33, %v2704_v33  ;;  %v4541_v32 = vcombine.high %v2704_v33, %v2704_v33  ;;  %v6563_v27 = vpop.permute.xlu1 %1658  ;;  %v5230_v14 = vld [vmem:[#allocation2 + $0xc0] ss:$8 sps:$4 sm:$0xff]  }
 0x208   : > { %v2603_v28 = vsel %vm6262_vm3, %v2598_v25, %v2602_v0  ;;  %v2770_v31 = vsel %vm6236_vm0, %v4558_v16, %v2769_v17  ;;  %v4554_v34 = vrot.slane %v4538_v18, 9  ;;  %v2753_v40 = vrot.slane %v4539_v19, 5 }
 0x209   : > { %v2617_v38 = vsel %vm6262_vm3, %v2612_v22, %v2616_v12  ;;  %v2774_v39 = vsel %vm6236_vm0, %v4559_v23, %v2773_v24  ;;  %v4555_v42 = vrot.slane %v4540_v30, 9  ;;  %v2757_v48 = vrot.slane %v4541_v32, 5  ;;  %v2858_v22 = vld [vmem:[#allocation2 + $0xa0] sm:$0x1f]  ;;  %v2859_v32 = vld [vmem:[#allocation2 + $0xa8] sm:$0x1f] }
 0x20a   : > { %v4535_v44 = vcombine.low %v2603_v28, %v2617_v38  ;;  %v4564_v46 = vcombine.low %v2770_v31, %v2774_v39  ;;  %v2754_v50 = vsel %vm6236_vm0, %v4554_v34, %v2753_v40  ;;  %v4550_v52 = vcombine.low %v2709_v37, %v2709_v37 }
 0x20b   : > { %v4551_v54 = vcombine.high %v2709_v37, %v2709_v37  ;;  %v2758_v58 = vsel %vm6236_vm0, %v4555_v42, %v2757_v48  ;;  %v4552_v36 = vcombine.low %v2710_v43, %v2710_v43  ;;  %v4553_v59 = vcombine.high %v2710_v43, %v2710_v43  ;;  %v6574_v16 = vpop.permute.xlu0 %1654 }
 0x20c   : > { %2688 = vrot.lane.b32.xlu0 %v4535_v44, %s5673_s0  ;;  %2799 = vrot.lane.b32.xlu1 %v4564_v46, %s5674_s17  ;;  %v4562_v62 = vcombine.low %v2754_v50, %v2758_v58  ;;  %v4560_v63 = vrot.slane %v4550_v52, 9  ;;  %v4542_v4 = vcombine.low %v2705_v49, %v2705_v49  ;;  %v4543_v60 = vcombine.high %v2705_v49, %v2705_v49  ;;  %v5231_v46 = vld [vmem:[#allocation2 + $0xa0] ss:$8 sps:$4 sm:$0xff]  }
 0x20d   : > { %v2777_v0 = vrot.slane %v4551_v54, 5  ;;  %v4561_v26 = vrot.slane %v4552_v36, 9  ;;  %v2781_v53 = vrot.slane %v4553_v59, 5  ;;  %v4544_v29 = vcombine.low %v2706_v55, %v2706_v55  ;;  %v5232_v54 = vld [vmem:[#allocation2 + $0xd0] ss:$8 sps:$4 sm:$0xff]  }
 0x20e   : > { %v4545_v9 = vcombine.high %v2706_v55, %v2706_v55  ;;  %v4556_v11 = vrot.slane %v4542_v4, 9  ;;  %v4578_v12 = vcombine.low %v2862_v1, %v2862_v1  ;;  %v2761_v3 = vrot.slane %v4543_v60, 5  ;;  %v2864_v4 = vld [vmem:[#allocation2 + $0xd0] sm:$0x1f] }
 0x20f   : > { %v2778_v7 = vsel %vm6236_vm0, %v4560_v63, %v2777_v0  ;;  %v2782_v35 = vsel %vm6236_vm0, %v4561_v26, %v2781_v53  ;;  %v4557_v10 = vrot.slane %v4544_v29, 9  ;;  %v4579_v13 = vcombine.high %v2862_v1, %v2862_v1 }
 0x210   : > { %2795 = vrot.lane.b32.xlu0 %v4562_v62, %s5674_s17  ;;  %v4565_v45 = vcombine.low %v2778_v7, %v2782_v35  ;;  %v2765_v33 = vrot.slane %v4545_v9, 5  ;;  %v4580_v15 = vcombine.low %v2863_v5, %v2863_v5  ;;  %v4581_v57 = vcombine.high %v2863_v5, %v2863_v5  ;;  %v2865_v7 = vld [vmem:[#allocation2 + $0xd8] sm:$0x1f] }
 0x211   : > { %v2762_v25 = vsel %vm6236_vm0, %v4556_v11, %v2761_v3  ;;  %v2963_v17 = vshrl.u32 %v4578_v12, 16  ;;  %v2966_v18 = vshll.u32 %v4578_v12, 16  ;;  %v2972_v19 = vshll.u32 %v4579_v13, 16  ;;  %v6578_v23 = vpop.permute.xlu1 %1660  ;;  %v5233_v9 = vld [vmem:[#allocation2 + $0xb0] ss:$8 sps:$4 sm:$0xff]  }
 0x212   : > { %2801 = vrot.lane.b32.xlu1 %v4565_v45, %s5674_s17  ;;  %v2766_v24 = vsel %vm6236_vm0, %v4557_v10, %v2765_v33  ;;  %v2977_v30 = vshrl.u32 %v4580_v15, 16  ;;  %v2980_v28 = vshll.u32 %v4580_v15, 16  ;;  %v2986_v31 = vshll.u32 %v4581_v57, 16 }
 0x213   : > { %v4563_v34 = vcombine.low %v2762_v25, %v2766_v24  ;;  %v2965_v37 = vrot.slane %v2963_v17, 4  ;;  %v2968_v38 = vrot.slane %v2966_v18, 5  ;;  %v2974_v39 = vrot.slane %v2972_v19, 5 }
 0x214   : > { %v2979_v40 = vrot.slane %v2977_v30, 4  ;;  %v2982_v42 = vrot.slane %v2980_v28, 5  ;;  %v2988_v43 = vrot.slane %v2986_v31, 5  ;;  %v4570_v44 = vcombine.low %v2858_v22, %v2858_v22  ;;  %v2860_v30 = vld [vmem:[#allocation2 + $0xb0] sm:$0x1f] }
 0x215   : > { %2797 = vrot.lane.b32.xlu0 %v4563_v34, %s5674_s17  ;;  %v2969_v48 = vor.u32 %v2968_v38, %v2965_v37  ;;  %v4571_v49 = vcombine.high %v2858_v22, %v2858_v22  ;;  %v4572_v50 = vcombine.low %v2859_v32, %v2859_v32  ;;  %v4573_v52 = vcombine.high %v2859_v32, %v2859_v32  ;;  %v2861_v38 = vld [vmem:[#allocation2 + $0xb8] sm:$0x1f]  ;;  %s7028_s17 = sld [smem:[#allocation27_spill]] }
 0x216   : > { %2845 = vrot.lane.b32.xlu1 %v5230_v14, %s5675_s5  ;;  %v2983_v55 = vor.u32 %v2982_v42, %v2979_v40  ;;  %v2907_v58 = vshrl.u32 %v4570_v44, 16  ;;  %v2910_v36 = vshll.u32 %v4570_v44, 16  ;;  %vm1431_vm9 = vcmask 195744   ;;  %v6585_v59 = vpop.permute.xlu0 %1656  ;;  %v3051_v44 = vld [vmem:[#allocation2 + $0xc0] sm:$0x1e] }
 0x217   : > { %v2970_v1 = vrot.slane %v2969_v48, 4  ;;  %v2916_v62 = vshll.u32 %v4571_v49, 16  ;;  %v2921_v63 = vshrl.u32 %v4572_v50, 16  ;;  %v2924_v0 = vshll.u32 %v4572_v50, 16  ;;  %1434 = vst.msk [vmem:[#allocation3 + $0x10] sm:$0xff] %vm1431_vm9, %v6496_v51  ;;  %1432 = vst.msk [vmem:[#allocation3] sm:$0xff] %vm1431_vm9, %v6511_v8  ;;  %v6591_v26 = vpop.permute.xlu1 %1767 }
 0x218   : > { %1435 = vst.msk [vmem:[#allocation3 + $0x18] sm:$0xff] %vm1431_vm9, %v6517_v20  ;;  %1433 = vst.msk [vmem:[#allocation3 + $0x8] sm:$0xff] %vm1431_vm9, %v6521_v41  ;;  %v2984_v53 = vrot.slane %v2983_v55, 4  ;;  %v2909_v60 = vrot.slane %v2907_v58, 4  ;;  %v2912_v29 = vrot.slane %v2910_v36, 5  ;;  %v2930_v5 = vshll.u32 %v4573_v52, 16 }
 0x219   : > { %2841 = vrot.lane.b32.xlu0 %v5231_v46, %s5675_s5  ;;  %v2975_v51 = vsel %vm6262_vm3, %v2970_v1, %v2974_v39  ;;  %v2918_v11 = vrot.slane %v2916_v62, 5  ;;  %v2923_v8 = vrot.slane %v2921_v63, 4  ;;  %v2926_v12 = vrot.slane %v2924_v0, 5 }
 0x21a   : > { %2847 = vrot.lane.b32.xlu1 %v5232_v54, %s5675_s5  ;;  %v2989_v20 = vsel %vm6262_vm3, %v2984_v53, %v2988_v43  ;;  %v2913_v41 = vor.u32 %v2912_v29, %v2909_v60  ;;  %v2932_v35 = vrot.slane %v2930_v5, 5  ;;  %v4582_v3 = vcombine.low %v2864_v4, %v2864_v4  ;;  %v6599_v10 = vpop.permute.xlu0 %1763 }
 0x21b   : > { %v4588_v13 = vcombine.low %v2975_v51, %v2989_v20  ;;  %v2927_v45 = vor.u32 %v2926_v12, %v2923_v8  ;;  %v4583_v33 = vcombine.high %v2864_v4, %v2864_v4  ;;  %v4584_v14 = vcombine.low %v2865_v7, %v2865_v7  ;;  %v3052_v8 = vld [vmem:[#allocation2 + $0xc8] sm:$0x1e]  ;;  %p7031_p13 = scmp.ne.s32.totalorder %s7028_s17, 0 }
 0x21c   : > { %v2914_v15 = vrot.slane %v2913_v41, 4  ;;  %v4585_v57 = vcombine.high %v2865_v7, %v2865_v7  ;;  %v2991_v25 = vshrl.u32 %v4582_v3, 16  ;;  %v2994_v17 = vshll.u32 %v4582_v3, 16  ;;  %v3047_v3 = vld [vmem:[#allocation2 + $0xa0] sm:$0x1e] }
 0x21d   : > { %2843 = vrot.lane.b32.xlu0 %v5233_v9, %s5675_s5  ;;  %v2928_v18 = vrot.slane %v2927_v45, 4  ;;  %v3000_v19 = vshll.u32 %v4583_v33, 16  ;;  %v3005_v22 = vshrl.u32 %v4584_v14, 16  ;;  %v3008_v24 = vshll.u32 %v4584_v14, 16  ;;  %v6602_v28 = vpop.permute.xlu1 %1769 }
 0x21e   : > { %3034 = vrot.lane.b32.xlu1 %v4588_v13, %s5676_s11  ;;  %v2919_v31 = vsel %vm6262_vm3, %v2914_v15, %v2918_v11  ;;  %v2993_v32 = vrot.slane %v2991_v25, 4  ;;  %v2996_v34 = vrot.slane %v2994_v17, 5  ;;  %v3014_v37 = vshll.u32 %v4585_v57, 16  ;;  %v3048_v15 = vld [vmem:[#allocation2 + $0xa8] sm:$0x1e] }
 0x21f   : > { %v2933_v39 = vsel %vm6262_vm3, %v2928_v18, %v2932_v35  ;;  %v3002_v40 = vrot.slane %v3000_v19, 5  ;;  %v3007_v42 = vrot.slane %v3005_v22, 4  ;;  %v3010_v43 = vrot.slane %v3008_v24, 5  ;;  %v6609_v52 = vpop.permute.xlu0 %1765 }
 0x220   : > { %v4586_v46 = vcombine.low %v2919_v31, %v2933_v39  ;;  %v2997_v48 = vor.u32 %v2996_v34, %v2993_v32  ;;  %v3016_v49 = vrot.slane %v3014_v37, 5  ;;  %v4574_v50 = vcombine.low %v2860_v30, %v2860_v30 }
 0x221   : > { %v3011_v54 = vor.u32 %v3010_v43, %v3007_v42  ;;  %v4575_v55 = vcombine.high %v2860_v30, %v2860_v30  ;;  %v4576_v58 = vcombine.low %v2861_v38, %v2861_v38  ;;  %v4577_v36 = vcombine.high %v2861_v38, %v2861_v38  ;;  %v6611_v1 = vpop.permute.xlu1 %1813 }
 0x222   : > { %3030 = vrot.lane.b32.xlu0 %v4586_v46, %s5676_s11  ;;  %v2998_v62 = vrot.slane %v2997_v48, 4  ;;  %v2935_v63 = vshrl.u32 %v4574_v50, 16  ;;  %v2938_v0 = vshll.u32 %v4574_v50, 16  ;;  %v4598_v4 = vcombine.low %v3051_v44, %v3051_v44  ;;  %v3053_v46 = vld [vmem:[#allocation2 + $0xd0] sm:$0x1e] }
 0x223   : > { %v3012_v53 = vrot.slane %v3011_v54, 4  ;;  %v2944_v60 = vshll.u32 %v4575_v55, 16  ;;  %v2949_v29 = vshrl.u32 %v4576_v58, 16  ;;  %v2952_v5 = vshll.u32 %v4576_v58, 16  ;;  %v6618_v57 = vpop.permute.xlu0 %1809  ;;  %v3054_v48 = vld [vmem:[#allocation2 + $0xd8] sm:$0x1e] }
 0x224   : > { %v3003_v7 = vsel %vm6262_vm3, %v2998_v62, %v3002_v40  ;;  %v2937_v9 = vrot.slane %v2935_v63, 4  ;;  %v2940_v51 = vrot.slane %v2938_v0, 5  ;;  %v2958_v11 = vshll.u32 %v4577_v36, 16  ;;  %v3049_v58 = vld [vmem:[#allocation2 + $0xb0] sm:$0x1e] }
 0x225   : > { %v3017_v12 = vsel %vm6262_vm3, %v3012_v53, %v3016_v49  ;;  %v2946_v20 = vrot.slane %v2944_v60, 5  ;;  %v2951_v41 = vrot.slane %v2949_v29, 4  ;;  %v2954_v35 = vrot.slane %v2952_v5, 5  ;;  %v6620_v22 = vpop.permute.xlu1 %1815  ;;  %v3050_v5 = vld [vmem:[#allocation2 + $0xb8] sm:$0x1e] }
 0x226   : > { %v4589_v13 = vcombine.low %v3003_v7, %v3017_v12  ;;  %v2941_v45 = vor.u32 %v2940_v51, %v2937_v9  ;;  %v2960_v33 = vrot.slane %v2958_v11, 5  ;;  %v4599_v14 = vcombine.high %v3051_v44, %v3051_v44  ;;  %v3206_v51 = vld [vmem:[#allocation2 + $0xc8] sm:$0x1f] }
 0x227   : > { %v2955_v25 = vor.u32 %v2954_v35, %v2951_v41  ;;  %v4600_v17 = vcombine.low %v3052_v8, %v3052_v8  ;;  %v4601_v18 = vcombine.high %v3052_v8, %v3052_v8  ;;  %v4610_v19 = vrot.slane %v4598_v4, 9  ;;  %v6631_v0 = vpop.permute.xlu0 %1811 }
 0x228   : > { %3036 = vrot.lane.b32.xlu1 %v4589_v13, %s5676_s11  ;;  %v2942_v24 = vrot.slane %v2941_v45, 4  ;;  %v3113_v30 = vrot.slane %v4599_v14, 5  ;;  %v4590_v31 = vcombine.low %v3047_v3, %v3047_v3  ;;  %v4591_v32 = vcombine.high %v3047_v3, %v3047_v3  ;;  %v3207_v3 = vld [vmem:[#allocation2 + $0xd0] sm:$0x1f] }
 0x229   : > { %v2956_v34 = vrot.slane %v2955_v25, 4  ;;  %v4611_v37 = vrot.slane %v4600_v17, 9  ;;  %v3117_v38 = vrot.slane %v4601_v18, 5  ;;  %v4592_v39 = vcombine.low %v3048_v15, %v3048_v15  ;;  %v6639_v7 = vpop.permute.xlu1 %2002 }
 0x22a   : > { %v2947_v40 = vsel %vm6262_vm3, %v2942_v24, %v2946_v20  ;;  %v3114_v42 = vsel %vm6236_vm0, %v4610_v19, %v3113_v30  ;;  %v4593_v43 = vcombine.high %v3048_v15, %v3048_v15  ;;  %v4606_v44 = vrot.slane %v4590_v31, 9  ;;  %v3202_v24 = vld [vmem:[#allocation2 + $0xa8] sm:$0x1f] }
 0x22b   : > { %v2961_v49 = vsel %vm6262_vm3, %v2956_v34, %v2960_v33  ;;  %v3118_v50 = vsel %vm6236_vm0, %v4611_v37, %v3117_v38  ;;  %v3097_v54 = vrot.slane %v4591_v32, 5  ;;  %v4607_v55 = vrot.slane %v4592_v39, 9  ;;  %v3203_v38 = vld [vmem:[#allocation2 + $0xb0] sm:$0x1f] }
 0x22c   : > { %v4587_v36 = vcombine.low %v2947_v40, %v2961_v49  ;;  %v4616_v62 = vcombine.low %v3114_v42, %v3118_v50  ;;  %v3101_v63 = vrot.slane %v4593_v43, 5  ;;  %vm1477_vm10 = vcmask 228544   ;;  %v5266_v40 = vld [vmem:[#allocation2 + $0xc8] ss:$8 sps:$4 sm:$0xff]  }
 0x22d   : > { %v3098_v4 = vsel %vm6236_vm0, %v4606_v44, %v3097_v54  ;;  %1480 = vst.msk [vmem:[#allocation3 + $0x10] sm:$0xff] %vm1477_vm10, %v6524_v47  ;;  %1478 = vst.msk [vmem:[#allocation3] sm:$0xff] %vm1477_vm10, %v6530_v2  ;;  %v4602_v53 = vcombine.low %v3053_v46, %v3053_v46  ;;  %v4603_v60 = vcombine.high %v3053_v46, %v3053_v46  ;;  %vm1666_vm11 = vcmask 261344   ;;  %v5267_v54 = vld [vmem:[#allocation2 + $0xa8] ss:$8 sps:$4 sm:$0xff]  }
 0x22e   : > { %v4604_v29 = vcombine.low %v3054_v48, %v3054_v48  ;;  %1481 = vst.msk [vmem:[#allocation3 + $0x18] sm:$0xff] %vm1477_vm10, %v6533_v21  ;;  %1479 = vst.msk [vmem:[#allocation3 + $0x8] sm:$0xff] %vm1477_vm10, %v6549_v56  ;;  %3032 = vrot.lane.b32.xlu0 %v4587_v36, %s5676_s11  ;;  %3143 = vrot.lane.b32.xlu1 %v4616_v62, %s5677_s27  ;;  %v3102_v47 = vsel %vm6236_vm0, %v4607_v55, %v3101_v63  ;;  %v5268_v63 = vld [vmem:[#allocation2 + $0xd8] ss:$8 sps:$4 sm:$0xff]   ;;  %vm1775_vm12 = vcmask 294144   ;;  %vm1821_vm13 = vcmask 326944  }
 0x22f   : > { %v4605_v9 = vcombine.high %v3054_v48, %v3054_v48  ;;  %v4594_v2 = vcombine.low %v3049_v58, %v3049_v58  ;;  %v4614_v11 = vcombine.low %v3098_v4, %v3102_v47  ;;  %v4612_v8 = vrot.slane %v4602_v53, 9  ;;  %1669 = vst.msk [vmem:[#allocation3 + $0x10] sm:$0xff] %vm1666_vm11, %v6563_v27  ;;  %1667 = vst.msk [vmem:[#allocation3] sm:$0xff] %vm1666_vm11, %v6574_v16  ;;  %v5269_v47 = vld [vmem:[#allocation2 + $0xb8] ss:$8 sps:$4 sm:$0xff]  }
 0x230   : > { %v3121_v12 = vrot.slane %v4603_v60, 5  ;;  %v4613_v21 = vrot.slane %v4604_v29, 9  ;;  %1670 = vst.msk [vmem:[#allocation3 + $0x18] sm:$0xff] %vm1666_vm11, %v6578_v23  ;;  %1668 = vst.msk [vmem:[#allocation3 + $0x8] sm:$0xff] %vm1666_vm11, %v6585_v59  ;;  %v4595_v20 = vcombine.high %v3049_v58, %v3049_v58  ;;  %v4596_v41 = vcombine.low %v3050_v5, %v3050_v5  ;;  %v6654_v59 = vpop.permute.xlu0 %1998 }
 0x231   : > { %v3125_v56 = vrot.slane %v4605_v9, 5  ;;  %v4597_v35 = vcombine.high %v3050_v5, %v3050_v5  ;;  %v4608_v45 = vrot.slane %v4594_v2, 9  ;;  %v4630_v33 = vcombine.low %v3206_v51, %v3206_v51  ;;  %1778 = vst.msk [vmem:[#allocation3 + $0x10] sm:$0xff] %vm1775_vm12, %v6591_v26  ;;  %1776 = vst.msk [vmem:[#allocation3] sm:$0xff] %vm1775_vm12, %v6599_v10 }
 0x232   : > { %v3122_v13 = vsel %vm6236_vm0, %v4612_v8, %v3121_v12  ;;  %v4631_v14 = vcombine.high %v3206_v51, %v3206_v51  ;;  %3139 = vrot.lane.b32.xlu0 %v4614_v11, %s5677_s27  ;;  %v3105_v16 = vrot.slane %v4595_v20, 5  ;;  %v4609_v23 = vrot.slane %v4596_v41, 9  ;;  %v3208_v41 = vld [vmem:[#allocation2 + $0xd8] sm:$0x1f]  ;;  %1779 = vst.msk [vmem:[#allocation3 + $0x18] sm:$0xff] %vm1775_vm12, %v6602_v28  ;;  %1777 = vst.msk [vmem:[#allocation3 + $0x8] sm:$0xff] %vm1775_vm12, %v6609_v52 }
 0x233   : > { %v3126_v27 = vsel %vm6236_vm0, %v4613_v21, %v3125_v56  ;;  %v3109_v15 = vrot.slane %v4597_v35, 5  ;;  %v4632_v17 = vcombine.low %v3207_v3, %v3207_v3  ;;  %v4633_v18 = vcombine.high %v3207_v3, %v3207_v3  ;;  %v6656_v30 = vpop.permute.xlu1 %2004  ;;  %v3205_v28 = vld [vmem:[#allocation2 + $0xc0] sm:$0x1f]  ;;  %1824 = vst.msk [vmem:[#allocation3 + $0x10] sm:$0xff] %vm1821_vm13, %v6611_v1  ;;  %1822 = vst.msk [vmem:[#allocation3] sm:$0xff] %vm1821_vm13, %v6618_v57  ;;  %v5339_v57 = vld [vmem:[#allocation9 + $0x8] sm:$0xff]  }
 0x234   : > { %v4617_v25 = vcombine.low %v3122_v13, %v3126_v27  ;;  %v3307_v19 = vshrl.u32 %v4630_v33, 16  ;;  %v3106_v31 = vsel %vm6236_vm0, %v4608_v45, %v3105_v16  ;;  %v3310_v34 = vshll.u32 %v4630_v33, 16  ;;  %v3209_v33 = vld [vmem:[#allocation2 + $0xe0] sm:$0x1f]  ;;  %1825 = vst.msk [vmem:[#allocation3 + $0x18] sm:$0xff] %vm1821_vm13, %v6620_v22  ;;  %1823 = vst.msk [vmem:[#allocation3 + $0x8] sm:$0xff] %vm1821_vm13, %v6631_v0 }
 0x235   : > { %v3110_v32 = vsel %vm6236_vm0, %v4609_v23, %v3109_v15  ;;  %v3316_v37 = vshll.u32 %v4631_v14, 16  ;;  %v3321_v43 = vshrl.u32 %v4632_v17, 16  ;;  %v3324_v44 = vshll.u32 %v4632_v17, 16  ;;  %v3550_v1 = vld [vmem:[#allocation2 + $0xd0] sm:$0x1f] }
 0x236   : > { %3145 = vrot.lane.b32.xlu1 %v4617_v25, %s5677_s27  ;;  %v4615_v39 = vcombine.low %v3106_v31, %v3110_v32  ;;  %v3309_v42 = vrot.slane %v3307_v19, 4  ;;  %v3312_v46 = vrot.slane %v3310_v34, 5  ;;  %v3330_v49 = vshll.u32 %v4633_v18, 16  ;;  %v3551_v22 = vld [vmem:[#allocation2 + $0xd8] sm:$0x1f] }
 0x237   : > { %v3318_v48 = vrot.slane %v3316_v37, 5  ;;  %v4622_v50 = vcombine.low %v3202_v24, %v3202_v24  ;;  %v3323_v55 = vrot.slane %v3321_v43, 4  ;;  %v3326_v58 = vrot.slane %v3324_v44, 5 }
 0x238   : > { %3141 = vrot.lane.b32.xlu0 %v4615_v39, %s5677_s27  ;;  %v4623_v36 = vcombine.high %v3202_v24, %v3202_v24  ;;  %v4624_v62 = vcombine.low %v3203_v38, %v3203_v38  ;;  %v3313_v4 = vor.u32 %v3312_v46, %v3309_v42  ;;  %v3332_v53 = vrot.slane %v3330_v49, 5  ;;  %v6664_v5 = vpop.permute.xlu0 %2000  ;;  %s7029_s27 = sld [smem:[#allocation36_spill]] }
 0x239   : > { %v4625_v60 = vcombine.high %v3203_v38, %v3203_v38  ;;  %v3251_v29 = vshrl.u32 %v4622_v50, 16  ;;  %v3327_v9 = vor.u32 %v3326_v58, %v3323_v55  ;;  %v3254_v2 = vshll.u32 %v4622_v50, 16  ;;  %v6667_v8 = vpop.permute.xlu1 %2111  ;;  %v3395_v50 = vld [vmem:[#allocation2 + $0xc8] sm:$0x1e] }
 0x23a   : > { %3189 = vrot.lane.b32.xlu1 %v5266_v40, %s5678_s16  ;;  %v3260_v51 = vshll.u32 %v4623_v36, 16  ;;  %v3265_v11 = vshrl.u32 %v4624_v62, 16  ;;  %v3314_v12 = vrot.slane %v3313_v4, 4  ;;  %v3268_v56 = vshll.u32 %v4624_v62, 16  ;;  %v3204_v40 = vld [vmem:[#allocation2 + $0xb8] sm:$0x1f] }
 0x23b   : > { %v3253_v21 = vrot.slane %v3251_v29, 4  ;;  %v3274_v20 = vshll.u32 %v4625_v60, 16  ;;  %v3328_v35 = vrot.slane %v3327_v9, 4  ;;  %v3256_v3 = vrot.slane %v3254_v2, 5 }
 0x23c   : > { %3185 = vrot.lane.b32.xlu0 %v5267_v54, %s5678_s16  ;;  %v3262_v13 = vrot.slane %v3260_v51, 5  ;;  %v3267_v45 = vrot.slane %v3265_v11, 4  ;;  %v3319_v14 = vsel %vm6262_vm3, %v3314_v12, %v3318_v48  ;;  %v3270_v27 = vrot.slane %v3268_v56, 5  ;;  %v6672_v23 = vpop.permute.xlu0 %2107 }
 0x23d   : > { %v3276_v16 = vrot.slane %v3274_v20, 5  ;;  %v3333_v15 = vsel %vm6262_vm3, %v3328_v35, %v3332_v53  ;;  %v3257_v25 = vor.u32 %v3256_v3, %v3253_v21  ;;  %v4634_v17 = vcombine.low %v3208_v41, %v3208_v41 }
 0x23e   : > { %3191 = vrot.lane.b32.xlu1 %v5268_v63, %s5678_s16  ;;  %v4635_v18 = vcombine.high %v3208_v41, %v3208_v41  ;;  %v4640_v19 = vcombine.low %v3319_v14, %v3333_v15  ;;  %v3271_v24 = vor.u32 %v3270_v27, %v3267_v45  ;;  %v4636_v31 = vcombine.low %v3209_v33, %v3209_v33 }
 0x23f   : > { %v4637_v32 = vcombine.high %v3209_v33, %v3209_v33  ;;  %v3258_v34 = vrot.slane %v3257_v25, 4  ;;  %v3335_v37 = vshrl.u32 %v4634_v17, 16  ;;  %v3338_v38 = vshll.u32 %v4634_v17, 16  ;;  %v6682_v26 = vpop.permute.xlu1 %2113 }
 0x240   : > { %3187 = vrot.lane.b32.xlu0 %v5269_v47, %s5678_s16  ;;  %v3344_v39 = vshll.u32 %v4635_v18, 16  ;;  %v3272_v10 = vrot.slane %v3271_v24, 4  ;;  %v3349_v42 = vshrl.u32 %v4636_v31, 16  ;;  %v3352_v43 = vshll.u32 %v4636_v31, 16  ;;  %s7030_s16 = smov %s7029_s27 }
 0x241   : > { %v3358_v44 = vshll.u32 %v4637_v32, 16  ;;  %v3263_v52 = vsel %vm6262_vm3, %v3258_v34, %v3262_v13  ;;  %v3337_v46 = vrot.slane %v3335_v37, 4  ;;  %v3340_v48 = vrot.slane %v3338_v38, 5  ;;  %v6689_v62 = vpop.permute.xlu0 %2109  ;;  %v3396_v13 = vld [vmem:[#allocation2 + $0xd0] sm:$0x1e] }
 0x242   : > { %3378 = vrot.lane.b32.xlu1 %v4640_v19, %s5679_s9  ;;  %v3346_v49 = vrot.slane %v3344_v39, 5  ;;  %v3277_v54 = vsel %vm6262_vm3, %v3272_v10, %v3276_v16  ;;  %v3351_v55 = vrot.slane %v3349_v42, 4  ;;  %v3354_v58 = vrot.slane %v3352_v43, 5  ;;  %v3391_v16 = vld [vmem:[#allocation2 + $0xa8] sm:$0x1e] }
 0x243   : > { %v3360_v36 = vrot.slane %v3358_v44, 5  ;;  %v4638_v63 = vcombine.low %v3263_v52, %v3277_v54  ;;  %v3341_v4 = vor.u32 %v3340_v48, %v3337_v46  ;;  %v4626_v53 = vcombine.low %v3204_v40, %v3204_v40  ;;  %v6691_v29 = vpop.permute.xlu1 %2157  ;;  %v3392_v37 = vld [vmem:[#allocation2 + $0xb0] sm:$0x1e] }
 0x244   : > { %v4627_v60 = vcombine.high %v3204_v40, %v3204_v40  ;;  %v3355_v47 = vor.u32 %v3354_v58, %v3351_v55  ;;  %v4628_v9 = vcombine.low %v3205_v28, %v3205_v28  ;;  %v4629_v2 = vcombine.high %v3205_v28, %v3205_v28  ;;  %v3397_v55 = vld [vmem:[#allocation2 + $0xd8] sm:$0x1e] }
 0x245   : > { %v4650_v51 = vcombine.low %v3395_v50, %v3395_v50  ;;  %3374 = vrot.lane.b32.xlu0 %v4638_v63, %s5679_s9  ;;  %v3342_v11 = vrot.slane %v3341_v4, 4  ;;  %v3279_v12 = vshrl.u32 %v4626_v53, 16  ;;  %v3282_v21 = vshll.u32 %v4626_v53, 16  ;;  %v6698_v19 = vpop.permute.xlu0 %2153  ;;  %v3398_v4 = vld [vmem:[#allocation2 + $0xe0] sm:$0x1e]  ;;  %v5338_v53 = vld [vmem:[#allocation9] sm:$0xff]  }
 0x246   : > { %v3288_v56 = vshll.u32 %v4627_v60, 16  ;;  %v3356_v20 = vrot.slane %v3355_v47, 4  ;;  %v3293_v41 = vshrl.u32 %v4628_v9, 16  ;;  %v3296_v35 = vshll.u32 %v4628_v9, 16  ;;  %4767 = vmatprep.subr.bf16.mxu0 %v5338_v53  ;;  %4791 = vmatprep.subr.bf16.mxu1 %v5338_v53 }
 0x247   : > { %v3302_v3 = vshll.u32 %v4629_v2, 16  ;;  %v3347_v45 = vsel %vm6262_vm3, %v3342_v11, %v3346_v49  ;;  %v3281_v33 = vrot.slane %v3279_v12, 4  ;;  %v3284_v14 = vrot.slane %v3282_v21, 5  ;;  %v6700_v38 = vpop.permute.xlu1 %2159  ;;  %4768 = vmatpush3.bf16.msra.mxu0 %v5338_v53  ;;  %4799 = vmatpush3.bf16.msra.mxu1 %v5338_v53 }
 0x248   : > { %v3290_v27 = vrot.slane %v3288_v56, 5  ;;  %v3361_v15 = vsel %vm6262_vm3, %v3356_v20, %v3360_v36  ;;  %v3295_v25 = vrot.slane %v3293_v41, 4  ;;  %v3298_v17 = vrot.slane %v3296_v35, 5  ;;  %4769 = vmatprep.subr.bf16.mxu0 %v5339_v57  ;;  %4792 = vmatprep.subr.bf16.mxu1 %v5339_v57 }
 0x249   : > { %v3304_v18 = vrot.slane %v3302_v3, 5  ;;  %v4641_v24 = vcombine.low %v3347_v45, %v3361_v15  ;;  %v3285_v31 = vor.u32 %v3284_v14, %v3281_v33  ;;  %v4651_v32 = vcombine.high %v3395_v50, %v3395_v50  ;;  %v6711_v11 = vpop.permute.xlu0 %2155  ;;  %v3394_v45 = vld [vmem:[#allocation2 + $0xc0] sm:$0x1e] }
 0x24a   : > { %v4652_v34 = vcombine.low %v3396_v13, %v3396_v13  ;;  %v3299_v39 = vor.u32 %v3298_v17, %v3295_v25  ;;  %v4653_v40 = vcombine.high %v3396_v13, %v3396_v13  ;;  %v4662_v10 = vrot.slane %v4650_v51, 9  ;;  %v3393_v51 = vld [vmem:[#allocation2 + $0xb8] sm:$0x1e] }
 0x24b   : > { %v4642_v42 = vcombine.low %v3391_v16, %v3391_v16  ;;  %3380 = vrot.lane.b32.xlu1 %v4641_v24, %s5679_s9  ;;  %v3286_v43 = vrot.slane %v3285_v31, 4  ;;  %v3457_v44 = vrot.slane %v4651_v32, 5  ;;  %v4643_v52 = vcombine.high %v3391_v16, %v3391_v16  ;;  %v6715_v20 = vpop.permute.xlu1 %2346  ;;  %4770 = vmatpush3.bf16.msra.mxu0 %v5339_v57 }
 0x24c   : > { %v4663_v28 = vrot.slane %v4652_v34, 9  ;;  %v3300_v46 = vrot.slane %v3299_v39, 4  ;;  %v3461_v48 = vrot.slane %v4653_v40, 5  ;;  %v4644_v49 = vcombine.low %v3392_v37, %v3392_v37  ;;  %4800 = vmatpush3.bf16.msra.mxu1 %v5339_v57  ;;  %v5304_v57 = vld [vmem:[#allocation2 + $0xe0] ss:$8 sps:$4 sm:$0xff]  }
 0x24d   : > { %v4645_v54 = vcombine.high %v3392_v37, %v3392_v37  ;;  %v3291_v50 = vsel %vm6262_vm3, %v3286_v43, %v3290_v27  ;;  %v3458_v58 = vsel %vm6236_vm0, %v4662_v10, %v3457_v44  ;;  %v4658_v36 = vrot.slane %v4642_v42, 9  ;;  %v5340_v42 = vld [vmem:[#allocation9 + $0x10] sm:$0xff]  }
 0x24e   : > { %v3441_v63 = vrot.slane %v4643_v52, 5  ;;  %v3305_v60 = vsel %vm6262_vm3, %v3300_v46, %v3304_v18  ;;  %v3462_v47 = vsel %vm6236_vm0, %v4663_v28, %v3461_v48  ;;  %v4659_v9 = vrot.slane %v4644_v49, 9  ;;  %v3546_v46 = vld [vmem:[#allocation2 + $0xb0] sm:$0x1f]  ;;  %4771 = vmatprep.subr.bf16.mxu0 %v5340_v42  ;;  %4793 = vmatprep.subr.bf16.mxu1 %v5340_v42 }
 0x24f   : > { %v3445_v2 = vrot.slane %v4645_v54, 5  ;;  %v4639_v12 = vcombine.low %v3291_v50, %v3305_v60  ;;  %v4668_v21 = vcombine.low %v3458_v58, %v3462_v47  ;;  %v4654_v35 = vcombine.low %v3397_v55, %v3397_v55  ;;  %v6731_v39 = vpop.permute.xlu0 %2342  ;;  %v3547_v50 = vld [vmem:[#allocation2 + $0xb8] sm:$0x1f]  ;;  %4772 = vmatpush3.bf16.msra.mxu0 %v5340_v42 }
 0x250   : > { %v3442_v56 = vsel %vm6236_vm0, %v4658_v36, %v3441_v63  ;;  %v4655_v3 = vcombine.high %v3397_v55, %v3397_v55  ;;  %v4656_v13 = vcombine.low %v3398_v4, %v3398_v4  ;;  %v4657_v14 = vcombine.high %v3398_v4, %v3398_v4  ;;  %v5302_v36 = vld [vmem:[#allocation2 + $0xd0] ss:$8 sps:$4 sm:$0xff]   ;;  %4801 = vmatpush3.bf16.msra.mxu1 %v5340_v42 }
 0x251   : > { %v3446_v41 = vsel %vm6236_vm0, %v4659_v9, %v3445_v2  ;;  %3376 = vrot.lane.b32.xlu0 %v4639_v12, %s5679_s9  ;;  %3487 = vrot.lane.b32.xlu1 %v4668_v21, %s5680_s18  ;;  %v4646_v27 = vcombine.low %v3393_v51, %v3393_v51  ;;  %vm2010_vm14 = vcmask 359744   ;;  %v4664_v16 = vrot.slane %v4654_v35, 9  ;;  %s6841_s9 = scalar_lea.hbm %s7029_s27, %s4743_s15 }
 0x252   : > { %v4666_v33 = vcombine.low %v3442_v56, %v3446_v41  ;;  %v3465_v15 = vrot.slane %v4655_v3, 5  ;;  %v4665_v25 = vrot.slane %v4656_v13, 9  ;;  %v4647_v17 = vcombine.high %v3393_v51, %v3393_v51  ;;  %2013 = vst.msk [vmem:[#allocation3 + $0x10] sm:$0xff] %vm2010_vm14, %v6639_v7  ;;  %2011 = vst.msk [vmem:[#allocation3] sm:$0xff] %vm2010_vm14, %v6654_v59  ;;  %v5303_v51 = vld [vmem:[#allocation2 + $0xb0] ss:$8 sps:$4 sm:$0xff]  }
 0x253   : > { %2014 = vst.msk [vmem:[#allocation3 + $0x18] sm:$0xff] %vm2010_vm14, %v6656_v30  ;;  %2012 = vst.msk [vmem:[#allocation3 + $0x8] sm:$0xff] %vm2010_vm14, %v6664_v5  ;;  %v3469_v0 = vrot.slane %v4657_v14, 5  ;;  %v4648_v18 = vcombine.low %v3394_v45, %v3394_v45  ;;  %v4649_v24 = vcombine.high %v3394_v45, %v3394_v45  ;;  %v4660_v31 = vrot.slane %v4646_v27, 9  ;;  %v5341_v3 = vld [vmem:[#allocation9 + $0x18] sm:$0xff]  }
 0x254   : > { %v3466_v32 = vsel %vm6236_vm0, %v4664_v16, %v3465_v15  ;;  %v3449_v34 = vrot.slane %v4647_v17, 5  ;;  %v4682_v37 = vcombine.low %v3550_v1, %v3550_v1  ;;  %v4683_v7 = vcombine.high %v3550_v1, %v3550_v1  ;;  %v3552_v27 = vld [vmem:[#allocation2 + $0xe0] sm:$0x1f]  ;;  %4773 = vmatprep.subr.bf16.mxu0 %v5341_v3  ;;  %4794 = vmatprep.subr.bf16.mxu1 %v5341_v3 }
 0x255   : > { %3483 = vrot.lane.b32.xlu0 %v4666_v33, %s5680_s18  ;;  %v3470_v59 = vsel %vm6236_vm0, %v4665_v25, %v3469_v0  ;;  %v4661_v30 = vrot.slane %v4648_v18, 9  ;;  %v3453_v5 = vrot.slane %v4649_v24, 5  ;;  %v4684_v40 = vcombine.low %v3551_v22, %v3551_v22  ;;  %v6736_v10 = vpop.permute.xlu1 %2348  ;;  %4774 = vmatpush3.bf16.msra.mxu0 %v5341_v3 }
 0x256   : > { %v4669_v43 = vcombine.low %v3466_v32, %v3470_v59  ;;  %v3450_v44 = vsel %vm6236_vm0, %v4660_v31, %v3449_v34  ;;  %v4685_v28 = vcombine.high %v3551_v22, %v3551_v22  ;;  %v3651_v52 = vshrl.u32 %v4682_v37, 16  ;;  %v3553_v31 = vld [vmem:[#allocation2 + $0xe8] sm:$0x1f]  ;;  %4802 = vmatpush3.bf16.msra.mxu1 %v5341_v3 }
 0x257   : > { %v3454_v48 = vsel %vm6236_vm0, %v4661_v30, %v3453_v5  ;;  %v3654_v49 = vshll.u32 %v4682_v37, 16  ;;  %v3660_v54 = vshll.u32 %v4683_v7, 16  ;;  %v3665_v55 = vshrl.u32 %v4684_v40, 16  ;;  %v5305_v32 = vld [vmem:[#allocation2 + $0xc0] ss:$8 sps:$4 sm:$0xff]  }
 0x258   : > { %3489 = vrot.lane.b32.xlu1 %v4669_v43, %s5680_s18  ;;  %v4667_v58 = vcombine.low %v3450_v44, %v3454_v48  ;;  %v3653_v63 = vrot.slane %v3651_v52, 4  ;;  %v3668_v4 = vshll.u32 %v4684_v40, 16  ;;  %v3674_v53 = vshll.u32 %v4685_v28, 16 }
 0x259   : > { %v3656_v60 = vrot.slane %v3654_v49, 5  ;;  %v3662_v47 = vrot.slane %v3660_v54, 5  ;;  %v3667_v9 = vrot.slane %v3665_v55, 4  ;;  %v4674_v2 = vcombine.low %v3546_v46, %v3546_v46 }
 0x25a   : > { %3485 = vrot.lane.b32.xlu0 %v4667_v58, %s5680_s18  ;;  %v3670_v12 = vrot.slane %v3668_v4, 5  ;;  %v3676_v21 = vrot.slane %v3674_v53, 5  ;;  %v4675_v56 = vcombine.high %v3546_v46, %v3546_v46  ;;  %v4676_v41 = vcombine.low %v3547_v50, %v3547_v50  ;;  %v6744_v35 = vpop.permute.xlu0 %2344  ;;  %s6851_s18 = scalar_lea.sflag [#allocation6], %s346_s2 }
 0x25b   : > { %v3657_v13 = vor.u32 %v3656_v60, %v3653_v63  ;;  %v4677_v45 = vcombine.high %v3547_v50, %v3547_v50  ;;  %v3595_v33 = vshrl.u32 %v4674_v2, 16  ;;  %v3598_v14 = vshll.u32 %v4674_v2, 16  ;;  %v6746_v1 = vpop.permute.xlu1 %2455  ;;  %v3548_v63 = vld [vmem:[#allocation2 + $0xc0] sm:$0x1f] }
 0x25c   : > { %3533 = vrot.lane.b32.xlu1 %v5302_v36, %s5681_s13  ;;  %v3671_v16 = vor.u32 %v3670_v12, %v3667_v9  ;;  %v3604_v15 = vshll.u32 %v4675_v56, 16  ;;  %v3609_v25 = vshrl.u32 %v4676_v41, 16  ;;  %v3612_v17 = vshll.u32 %v4676_v41, 16 }
 0x25d   : > { %v3658_v22 = vrot.slane %v3657_v13, 4  ;;  %v3597_v0 = vrot.slane %v3595_v33, 4  ;;  %v3600_v18 = vrot.slane %v3598_v14, 5  ;;  %v3618_v24 = vshll.u32 %v4677_v45, 16 }
 0x25e   : > { %3529 = vrot.lane.b32.xlu0 %v5303_v51, %s5681_s13  ;;  %v3672_v34 = vrot.slane %v3671_v16, 4  ;;  %v3606_v37 = vrot.slane %v3604_v15, 5  ;;  %v3611_v7 = vrot.slane %v3609_v25, 4  ;;  %v3614_v59 = vrot.slane %v3612_v17, 5  ;;  %v6752_v42 = vpop.permute.xlu0 %2451  ;;  %v3739_v51 = vld [vmem:[#allocation2 + $0xd0] sm:$0x1e] }
 0x25f   : > { %v3663_v30 = vsel %vm6262_vm3, %v3658_v22, %v3662_v47  ;;  %v3601_v5 = vor.u32 %v3600_v18, %v3597_v0  ;;  %v3620_v40 = vrot.slane %v3618_v24, 5  ;;  %vm2119_vm15 = vcmask 392544  }
 0x260   : > { %3535 = vrot.lane.b32.xlu1 %v5304_v57, %s5681_s13  ;;  %v3677_v43 = vsel %vm6262_vm3, %v3672_v34, %v3676_v21  ;;  %v3615_v44 = vor.u32 %v3614_v59, %v3611_v7  ;;  %2122 = vst.msk [vmem:[#allocation3 + $0x10] sm:$0xff] %vm2119_vm15, %v6667_v8  ;;  %2120 = vst.msk [vmem:[#allocation3] sm:$0xff] %vm2119_vm15, %v6672_v23  ;;  %v4686_v28 = vcombine.low %v3552_v27, %v3552_v27  ;;  %v5342_v57 = vld [vmem:[#allocation9 + $0x20] sm:$0xff]   ;;  %v3740_v7 = vld [vmem:[#allocation2 + $0xd8] sm:$0x1e]  ;;  %vm2165_vm1 = vcmask 425344  }
 0x261   : > { %v4687_v52 = vcombine.high %v3552_v27, %v3552_v27  ;;  %2123 = vst.msk [vmem:[#allocation3 + $0x18] sm:$0xff] %vm2119_vm15, %v6682_v26  ;;  %2121 = vst.msk [vmem:[#allocation3 + $0x8] sm:$0xff] %vm2119_vm15, %v6689_v62  ;;  %v4692_v46 = vcombine.low %v3663_v30, %v3677_v43  ;;  %v3602_v48 = vrot.slane %v3601_v5, 4  ;;  %v4688_v49 = vcombine.low %v3553_v31, %v3553_v31  ;;  %v6761_v55 = vpop.permute.xlu1 %2457  ;;  %v3549_v62 = vld [vmem:[#allocation2 + $0xc8] sm:$0x1f] }
 0x262   : > { %v4689_v54 = vcombine.high %v3553_v31, %v3553_v31  ;;  %3531 = vrot.lane.b32.xlu0 %v5305_v32, %s5681_s13  ;;  %v3616_v50 = vrot.slane %v3615_v44, 4  ;;  %v3679_v58 = vshrl.u32 %v4686_v28, 16  ;;  %v3682_v36 = vshll.u32 %v4686_v28, 16  ;;  %4775 = vmatprep.subr.bf16.mxu0 %v5342_v57  ;;  %v3735_v43 = vld [vmem:[#allocation2 + $0xb0] sm:$0x1e]  ;;  %v5343_v44 = vld [vmem:[#allocation9 + $0x28] sm:$0xff]  }
 0x263   : > { %v3688_v8 = vshll.u32 %v4687_v52, 16  ;;  %v3607_v23 = vsel %vm6262_vm3, %v3602_v48, %v3606_v37  ;;  %v3693_v4 = vshrl.u32 %v4688_v49, 16  ;;  %v3696_v26 = vshll.u32 %v4688_v49, 16  ;;  %v6769_v3 = vpop.permute.xlu0 %2453  ;;  %4795 = vmatprep.subr.bf16.mxu1 %v5342_v57  ;;  %4776 = vmatpush3.bf16.msra.mxu0 %v5342_v57  ;;  %2168 = vst.msk [vmem:[#allocation3 + $0x10] sm:$0xff] %vm2165_vm1, %v6691_v29  ;;  %2166 = vst.msk [vmem:[#allocation3] sm:$0xff] %vm2165_vm1, %v6698_v19  ;;  %s5490_s13 = scalar_lea.vmem %s6843_s10, 512 }
 0x264   : > { %v3702_v53 = vshll.u32 %v4689_v54, 16  ;;  %3722 = vrot.lane.b32.xlu1 %v4692_v46, %s5682_s19  ;;  %v3621_v60 = vsel %vm6262_vm3, %v3616_v50, %v3620_v40  ;;  %v3681_v47 = vrot.slane %v3679_v58, 4  ;;  %v3684_v9 = vrot.slane %v3682_v36, 5  ;;  %4803 = vmatpush3.bf16.msra.mxu1 %v5342_v57  ;;  %v3742_v57 = vld [vmem:[#allocation2 + $0xe8] sm:$0x1e]  ;;  %2169 = vst.msk [vmem:[#allocation3 + $0x18] sm:$0xff] %vm2165_vm1, %v6700_v38  ;;  %p5491_p1 = scmp.ne.s32.totalorder %s6843_s10, %s5490_s13 }
 0x265   : > { %v3690_v2 = vrot.slane %v3688_v8, 5  ;;  %v4690_v12 = vcombine.low %v3607_v23, %v3621_v60  ;;  %v3695_v21 = vrot.slane %v3693_v4, 4  ;;  %v3698_v56 = vrot.slane %v3696_v26, 5  ;;  %v6771_v13 = vpop.permute.xlu1 %2501  ;;  %4777 = vmatprep.subr.bf16.mxu0 %v5343_v44  ;;  %4796 = vmatprep.subr.bf16.mxu1 %v5343_v44  ;;  %2167 = vst.msk [vmem:[#allocation3 + $0x8] sm:$0xff] %vm2165_vm1, %v6711_v11 }
 0x266   : > { %v3704_v41 = vrot.slane %v3702_v53, 5  ;;  %v3685_v45 = vor.u32 %v3684_v9, %v3681_v47  ;;  %v4678_v33 = vcombine.low %v3548_v63, %v3548_v63  ;;  %v4679_v14 = vcombine.high %v3548_v63, %v3548_v63  ;;  %v3736_v63 = vld [vmem:[#allocation2 + $0xb8] sm:$0x1e]  ;;  %p5492_p6 = pnand %p5491_p1, %p7031_p13 }
 0x267   : > { %v4680_v27 = vcombine.low %v3549_v62, %v3549_v62  ;;  %3718 = vrot.lane.b32.xlu0 %v4690_v12, %s5682_s19  ;;  %v3699_v16 = vor.u32 %v3698_v56, %v3695_v21  ;;  %v4681_v15 = vcombine.high %v3549_v62, %v3549_v62  ;;  %v4702_v25 = vcombine.low %v3739_v51, %v3739_v51  ;;  %v6778_v49 = vpop.permute.xlu0 %2497 }
 0x268   : > { %v4703_v17 = vcombine.high %v3739_v51, %v3739_v51  ;;  %v3686_v22 = vrot.slane %v3685_v45, 4  ;;  %v3623_v0 = vshrl.u32 %v4678_v33, 16  ;;  %v3626_v18 = vshll.u32 %v4678_v33, 16  ;;  %4778 = vmatpush3.bf16.msra.mxu0 %v5343_v44  ;;  %4804 = vmatpush3.bf16.msra.mxu1 %v5343_v44  ;;  %p5493_p4 = pneg %p5492_p6 }
 0x269   : > { %v3632_v24 = vshll.u32 %v4679_v14, 16  ;;  %v3700_v31 = vrot.slane %v3699_v16, 4  ;;  %v3637_v32 = vshrl.u32 %v4680_v27, 16  ;;  %v3640_v34 = vshll.u32 %v4680_v27, 16  ;;  %v6780_v54 = vpop.permute.xlu1 %2503  ;;  %v5345_v16 = vld [vmem:[#allocation9 + $0x38] sm:$0xff]  }
 0x26a   : > { %v3646_v37 = vshll.u32 %v4681_v15, 16  ;;  %v3691_v59 = vsel %vm6262_vm3, %v3686_v22, %v3690_v2  ;;  %v3625_v30 = vrot.slane %v3623_v0, 4  ;;  %v3628_v5 = vrot.slane %v3626_v18, 5  ;;  %v5344_v2 = vld [vmem:[#allocation9 + $0x30] sm:$0xff]  }
 0x26b   : > { %v3634_v40 = vrot.slane %v3632_v24, 5  ;;  %v3705_v28 = vsel %vm6262_vm3, %v3700_v31, %v3704_v41  ;;  %v3639_v52 = vrot.slane %v3637_v32, 4  ;;  %v3642_v46 = vrot.slane %v3640_v34, 5  ;;  %v3741_v41 = vld [vmem:[#allocation2 + $0xe0] sm:$0x1e]  ;;  %4779 = vmatprep.subr.bf16.mxu0 %v5344_v2  ;;  %4797 = vmatprep.subr.bf16.mxu1 %v5344_v2  ;;  %v2500_v18 = vpop.permute.xlu0 %2499 }
 0x26c   : > { %v3648_v48 = vrot.slane %v3646_v37, 5  ;;  %v4693_v50 = vcombine.low %v3691_v59, %v3705_v28  ;;  %v3629_v58 = vor.u32 %v3628_v5, %v3625_v30  ;;  %v4704_v36 = vcombine.low %v3740_v7, %v3740_v7  ;;  %v3737_v0 = vld [vmem:[#allocation2 + $0xc0] sm:$0x1e]  ;;  %4780 = vmatpush3.bf16.msra.mxu0 %v5344_v2  ;;  %v3738_v37 = vld [vmem:[#allocation2 + $0xc8] sm:$0x1e]  ;;  %4805 = vmatpush3.bf16.msra.mxu1 %v5344_v2 }
 0x26d   : > { %v4705_v8 = vcombine.high %v3740_v7, %v3740_v7  ;;  %v3643_v23 = vor.u32 %v3642_v46, %v3639_v52  ;;  %v4714_v4 = vrot.slane %v4702_v25, 9  ;;  %v3801_v26 = vrot.slane %v4703_v17, 5  ;;  %v2691_v24 = vpop.permute.xlu1 %2690  ;;  %4781 = vmatprep.subr.bf16.mxu0 %v5345_v16  ;;  %4798 = vmatprep.subr.bf16.mxu1 %v5345_v16 }
 0x26e   : > { %v4694_v53 = vcombine.low %v3735_v43, %v3735_v43  ;;  %3724 = vrot.lane.b32.xlu1 %v4693_v50, %s5682_s19  ;;  %v3630_v62 = vrot.slane %v3629_v58, 4  ;;  %v4715_v60 = vrot.slane %v4704_v36, 9  ;;  %v4695_v9 = vcombine.high %v3735_v43, %v3735_v43 }
 0x26f   : > { %v3805_v47 = vrot.slane %v4705_v8, 5  ;;  %v3644_v51 = vrot.slane %v3643_v23, 4  ;;  %v3802_v12 = vsel %vm6236_vm0, %v4714_v4, %v3801_v26  ;;  %v4696_v21 = vcombine.low %v3736_v63, %v3736_v63 }
 0x270   : > { %v4697_v56 = vcombine.high %v3736_v63, %v3736_v63  ;;  %v3635_v45 = vsel %vm6262_vm3, %v3630_v62, %v3634_v40  ;;  %v4710_v14 = vrot.slane %v4694_v53, 9  ;;  %v3785_v27 = vrot.slane %v4695_v9, 5  ;;  %4782 = vmatpush3.bf16.msra.mxu0 %v5345_v16  ;;  %4806 = vmatpush3.bf16.msra.mxu1 %v5345_v16 }
 0x271   : > { %v3806_v33 = vsel %vm6236_vm0, %v4715_v60, %v3805_v47  ;;  %v3649_v15 = vsel %vm6262_vm3, %v3644_v51, %v3648_v48  ;;  %v4711_v17 = vrot.slane %v4696_v21, 9  ;;  %v4706_v34 = vcombine.low %v3741_v41, %v3741_v41  ;;  %v2687_v36 = vpop.permute.xlu0 %2686 }
 0x272   : > { %v4720_v25 = vcombine.low %v3802_v12, %v3806_v33  ;;  %v3789_v22 = vrot.slane %v4697_v56, 5  ;;  %v4691_v31 = vcombine.low %v3635_v45, %v3649_v15  ;;  %v3786_v32 = vsel %vm6236_vm0, %v4710_v14, %v3785_v27 }
 0x273   : > { %v4707_v7 = vcombine.high %v3741_v41, %v3741_v41  ;;  %v4708_v59 = vcombine.low %v3742_v57, %v3742_v57  ;;  %v4709_v30 = vcombine.high %v3742_v57, %v3742_v57  ;;  %v4716_v40 = vrot.slane %v4706_v34, 9 }
 0x274   : > { %3831 = vrot.lane.b32.xlu1 %v4720_v25, %s5683_s24  ;;  %v3790_v6 = vsel %vm6236_vm0, %v4711_v17, %v3789_v22  ;;  %3720 = vrot.lane.b32.xlu0 %v4691_v31, %s5682_s19  ;;  %v4698_v43 = vcombine.low %v3737_v0, %v3737_v0  ;;  %v4699_v44 = vcombine.high %v3737_v0, %v3737_v0  ;;  %vm2354_vm2 = vcmask 458144   ;;  %s5684_s19 = smov [#allocation13]  }
 0x275   : > { %v4718_v5 = vcombine.low %v3786_v32, %v3790_v6  ;;  %v3809_v28 = vrot.slane %v4707_v7, 5  ;;  %v4717_v52 = vrot.slane %v4708_v59, 9  ;;  %v3813_v46 = vrot.slane %v4709_v30, 5  ;;  %2357 = vst.msk [vmem:[#allocation3 + $0x10] sm:$0xff] %vm2354_vm2, %v6715_v20  ;;  %2355 = vst.msk [vmem:[#allocation3] sm:$0xff] %vm2354_vm2, %v6731_v39 }
 0x276   : > { %v4700_v29 = vcombine.low %v3738_v37, %v3738_v37  ;;  %v4701_v19 = vcombine.high %v3738_v37, %v3738_v37  ;;  %v4712_v48 = vrot.slane %v4698_v43, 9  ;;  %v3793_v50 = vrot.slane %v4699_v44, 5  ;;  %2358 = vst.msk [vmem:[#allocation3 + $0x18] sm:$0xff] %vm2354_vm2, %v6736_v10  ;;  %2356 = vst.msk [vmem:[#allocation3 + $0x8] sm:$0xff] %vm2354_vm2, %v6744_v35  ;;  %v4730_v43 = vld [vmem:[#allocation10] ss:$0 sm:$0xff] }
 0x277   : > { %v3810_v38 = vsel %vm6236_vm0, %v4716_v40, %v3809_v28  ;;  %v3814_v11 = vsel %vm6236_vm0, %v4717_v52, %v3813_v46  ;;  %vm2463_vm3 = vcmask 490944   ;;  %vm2509_vm4 = vcmask 523744   ;;  %v4731_v44 = vld [vmem:[#allocation12] ss:$0 sm:$0xff] }
 0x278   : > { %v4713_v58 = vrot.slane %v4700_v29, 9  ;;  %v2693_v8 = vpop.permute.xlu1 %2692  ;;  %3827 = vrot.lane.b32.xlu0 %v4718_v5, %s5683_s24  ;;  %v4721_v63 = vcombine.low %v3810_v38, %v3814_v11  ;;  %v3794_v23 = vsel %vm6236_vm0, %v4712_v48, %v3793_v50  ;;  %v3797_v4 = vrot.slane %v4701_v19, 5  ;;  %2466 = vst.msk [vmem:[#allocation3 + $0x10] sm:$0xff] %vm2463_vm3, %v6746_v1  ;;  %2464 = vst.msk [vmem:[#allocation3] sm:$0xff] %vm2463_vm3, %v6752_v42 }
 0x279   : > { %2467 = vst.msk [vmem:[#allocation3 + $0x18] sm:$0xff] %vm2463_vm3, %v6761_v55  ;;  %2465 = vst.msk [vmem:[#allocation3 + $0x8] sm:$0xff] %vm2463_vm3, %v6769_v3  ;;  %vm2698_vm5 = vcmask 556544   ;;  %vm2807_vm6 = vcmask 589344   ;;  %vm2853_vm7 = vcmask 622144   ;;  %vm3151_vm8 = vcmask 687744  }
 0x27a   : > { %2512 = vst.msk [vmem:[#allocation3 + $0x10] sm:$0xff] %vm2509_vm4, %v6771_v13  ;;  %2510 = vst.msk [vmem:[#allocation3] sm:$0xff] %vm2509_vm4, %v6778_v49  ;;  %3833 = vrot.lane.b32.xlu1 %v4721_v63, %s5683_s24  ;;  %v3798_v20 = vsel %vm6236_vm0, %v4713_v58, %v3797_v4  ;;  %vm3042_vm0 = vcmask 654944   ;;  %vm3197_vm9 = vcmask 720544   ;;  %vm3386_vm10 = vcmask 753344  }
 0x27b   : > { %2513 = vst.msk [vmem:[#allocation3 + $0x18] sm:$0xff] %vm2509_vm4, %v6780_v54  ;;  %2511 = vst.msk [vmem:[#allocation3 + $0x8] sm:$0xff] %vm2509_vm4, %v2500_v18  ;;  %v4719_v39 = vcombine.low %v3794_v23, %v3798_v20  ;;  %vm3495_vm11 = vcmask 786144   ;;  %vm3541_vm12 = vcmask 818944   ;;  %vm3730_vm13 = vcmask 851744  }
 0x27c   : > { %2701 = vst.msk [vmem:[#allocation3 + $0x10] sm:$0xff] %vm2698_vm5, %v2691_v24  ;;  %2699 = vst.msk [vmem:[#allocation3] sm:$0xff] %vm2698_vm5, %v2687_v36  ;;  %vm3839_vm14 = vcmask 884544   ;;  %vm4047_vm15 = vcmask 60416  }
 0x27d   : > { %2702 = vst.msk [vmem:[#allocation3 + $0x18] sm:$0xff] %vm2698_vm5, %v2693_v8  ;;  %3829 = vrot.lane.b32.xlu0 %v4719_v39, %s5683_s24  ;;  %s5494_s24 = sshll.u32 %s5684_s19, 4  ;;  %s5495_s24 = int_to_ptr.vmem [resolvable:$false] %s5494_s24 }
 0x27e   : > { %v2689_v10 = vpop.permute.xlu0 %2688  ;;  %v2800_v35 = vpop.permute.xlu1 %2799  ;;  %s5496_s21 = scalar_lea.vmem %s5495_s24, 1024  ;;  %p5497_p5 = scmp.lt.s32.totalorder %s6843_s10, %s5495_s24 }
 0x27f   : > { %2700 = vst.msk [vmem:[#allocation3 + $0x8] sm:$0xff] %vm2698_vm5, %v2689_v10  ;;  %p5498_p2 = scmp.lt.s32.totalorder %s5496_s21, %s5490_s13 }
 0x280   : > { %2810 = vst.msk [vmem:[#allocation3 + $0x10] sm:$0xff] %vm2807_vm6, %v2800_v35 }
 0x281   : > { %p5499_p9 = por %p5498_p2, %p5497_p5 }
 0x282   : > { %v2796_v1 = vpop.permute.xlu0 %2795 }
 0x283   : > { %2808 = vst.msk [vmem:[#allocation3] sm:$0xff] %vm2807_vm6, %v2796_v1  ;;  %p5500_p0 = pnand %p5499_p9, %p5493_p4 }
 0x284   : > { %v2802_v42 = vpop.permute.xlu1 %2801 }
 0x285   : > { %2811 = vst.msk [vmem:[#allocation3 + $0x18] sm:$0xff] %vm2807_vm6, %v2802_v42 }
 0x287   : > { %v2798_v55 = vpop.permute.xlu0 %2797 }
 0x288   : > { %2809 = vst.msk [vmem:[#allocation3 + $0x8] sm:$0xff] %vm2807_vm6, %v2798_v55  ;;  %v2846_v61 = vpop.permute.xlu1 %2845 }
 0x289   : > { %2856 = vst.msk [vmem:[#allocation3 + $0x10] sm:$0xff] %vm2853_vm7, %v2846_v61 }
 0x28b   : > { %v2842_v3 = vpop.permute.xlu0 %2841 }
 0x28c   : > { %2854 = vst.msk [vmem:[#allocation3] sm:$0xff] %vm2853_vm7, %v2842_v3  ;;  %v2848_v13 = vpop.permute.xlu1 %2847 }
 0x28d   : > { %2857 = vst.msk [vmem:[#allocation3 + $0x18] sm:$0xff] %vm2853_vm7, %v2848_v13 }
 0x28f   : > { %v2844_v49 = vpop.permute.xlu0 %2843 }
 0x290   : > { %2855 = vst.msk [vmem:[#allocation3 + $0x8] sm:$0xff] %vm2853_vm7, %v2844_v49  ;;  %v3035_v54 = vpop.permute.xlu1 %3034 }
 0x291   : > { %3045 = vst.msk [vmem:[#allocation3 + $0x10] sm:$0xff] %vm3042_vm0, %v3035_v54 }
 0x294   : > { %v3031_v26 = vpop.permute.xlu0 %3030 }
 0x295   : > { %3043 = vst.msk [vmem:[#allocation3] sm:$0xff] %vm3042_vm0, %v3031_v26 }
 0x29a   : > { %v3037_v53 = vpop.permute.xlu1 %3036 }
 0x29b   : > { %3046 = vst.msk [vmem:[#allocation3 + $0x18] sm:$0xff] %vm3042_vm0, %v3037_v53 }
 0x2a0   : > { %v3033_v62 = vpop.permute.xlu0 %3032  ;;  %v3144_v60 = vpop.permute.xlu1 %3143 }
 0x2a1   : > { %3044 = vst.msk [vmem:[#allocation3 + $0x8] sm:$0xff] %vm3042_vm0, %v3033_v62 }
 0x2a2   : > { %3154 = vst.msk [vmem:[#allocation3 + $0x10] sm:$0xff] %vm3151_vm8, %v3144_v60 }
 0x2a4   : > { %v3140_v47 = vpop.permute.xlu0 %3139 }
 0x2a5   : > { %3152 = vst.msk [vmem:[#allocation3] sm:$0xff] %vm3151_vm8, %v3140_v47 }
 0x2a8   : > { %v3146_v9 = vpop.permute.xlu1 %3145 }
 0x2a9   : > { %3155 = vst.msk [vmem:[#allocation3 + $0x18] sm:$0xff] %vm3151_vm8, %v3146_v9 }
 0x2aa   : > { %v3142_v2 = vpop.permute.xlu0 %3141 }
 0x2ab   : > { %3153 = vst.msk [vmem:[#allocation3 + $0x8] sm:$0xff] %vm3151_vm8, %v3142_v2 }
 0x2ac   : > { %v3190_v51 = vpop.permute.xlu1 %3189 }
 0x2ad   : > { %3200 = vst.msk [vmem:[#allocation3 + $0x10] sm:$0xff] %vm3197_vm9, %v3190_v51 }
 0x2ae   : > { %v3186_v12 = vpop.permute.xlu0 %3185 }
 0x2af   : > { %3198 = vst.msk [vmem:[#allocation3] sm:$0xff] %vm3197_vm9, %v3186_v12 }
 0x2b0   : > { %v3192_v21 = vpop.permute.xlu1 %3191 }
 0x2b1   : > { %3201 = vst.msk [vmem:[#allocation3 + $0x18] sm:$0xff] %vm3197_vm9, %v3192_v21 }
 0x2b2   : > { %v3188_v56 = vpop.permute.xlu0 %3187 }
 0x2b3   : > { %3199 = vst.msk [vmem:[#allocation3 + $0x8] sm:$0xff] %vm3197_vm9, %v3188_v56 }
 0x2b4   : > { %v3379_v41 = vpop.permute.xlu1 %3378 }
 0x2b5   : > { %3389 = vst.msk [vmem:[#allocation3 + $0x10] sm:$0xff] %vm3386_vm10, %v3379_v41 }
 0x2b7   : > { %v3375_v45 = vpop.permute.xlu0 %3374 }
 0x2b8   : > { %3387 = vst.msk [vmem:[#allocation3] sm:$0xff] %vm3386_vm10, %v3375_v45 }
 0x2bd   : > { %v3381_v33 = vpop.permute.xlu1 %3380 }
 0x2be   : > { %3390 = vst.msk [vmem:[#allocation3 + $0x18] sm:$0xff] %vm3386_vm10, %v3381_v33 }
 0x2c3   : > { %v3377_v14 = vpop.permute.xlu0 %3376  ;;  %v3488_v27 = vpop.permute.xlu1 %3487 }
 0x2c4   : > { %3388 = vst.msk [vmem:[#allocation3 + $0x8] sm:$0xff] %vm3386_vm10, %v3377_v14 }
 0x2c5   : > { %3498 = vst.msk [vmem:[#allocation3 + $0x10] sm:$0xff] %vm3495_vm11, %v3488_v27 }
 0x2c7   : > { %v3484_v57 = vpop.permute.xlu0 %3483 }
 0x2c8   : > { %3496 = vst.msk [vmem:[#allocation3] sm:$0xff] %vm3495_vm11, %v3484_v57 }
 0x2ca   : > { %v3490_v16 = vpop.permute.xlu1 %3489 }
 0x2cb   : > { %3499 = vst.msk [vmem:[#allocation3 + $0x18] sm:$0xff] %vm3495_vm11, %v3490_v16 }
 0x2cc   : > { %v3486_v15 = vpop.permute.xlu0 %3485 }
 0x2cd   : > { %3497 = vst.msk [vmem:[#allocation3 + $0x8] sm:$0xff] %vm3495_vm11, %v3486_v15 }
 0x2ce   : > { %v3534_v25 = vpop.permute.xlu1 %3533 }
 0x2cf   : > { %3544 = vst.msk [vmem:[#allocation3 + $0x10] sm:$0xff] %vm3541_vm12, %v3534_v25 }
 0x2d0   : > { %v3530_v17 = vpop.permute.xlu0 %3529 }
 0x2d1   : > { %3542 = vst.msk [vmem:[#allocation3] sm:$0xff] %vm3541_vm12, %v3530_v17 }
 0x2d2   : > { %v3536_v22 = vpop.permute.xlu1 %3535 }
 0x2d3   : > { %3545 = vst.msk [vmem:[#allocation3 + $0x18] sm:$0xff] %vm3541_vm12, %v3536_v22 }
 0x2d4   : > { %v3532_v0 = vpop.permute.xlu0 %3531 }
 0x2d5   : > { %3543 = vst.msk [vmem:[#allocation3 + $0x8] sm:$0xff] %vm3541_vm12, %v3532_v0 }
 0x2d6   : > { %v3723_v18 = vpop.permute.xlu1 %3722 }
 0x2d7   : > { %3733 = vst.msk [vmem:[#allocation3 + $0x10] sm:$0xff] %vm3730_vm13, %v3723_v18 }
 0x2d9   : > { %v3719_v24 = vpop.permute.xlu0 %3718 }
 0x2da   : > { %3731 = vst.msk [vmem:[#allocation3] sm:$0xff] %vm3730_vm13, %v3719_v24 }
 0x2e0   : > { %v3725_v31 = vpop.permute.xlu1 %3724 }
 0x2e1   : > { %3734 = vst.msk [vmem:[#allocation3 + $0x18] sm:$0xff] %vm3730_vm13, %v3725_v31 }
 0x2e6   : > { %v3832_v32 = vpop.permute.xlu1 %3831  ;;  %v3721_v34 = vpop.permute.xlu0 %3720 }
 0x2e7   : > { %3842 = vst.msk [vmem:[#allocation3 + $0x10] sm:$0xff] %vm3839_vm14, %v3832_v32 }
 0x2e8   : > { %3732 = vst.msk [vmem:[#allocation3 + $0x8] sm:$0xff] %vm3730_vm13, %v3721_v34 }
 0x2ea   : > { %v3828_v37 = vpop.permute.xlu0 %3827 }
 0x2eb   : > { %3840 = vst.msk [vmem:[#allocation3] sm:$0xff] %vm3839_vm14, %v3828_v37 }
 0x2ec   : > { %v3834_v6 = vpop.permute.xlu1 %3833 }
 0x2ed   : > { %3843 = vst.msk [vmem:[#allocation3 + $0x18] sm:$0xff] %vm3839_vm14, %v3834_v6 }
 0x2ee   : > { %v3846_v7 = vld [vmem:[#allocation3 + $0x10] sm:$0xff] }
 0x2ef   : > { %4787 = vmatprep.mubr.bf16.mxu1 %v3846_v7  ;;  %v3830_v59 = vpop.permute.xlu0 %3829 }
 0x2f0   : > { %3841 = vst.msk [vmem:[#allocation3 + $0x8] sm:$0xff] %vm3839_vm14, %v3830_v59 }
 0x2f2   : > { %v3844_v30 = vld [vmem:[#allocation3] sm:$0xff] }
 0x2f3   : > { %4783 = vmatprep.mubr.bf16.mxu0 %v3844_v30 }
 0x2f4   : > { %v3847_v5 = vld [vmem:[#allocation3 + $0x18] sm:$0xff] }
 0x2f5   : > { %4788 = vmatmul.mubr.bf16.vlgmr.msra.gmra.mrb[0].mxu1 %v3847_v5 }
 0x2f7   : > { %v3845_v40 = vld [vmem:[#allocation3 + $0x8] sm:$0xff] }
 0x2f8   : > { %4784 = vmatmul.mubr.bf16.vlgmr.msra.gmra.mrb[0].mxu0 %v3845_v40 }
 0x3c8   : > { %v4789_v28 = vpop.f32.mrb[0].mxu1 }
 0x3c9   : > { %v3990_v52 = vmul.f32 %v4789_v28, %v4730_v43  ;;  %v3962_v46 = vpop.f32.mrb[1].mxu1 }
 0x3ca   : > { %v3988_v29 = vmul.f32 %v4730_v43, %v3962_v46  ;;  %v4790_v19 = vpop.f32.mrb[2].mxu1 }
 0x3cb   : > { %v4785_v48 = vpop.f32.mrb[0].mxu0  ;;  %v4005_v50 = vadd.f32 %v4731_v44, %v3990_v52  ;;  %v3991_v38 = vmul.f32 %v4790_v19, %v4730_v43  ;;  %v3965_v11 = vpop.f32.mrb[3].mxu1 }
 0x3cc   : > { %v3986_v58 = vmul.f32 %v4785_v48, %v4730_v43  ;;  %v3946_v36 = vpop.f32.mrb[1].mxu0  ;;  %v4003_v8 = vadd.f32 %v4731_v44, %v3988_v29  ;;  %v3989_v63 = vmul.f32 %v4730_v43, %v3965_v11 }
 0x3cd   : > { %v4013_v23 = vmax.f32 %v4005_v50, 0.0  ;;  %v3984_v4 = vmul.f32 %v4730_v43, %v3946_v36  ;;  %v4786_v20 = vpop.f32.mrb[2].mxu0  ;;  %v4006_v39 = vadd.f32 %v4731_v44, %v3991_v38 }
 0x3ce   : > { %v4001_v10 = vadd.f32 %v4731_v44, %v3986_v58  ;;  %v4011_v35 = vmax.f32 %v4003_v8, 0.0  ;;  %v3987_v1 = vmul.f32 %v4786_v20, %v4730_v43  ;;  %v3949_v42 = vpop.f32.mrb[3].mxu0  ;;  %v4004_v55 = vadd.f32 %v4731_v44, %v3989_v63 }
 0x3cf   : > { %v4753_v61 = vpack.c.bf16 %v4013_v23, %v4013_v23  ;;  %v3999_v3 = vadd.f32 %v4731_v44, %v3984_v4  ;;  %v4014_v13 = vmax.f32 %v4006_v39, 0.0  ;;  %v3985_v49 = vmul.f32 %v4730_v43, %v3949_v42 }
 0x3d0   : > { %v4009_v54 = vmax.f32 %v4001_v10, 0.0  ;;  %v4751_v26 = vpack.c.bf16 %v4011_v35, %v4011_v35  ;;  %v4002_v53 = vadd.f32 %v4731_v44, %v3987_v1  ;;  %v4012_v62 = vmax.f32 %v4004_v55, 0.0 }
 0x3d1   : > { %4054 = vst.msk [vmem:[%s6086_s28 + $0x18] sm:$0xf] %vm4047_vm15, %v4753_v61  ;;  %v4007_v60 = vmax.f32 %v3999_v3, 0.0  ;;  %v4754_v47 = vpack.c.bf16 %v4014_v13, %v4014_v13  ;;  %v4000_v9 = vadd.f32 %v4731_v44, %v3985_v49 }
 0x3d2   : > { %v4749_v2 = vpack.c.bf16 %v4009_v54, %v4009_v54  ;;  %4052 = vst.msk [vmem:[%s6086_s28 + $0x10] sm:$0xf] %vm4047_vm15, %v4751_v26  ;;  %v4010_v51 = vmax.f32 %v4002_v53, 0.0  ;;  %v4752_v12 = vpack.c.bf16 %v4012_v62, %v4012_v62 }
 0x3d3   : > { %v4747_v21 = vpack.c.bf16 %v4007_v60, %v4007_v60  ;;  %4055 = vst.msk [vmem:[%s6086_s28 + $0x1c] sm:$0xf] %vm4047_vm15, %v4754_v47  ;;  %v4008_v56 = vmax.f32 %v4000_v9, 0.0 }
 0x3d4   : > { %4050 = vst.msk [vmem:[%s6086_s28 + $0x8] sm:$0xf] %vm4047_vm15, %v4749_v2  ;;  %v4750_v41 = vpack.c.bf16 %v4010_v51, %v4010_v51  ;;  %4053 = vst.msk [vmem:[%s6086_s28 + $0x14] sm:$0xf] %vm4047_vm15, %v4752_v12 }
 0x3d5   : > { %4048 = vst.msk [vmem:[%s6086_s28] sm:$0xf] %vm4047_vm15, %v4747_v21  ;;  %v4748_v45 = vpack.c.bf16 %v4008_v56, %v4008_v56 }
 0x3d6   : > { %4051 = vst.msk [vmem:[%s6086_s28 + $0xc] sm:$0xf] %vm4047_vm15, %v4750_v41 }
 0x3d7   : > { %4049 = vst.msk [vmem:[%s6086_s28 + $0x4] sm:$0xf] %vm4047_vm15, %v4748_v45 }
 0x3d8   : > { %5503 = shalt.err (!%p5500_p0)
}
 0x3d9   : > { %s5504_s2 = scalar_lea.hbm %s6841_s9, 512  ;;  %s5508_s29 = scalar_lea.hbm %s7030_s16, 8192 }
 0x3da   : > { %p5505_p10 = scmp.ne.s32.totalorder %s6841_s9, %s5504_s2  ;;  %p5509_p11 = scmp.lt.u32.totalorder %s6841_s9, %s7030_s16 }
 0x3db   : > { %p5510_p8 = scmp.lt.u32.totalorder %s5508_s29, %s5504_s2  ;;  %p5512_p1 = scmp.lt.u32.totalorder %s5504_s2, %s6841_s9 }
 0x3dc   : > { %p5506_p7 = pnand %p5505_p10, %p7031_p13 }
 0x3dd   : > { %p5511_p12 = por %p5510_p8, %p5509_p11 }
 0x3de   : > { %p5507_p3 = pneg %p5506_p7 }
 0x3df   : > { %p5513_p6 = por %p5512_p1, %p5511_p12 }
 0x3e1   : > { %p5514_p4 = pnand %p5513_p6, %p5507_p3 }
 0x3e3   : > { %5517 = shalt.err (!%p5514_p4)
}
 0x3e4   : > { %4823 = dma.vmem_to_hbm [thread:$0]  (%p7031_p13), %s6843_s10, 512, %s6841_s9, %s6851_s18, %s5673_s0, %s5673_s0, %s5659_s8  }
 0x3e5 PF: > { %s7032_s14 = sld [smem:[#allocation19_spill]]  ;;  %s7033_s15 = sld [smem:[#allocation28_spill]] }
 0x3e6   : > { %p4853_p5 = scmp.ge.s32.totalorder %s5648_s6, 2 }
 0x3eb   : > { %s4087_s5 = sand.u32 1, %s7032_s14   ;;  %p7034_p2 = scmp.ne.s32.totalorder %s7033_s15, 0 }
 0x3ec   : > { %s4088_s11 = scalar_lea.sflag [#allocation6], %s4087_s5 }
 0x3ed   : > { %p4843_p9 = pnand %p4853_p5, %p7034_p2 }
 0x3ef   : > { %5591 = dma.done.wait (!%p4843_p9), %s4088_s11, 512  }
 0x3f0   : > { %5593 = vsyncadd (!%p4843_p9), %s4088_s11, 4294966784  ;;  %s25_s6 = sadd.s32 1, %s5648_s6   ;;  %s7036_s18 = sld [smem:[#allocation20_spill]] }
 0x3f1   : > { %p6883_p0 = scmp.ge.s32.totalorder %s25_s6, 18   ;;  %s7037_s8 = sld [smem:[#allocation21_spill]] }
 0x3f2   : > { %s7038_s26 = sld [smem:[#allocation30_spill]]  ;;  %s7039_s27 = sld [smem:[#allocation24_spill]] }
 0x3f3   : > { %s7040_s29 = sld [smem:[#allocation31_spill]]  ;;  %s7041_s0 = sld [smem:[#allocation29_spill]] }
 0x3f4   : > { %s7042_s19 = smov %s5604_s20  ;;  %s7043_s20 = smov %s6006_s3 }
 0x3f5   : > { %s7044_s21 = smov %s5612_s22  ;;  %s7045_s22 = smov %s5616_s23 }
 0x3f6   : > { %s7046_s23 = smov %s6009_s4  ;;  %s7047_s24 = smov %s5624_s25 }
 0x3f7   : > { %s7048_s25 = smov %s7037_s8  ;;  %s7049_s28 = smov %s5644_s30 }
 0x3f8   :  { %24 = sbr.rel (!%p6883_p0) target bundleno = 19 (0x13), region = 140 }
 0x3f9   : > { %s7050_s30 = smov %s7041_s0 }
 0x3ff   :  { %4093 = vsyncpa [#allocation5], 1 }
 0x400   :  { %4095 = vsyncpa [#allocation5 + $0x1], 1 }
 0x401   :  { %4096 = vsyncpa [#allocation8], 1 }
 0x402   :  { %4098 = vsyncpa [#allocation8 + $0x1], 1 }
 0x403   :  { %4099 = vsyncpa [#allocation11], 1 }
 0x404   :  { %4100 = vsyncpa [#allocation6], 1 }
 0x405   :  { %4102 = vsyncpa [#allocation6 + $0x1], 1 }

</bundles_post_ra>
